<compile_context>
chip_gen: v7x
topology: tpu7x:2x2x1
jax: 0.10.0
libtpu: 0.0.40
codegen_flags: <defaults>
</compile_context>

<pallas_src>
import jax
import jax.numpy as jnp
from jax.experimental import pallas as pl
from jax.experimental.pallas import tpu as pltpu


def resconv_kernel(x_ref, w_ref, b_ref, out_ref, xpad_ref):
    """Fused 3x3 same-conv + bias + residual for a block of Bt NHWC images.

    x_ref   : (Bt, H, W, C)        unpadded activations (f32)
    w_ref   : (3, 3*C, Cout)       weights, row index = kw*C + ci (compute dtype)
    b_ref   : (1, Cout)            bias (f32)
    out_ref : (Bt, H, W, Cout)     conv(x) + bias + x
    xpad_ref: (Bt, H+2, W+2, C)    VMEM scratch for the zero-padded activations
    """
    Bt, H, W, C = x_ref.shape
    Cout = out_ref.shape[-1]

    # Build the zero-padded slab entirely in VMEM (no HBM round trip for the
    # padding).  Re-zero every step: the scratch is uninitialized, and with a
    # "parallel" grid axis program_id==0 is not guaranteed to run on each core.
    xpad_ref[...] = jnp.zeros_like(xpad_ref)
    xpad_ref[:, 1:H + 1, 1:W + 1, :] = x_ref[...].astype(xpad_ref.dtype)

    # 3x3 conv as 3 MXU matmuls (one per kernel row), each contracting K = 3*C:
    # the three kw taps are concatenated along the channel/lane axis (im2col
    # over kw).  Accumulate in f32 registers (no zero-slab materialization).
    acc2d = None
    for kh in range(3):
        slab = xpad_ref[:, kh:kh + H, :, :]                            # (Bt, H, W+2, C)
        patch = jnp.concatenate(
            [slab[:, :, kw:kw + W, :] for kw in range(3)], axis=-1)    # (Bt, H, W, 3C)
        # Merge leading dims only (lane dim untouched -> cheap, layout-preserving).
        patch2d = patch.reshape(Bt * H * W, 3 * C)
        part = jnp.dot(patch2d, w_ref[kh],
                       preferred_element_type=jnp.float32)             # (Bt*H*W, Cout)
        acc2d = part if acc2d is None else acc2d + part

    acc = acc2d.reshape(Bt, H, W, Cout)
    # Bias + residual directly in (Bt, H, W, C), all in f32 (VPU path f32 on v5e).
    acc = acc + b_ref[...].astype(jnp.float32)       # (1, Cout) broadcasts over (Bt,H,W,·)
    acc = acc + x_ref[...].astype(jnp.float32)       # residual (requires Cout == C)
    out_ref[...] = acc.astype(out_ref.dtype)


def _pick_block_n(N, H, W, C, Cout, act_bytes, cmp_bytes, budget=16 * 1024 * 1024):
    """Largest divisor of N whose block footprint fits a rough VMEM budget."""
    per_img = (2 * H * W * C * act_bytes              # input block (double-buffered)
               + 2 * H * W * Cout * act_bytes         # output block (double-buffered)
               + (H + 2) * (W + 2) * C * cmp_bytes    # padded scratch
               + H * W * 3 * C * cmp_bytes            # im2col patch
               + H * W * Cout * 4)                    # f32 accumulator
    w_bytes = 2 * 9 * C * Cout * cmp_bytes            # resident weights
    avail = max(budget - w_bytes, per_img)
    bn = max(1, min(N, avail // per_img))
    while N % bn:
        bn -= 1
    return int(bn), int(per_img), int(w_bytes)


def resconv_forward(x_nchw, weight_oihw, bias, *, compute_dtype=jnp.bfloat16):
    """PyTorch semantics: out = Conv2d(ic, ot, k=3, pad=1)(x) + x   (NCHW in/out)."""
    N, C, H, W = x_nchw.shape
    Cout, Cin, KH, KW = weight_oihw.shape
    assert (KH, KW) == (3, 3)
    assert Cout == C and Cin == C, "residual add requires out_channels == in_channels"

    # Layout glue (kernel works in NHWC, PyTorch API is NCHW).  No jnp.pad here:
    # the 1-pixel halo is built inside the kernel in VMEM.
    x = jnp.transpose(x_nchw, (0, 2, 3, 1))                              # (N, H, W, C)
    # (Cout, Cin, 3, 3) -> (kh, kw, ci, co) -> (3, 3*Cin, Cout); row = kw*Cin + ci.
    w = jnp.transpose(weight_oihw, (2, 3, 1, 0)).reshape(3, 3 * Cin, Cout)
    w = w.astype(compute_dtype)                                          # bf16 MXU operands
    b = bias.reshape(1, Cout).astype(jnp.float32)

    act_bytes = x.dtype.itemsize
    cmp_bytes = jnp.dtype(compute_dtype).itemsize
    block_n, per_img, w_bytes = _pick_block_n(N, H, W, C, Cout, act_bytes, cmp_bytes)

    # Raise the scoped VMEM limit when blocks are big (v5e default is 16 MiB);
    # cap below v7x's 64 MiB physical VMEM.
    est = block_n * per_img + w_bytes
    vmem_limit = int(min(max(2 * est, 32 * 1024 * 1024), 48 * 1024 * 1024))

    out_nhwc = pl.pallas_call(
        resconv_kernel,
        out_shape=jax.ShapeDtypeStruct((N, H, W, Cout), x.dtype),
        grid_spec=pltpu.PrefetchScalarGridSpec(
            num_scalar_prefetch=0,
            grid=(N // block_n,),
            in_specs=[
                pl.BlockSpec((block_n, H, W, C), lambda n: (n, 0, 0, 0)),
                pl.BlockSpec((3, 3 * C, Cout), lambda n: (0, 0, 0)),
                pl.BlockSpec((1, Cout), lambda n: (0, 0)),
            ],
            out_specs=pl.BlockSpec((block_n, H, W, Cout), lambda n: (n, 0, 0, 0)),
            scratch_shapes=[pltpu.VMEM((block_n, H + 2, W + 2, C), compute_dtype)],
        ),
        compiler_params=pltpu.CompilerParams(
            dimension_semantics=("parallel",),
            vmem_limit_bytes=vmem_limit,
        ),
    )(x, w, b)

    return jnp.transpose(out_nhwc, (0, 3, 1, 2))                          # back to NCHW


if __name__ == "__main__":
    key = jax.random.PRNGKey(0)
    kx, kw, kb = jax.random.split(key, 3)

    # VGG16-style residual conv block: 3x3, pad=1, Cout == Cin.
    # C is a multiple of 128 (as in real VGG widths) so the output store and
    # MXU N-dim are lane-dense; the kernel also works for smaller C.
    N, C, H, W = 2, 128, 16, 16
    x = jax.random.normal(kx, (N, C, H, W), dtype=jnp.float32)

    # PyTorch Conv2d default init: U(-1/sqrt(fan_in), 1/sqrt(fan_in)), fan_in = C*3*3.
    fan_in = C * 3 * 3
    bound = 1.0 / (fan_in ** 0.5)
    weight = jax.random.uniform(kw, (C, C, 3, 3), jnp.float32, -bound, bound)  # OIHW
    bias = jax.random.uniform(kb, (C,), jnp.float32, -bound, bound)

    out = resconv_forward(x, weight, bias)
    out = jax.block_until_ready(out)

    # Reference with matching precision (bf16 operands, f32 accumulation) -> tight check.
    ref_bf16 = jax.lax.conv_general_dilated(
        x.astype(jnp.bfloat16), weight.astype(jnp.bfloat16),
        window_strides=(1, 1), padding="SAME",
        dimension_numbers=("NCHW", "OIHW", "NCHW"),
        preferred_element_type=jnp.float32,
    ) + bias[None, :, None, None] + x
    # Full-precision PyTorch-semantics reference -> loose check (bf16 rounding).
    ref_f32 = jax.lax.conv_general_dilated(
        x, weight, window_strides=(1, 1), padding="SAME",
        dimension_numbers=("NCHW", "OIHW", "NCHW"),
    ) + bias[None, :, None, None] + x

    assert out.shape == (N, C, H, W)
    assert jnp.allclose(out, ref_bf16, atol=1e-3, rtol=1e-3), "mismatch vs bf16 reference"
    assert jnp.allclose(out, ref_f32, atol=5e-2, rtol=5e-2), "mismatch vs f32 reference"

    print("KERNEL_OK")
</pallas_src>

<mosaic_0001>
module attributes {stable_mosaic.version = 11 : i64} {
  func.func @resconv_kernel(%arg0: i32, %arg1: memref<2x16x16x128xf32, #tpu.memory_space<vmem>>, %arg2: memref<3x384x128xbf16, #tpu.memory_space<vmem>>, %arg3: memref<1x128xf32, #tpu.memory_space<vmem>>, %arg4: memref<2x16x16x128xf32, #tpu.memory_space<vmem>>, %arg5: memref<2x18x18x128xbf16, #tpu.memory_space<vmem>>) attributes {dimension_semantics = [#tpu.dimension_semantics<parallel>], iteration_bounds = array<i64: 1>, scalar_prefetch = 0 : i64, scratch_operands = 1 : i64, tpu.core_type = #tpu.core_type<tc>, window_params = [{transform_indices = @transform_0, window_bounds = array<i64: 2, 16, 16, 128>}, {pipeline_mode = #tpu.pipeline_mode<synchronous>, transform_indices = @transform_1, window_bounds = array<i64: 3, 384, 128>}, {pipeline_mode = #tpu.pipeline_mode<synchronous>, transform_indices = @transform_2, window_bounds = array<i64: 1, 128>}, {transform_indices = @transform_3, window_bounds = array<i64: 2, 16, 16, 128>}]} {
    %cst = arith.constant 0.000000e+00 : bf16
    %0 = vector.broadcast %cst : bf16 to vector<2x18x18x128xbf16>
    %c0 = arith.constant 0 : index
    %c0_0 = arith.constant 0 : index
    %c0_1 = arith.constant 0 : index
    %c0_2 = arith.constant 0 : index
    %1 = vector.load %arg5[%c0, %c0_0, %c0_1, %c0_2] : memref<2x18x18x128xbf16, #tpu.memory_space<vmem>>, vector<2x18x18x128xbf16>
    tpu.vector_store %arg5[%c0, %c0_0, %c0_1, %c0_2], %0 {strides = array<i32>} : memref<2x18x18x128xbf16, #tpu.memory_space<vmem>>, vector<2x18x18x128xbf16>,
    %c0_3 = arith.constant 0 : index
    %c0_4 = arith.constant 0 : index
    %c0_5 = arith.constant 0 : index
    %c0_6 = arith.constant 0 : index
    %2 = vector.load %arg1[%c0_3, %c0_4, %c0_5, %c0_6] : memref<2x16x16x128xf32, #tpu.memory_space<vmem>>, vector<2x16x16x128xf32>
    %3 = arith.truncf %2 : vector<2x16x16x128xf32> to vector<2x16x16x128xbf16>
    %c0_7 = arith.constant 0 : index
    %c1 = arith.constant 1 : index
    %c1_8 = arith.constant 1 : index
    %c0_9 = arith.constant 0 : index
    %4 = vector.load %arg5[%c0_7, %c1, %c1_8, %c0_9] : memref<2x18x18x128xbf16, #tpu.memory_space<vmem>>, vector<2x16x16x128xbf16>
    tpu.vector_store %arg5[%c0_7, %c1, %c1_8, %c0_9], %3 {strides = array<i32>} : memref<2x18x18x128xbf16, #tpu.memory_space<vmem>>, vector<2x16x16x128xbf16>,
    %c0_10 = arith.constant 0 : index
    %c0_11 = arith.constant 0 : index
    %c0_12 = arith.constant 0 : index
    %c0_13 = arith.constant 0 : index
    %5 = vector.load %arg5[%c0_10, %c0_11, %c0_12, %c0_13] : memref<2x18x18x128xbf16, #tpu.memory_space<vmem>>, vector<2x16x18x128xbf16>
    %6 = vector.extract_strided_slice %5 {offsets = [0, 0, 0, 0], sizes = [2, 16, 16, 128], strides = [1, 1, 1, 1]} : vector<2x16x18x128xbf16> to vector<2x16x16x128xbf16>
    %7 = vector.extract_strided_slice %5 {offsets = [0, 0, 1, 0], sizes = [2, 16, 16, 128], strides = [1, 1, 1, 1]} : vector<2x16x18x128xbf16> to vector<2x16x16x128xbf16>
    %8 = vector.extract_strided_slice %5 {offsets = [0, 0, 2, 0], sizes = [2, 16, 16, 128], strides = [1, 1, 1, 1]} : vector<2x16x18x128xbf16> to vector<2x16x16x128xbf16>
    %9 = tpu.concatenate %6, %7, %8 in 3 : vector<2x16x16x128xbf16>, vector<2x16x16x128xbf16>, vector<2x16x16x128xbf16> -> vector<2x16x16x384xbf16>
    %10 = vector.shape_cast %9 : vector<2x16x16x384xbf16> to vector<512x384xbf16>
    %c0_14 = arith.constant 0 : index
    %c0_15 = arith.constant 0 : index
    %c0_16 = arith.constant 0 : index
    %11 = vector.load %arg2[%c0_14, %c0_15, %c0_16] : memref<3x384x128xbf16, #tpu.memory_space<vmem>>, vector<1x384x128xbf16>
    %12 = vector.shape_cast %11 : vector<1x384x128xbf16> to vector<384x128xbf16>
    %cst_17 = arith.constant dense<0.000000e+00> : vector<512x128xf32>
    %13 = tpu.matmul %10, %12, %cst_17 {dimension_numbers = #tpu.dot_dimension_numbers<[1], [0], [0], [1], [0, 0, 1, 1], [], []>} : vector<512x384xbf16>, vector<384x128xbf16>, vector<512x128xf32> -> vector<512x128xf32>
    %c0_18 = arith.constant 0 : index
    %c1_19 = arith.constant 1 : index
    %c0_20 = arith.constant 0 : index
    %c0_21 = arith.constant 0 : index
    %14 = vector.load %arg5[%c0_18, %c1_19, %c0_20, %c0_21] : memref<2x18x18x128xbf16, #tpu.memory_space<vmem>>, vector<2x16x18x128xbf16>
    %15 = vector.extract_strided_slice %14 {offsets = [0, 0, 0, 0], sizes = [2, 16, 16, 128], strides = [1, 1, 1, 1]} : vector<2x16x18x128xbf16> to vector<2x16x16x128xbf16>
    %16 = vector.extract_strided_slice %14 {offsets = [0, 0, 1, 0], sizes = [2, 16, 16, 128], strides = [1, 1, 1, 1]} : vector<2x16x18x128xbf16> to vector<2x16x16x128xbf16>
    %17 = vector.extract_strided_slice %14 {offsets = [0, 0, 2, 0], sizes = [2, 16, 16, 128], strides = [1, 1, 1, 1]} : vector<2x16x18x128xbf16> to vector<2x16x16x128xbf16>
    %18 = tpu.concatenate %15, %16, %17 in 3 : vector<2x16x16x128xbf16>, vector<2x16x16x128xbf16>, vector<2x16x16x128xbf16> -> vector<2x16x16x384xbf16>
    %19 = vector.shape_cast %18 : vector<2x16x16x384xbf16> to vector<512x384xbf16>
    %c1_22 = arith.constant 1 : index
    %c0_23 = arith.constant 0 : index
    %c0_24 = arith.constant 0 : index
    %20 = vector.load %arg2[%c1_22, %c0_23, %c0_24] : memref<3x384x128xbf16, #tpu.memory_space<vmem>>, vector<1x384x128xbf16>
    %21 = vector.shape_cast %20 : vector<1x384x128xbf16> to vector<384x128xbf16>
    %cst_25 = arith.constant dense<0.000000e+00> : vector<512x128xf32>
    %22 = tpu.matmul %19, %21, %cst_25 {dimension_numbers = #tpu.dot_dimension_numbers<[1], [0], [0], [1], [0, 0, 1, 1], [], []>} : vector<512x384xbf16>, vector<384x128xbf16>, vector<512x128xf32> -> vector<512x128xf32>
    %23 = arith.addf %13, %22 : vector<512x128xf32>
    %c0_26 = arith.constant 0 : index
    %c2 = arith.constant 2 : index
    %c0_27 = arith.constant 0 : index
    %c0_28 = arith.constant 0 : index
    %24 = vector.load %arg5[%c0_26, %c2, %c0_27, %c0_28] : memref<2x18x18x128xbf16, #tpu.memory_space<vmem>>, vector<2x16x18x128xbf16>
    %25 = vector.extract_strided_slice %24 {offsets = [0, 0, 0, 0], sizes = [2, 16, 16, 128], strides = [1, 1, 1, 1]} : vector<2x16x18x128xbf16> to vector<2x16x16x128xbf16>
    %26 = vector.extract_strided_slice %24 {offsets = [0, 0, 1, 0], sizes = [2, 16, 16, 128], strides = [1, 1, 1, 1]} : vector<2x16x18x128xbf16> to vector<2x16x16x128xbf16>
    %27 = vector.extract_strided_slice %24 {offsets = [0, 0, 2, 0], sizes = [2, 16, 16, 128], strides = [1, 1, 1, 1]} : vector<2x16x18x128xbf16> to vector<2x16x16x128xbf16>
    %28 = tpu.concatenate %25, %26, %27 in 3 : vector<2x16x16x128xbf16>, vector<2x16x16x128xbf16>, vector<2x16x16x128xbf16> -> vector<2x16x16x384xbf16>
    %29 = vector.shape_cast %28 : vector<2x16x16x384xbf16> to vector<512x384xbf16>
    %c2_29 = arith.constant 2 : index
    %c0_30 = arith.constant 0 : index
    %c0_31 = arith.constant 0 : index
    %30 = vector.load %arg2[%c2_29, %c0_30, %c0_31] : memref<3x384x128xbf16, #tpu.memory_space<vmem>>, vector<1x384x128xbf16>
    %31 = vector.shape_cast %30 : vector<1x384x128xbf16> to vector<384x128xbf16>
    %cst_32 = arith.constant dense<0.000000e+00> : vector<512x128xf32>
    %32 = tpu.matmul %29, %31, %cst_32 {dimension_numbers = #tpu.dot_dimension_numbers<[1], [0], [0], [1], [0, 0, 1, 1], [], []>} : vector<512x384xbf16>, vector<384x128xbf16>, vector<512x128xf32> -> vector<512x128xf32>
    %33 = arith.addf %23, %32 : vector<512x128xf32>
    %34 = vector.shape_cast %33 : vector<512x128xf32> to vector<2x16x16x128xf32>
    %c0_33 = arith.constant 0 : index
    %c0_34 = arith.constant 0 : index
    %35 = vector.load %arg3[%c0_33, %c0_34] : memref<1x128xf32, #tpu.memory_space<vmem>>, vector<1x128xf32>
    %36 = vector.shape_cast %35 : vector<1x128xf32> to vector<1x1x1x128xf32>
    %37 = vector.broadcast %36 : vector<1x1x1x128xf32> to vector<2x16x16x128xf32>
    %38 = arith.addf %34, %37 : vector<2x16x16x128xf32>
    %c0_35 = arith.constant 0 : index
    %c0_36 = arith.constant 0 : index
    %c0_37 = arith.constant 0 : index
    %c0_38 = arith.constant 0 : index
    %39 = vector.load %arg1[%c0_35, %c0_36, %c0_37, %c0_38] : memref<2x16x16x128xf32, #tpu.memory_space<vmem>>, vector<2x16x16x128xf32>
    %40 = arith.addf %38, %39 : vector<2x16x16x128xf32>
    %c0_39 = arith.constant 0 : index
    %c0_40 = arith.constant 0 : index
    %c0_41 = arith.constant 0 : index
    %c0_42 = arith.constant 0 : index
    %41 = vector.load %arg4[%c0_39, %c0_40, %c0_41, %c0_42] : memref<2x16x16x128xf32, #tpu.memory_space<vmem>>, vector<2x16x16x128xf32>
    tpu.vector_store %arg4[%c0_39, %c0_40, %c0_41, %c0_42], %40 {strides = array<i32>} : memref<2x16x16x128xf32, #tpu.memory_space<vmem>>, vector<2x16x16x128xf32>,
    return
  }
  func.func @transform_0(%arg0: i32) -> (i32, i32, i32, i32) {
    %c0_i32 = arith.constant 0 : i32
    %c0_i32_0 = arith.constant 0 : i32
    %c0_i32_1 = arith.constant 0 : i32
    %c0_i32_2 = arith.constant 0 : i32
    return %arg0, %c0_i32, %c0_i32_0, %c0_i32_1 : i32, i32, i32, i32
  }
  func.func @transform_1(%arg0: i32) -> (i32, i32, i32) {
    %c0_i32 = arith.constant 0 : i32
    %c0_i32_0 = arith.constant 0 : i32
    %c0_i32_1 = arith.constant 0 : i32
    %c0_i32_2 = arith.constant 0 : i32
    return %c0_i32, %c0_i32_0, %c0_i32_1 : i32, i32, i32
  }
  func.func @transform_2(%arg0: i32) -> (i32, i32) {
    %c0_i32 = arith.constant 0 : i32
    %c0_i32_0 = arith.constant 0 : i32
    %c0_i32_1 = arith.constant 0 : i32
    return %c0_i32, %c0_i32_0 : i32, i32
  }
  func.func @transform_3(%arg0: i32) -> (i32, i32, i32, i32) {
    %c0_i32 = arith.constant 0 : i32
    %c0_i32_0 = arith.constant 0 : i32
    %c0_i32_1 = arith.constant 0 : i32
    %c0_i32_2 = arith.constant 0 : i32
    return %arg0, %c0_i32, %c0_i32_0, %c0_i32_1 : i32, i32, i32, i32
  }
}

</mosaic_0001>

<bundles_post_ra>
// kernel: tpu_custom_call.1
= control target key start
LH: loop header
LB: loop body
LE: loop exit
PB: predicated region body
PF: predicated region fallthrough
CT: control target
= control target key end

     0   :  { %8 = vsyncpa [#allocation4], 0  ;;  %s10236_s0 = inlined_call_operand.hbm [shape: f32[2,16,16,128], index: 0, kind: input, shape index: {}]   ;;  %s10237_s1 = inlined_call_operand.hbm [shape: bf16[3,384,128], index: 1, kind: input, shape index: {}]   ;;  %s10238_s2 = inlined_call_operand.vmem [shape: f32[1,128], index: 2, kind: input, shape index: {}]   ;;  %s10239_s3 = inlined_call_operand.hbm [shape: f32[2,16,16,128], index: 3, kind: output, shape index: {}]  }
   0x1   :  { %9 = vsyncpa [#allocation7], 0 }
   0x2   :  { %10 = vsyncpa [#allocation5], 0  ;;  %s7981_s12 = smov [#allocation3]   ;;  %s7909_s16 = scalar_lea.hbm %s10236_s0, 8192 }
   0x3   :  { %s16_s13 = sshll.u32 %s7981_s12, 4  ;;  %p7910_p0 = scmp.ne.s32.totalorder %s10236_s0, %s7909_s16  ;;  %s17_s13 = int_to_ptr.vmem [resolvable:$true] %s16_s13 }
   0x4   :  { %p7913_p1 = scmp.lt.u32.totalorder %s7909_s16, %s10236_s0 }
   0x6   :  { %p7915_p2 = pnand %p7913_p1, %p7910_p0 }
   0x8   :  { %7918 = shalt.err (!%p7915_p2)
}
   0x9   :  { %s7919_s21 = scalar_lea.vmem %s17_s13, 8192  ;;  %p7924_p4 = scmp.lt.s32.totalorder %s17_s13, %s17_s13 }
   0xa   :  { %p7920_p3 = scmp.ne.s32.totalorder %s17_s13, %s7919_s21  ;;  %p7925_p5 = scmp.lt.s32.totalorder %s7919_s21, %s7919_s21 }
   0xc   :  { %p7926_p6 = por %p7925_p5, %p7924_p4 }
   0xe   :  { %p7927_p7 = pnand %p7926_p6, %p7920_p3 }
  0x10   :  { %7930 = shalt.err (!%p7927_p7)
}
  0x11   :  { %s7982_s22 = smov 128   ;;  %s7983_s23 = smov 8  }
  0x12   :  { %22 = dma.hbm_to_vmem [thread:$0]  %s10236_s0, 8192, %s17_s13, [#allocation4], %s7982_s22, %s7982_s22, %s7983_s23  }
  0x13   :  { %s7984_s26 = smov [#allocation6]   ;;  %s7931_s30 = scalar_lea.hbm %s10237_s1, 9216 }
  0x14   :  { %s28_s27 = sshll.u32 %s7984_s26, 4  ;;  %p7932_p8 = scmp.ne.s32.totalorder %s10237_s1, %s7931_s30  ;;  %s29_s27 = int_to_ptr.vmem [resolvable:$true] %s28_s27 }
  0x15   :  { %p7935_p9 = scmp.lt.u32.totalorder %s7931_s30, %s10237_s1 }
  0x17   :  { %p7937_p10 = pnand %p7935_p9, %p7932_p8 }
  0x19   :  { %7940 = shalt.err (!%p7937_p10)
}
  0x1a   :  { %s7941_s8 = scalar_lea.vmem %s29_s27, 9216  ;;  %p7946_p12 = scmp.lt.s32.totalorder %s29_s27, %s29_s27 }
  0x1b   :  { %p7942_p11 = scmp.ne.s32.totalorder %s29_s27, %s7941_s8  ;;  %p7947_p13 = scmp.lt.s32.totalorder %s7941_s8, %s7941_s8 }
  0x1d   :  { %p7948_p0 = por %p7947_p13, %p7946_p12 }
  0x1f   :  { %p7949_p1 = pnand %p7948_p0, %p7942_p11 }
  0x21   :  { %7952 = shalt.err (!%p7949_p1)
}
  0x22   :  { %s7985_s0 = smov 64   ;;  %s7986_s9 = smov 4  }
  0x23   :  { %34 = dma.hbm_to_vmem [thread:$0]  %s10237_s1, 9216, %s29_s27, [#allocation7], %s7985_s0, %s7985_s0, %s7986_s9  }
  0x24   :  { %7975 = dma.done.wait [#allocation4], 8192  }
  0x25   :  { %7976 = vsyncadd [#allocation4], 4294959104 }
  0x26   :  { %7977 = dma.done.wait [#allocation7], 9216  }
  0x27   :  { %7978 = vsyncadd [#allocation7], 4294958080  ;;  %v7987_v0 = vmov 0   ;;  %v7502_v1 = vld [vmem:[#allocation6 + $0xc0] sm:$0xff]   ;;  %v7504_v3 = vld [vmem:[#allocation6 + $0xc8] sm:$0xff]   ;;  %vm1052_vm2 = vcmask 1043456  }
  0x28   :  { %3380 = vmatprep.subr.bf16.mxu0 %v7987_v0  ;;  %44 = vst [vmem:[#allocation2] sm:$0xf] %v7987_v0  ;;  %45 = vst [vmem:[#allocation2 + $0x4] sm:$0xf] %v7987_v0  ;;  %v8145_v2 = vld [vmem:[#allocation6 + $0x140] sm:$0xff]   ;;  %v7505_v4 = vld [vmem:[#allocation6 + $0x148] sm:$0xff]  }
  0x29   :  { %46 = vst [vmem:[#allocation2 + $0x8] sm:$0x1] %v7987_v0  ;;  %47 = vst [vmem:[#allocation2 + $0xc] sm:$0xf] %v7987_v0  ;;  %3381 = vmatpush1.bf16.msra.mxu0 %v7502_v1  ;;  %7478 = vmatprep.subr.bf16.mxu1 %v8145_v2  ;;  %v7507_v5 = vld [vmem:[#allocation6 + $0x150] sm:$0xff]   ;;  %v7509_v7 = vld [vmem:[#allocation6 + $0x158] sm:$0xff]  }
  0x2a   :  { %48 = vst [vmem:[#allocation2 + $0x10] sm:$0xf] %v7987_v0  ;;  %49 = vst [vmem:[#allocation2 + $0x14] sm:$0x1] %v7987_v0  ;;  %3382 = vmatprep.subr.bf16.mxu0 %v7987_v0  ;;  %7486 = vmatpush3.bf16.msra.mxu1 %v8145_v2  ;;  %v7506_v6 = vld [vmem:[#allocation6 + $0xd0] sm:$0xff]   ;;  %v7508_v8 = vld [vmem:[#allocation6 + $0xd8] sm:$0xff]  }
  0x2b   :  { %50 = vst [vmem:[#allocation2 + $0x18] sm:$0xf] %v7987_v0  ;;  %51 = vst [vmem:[#allocation2 + $0x1c] sm:$0xf] %v7987_v0  ;;  %7479 = vmatprep.subr.bf16.mxu1 %v7505_v4  ;;  %v7511_v9 = vld [vmem:[#allocation6 + $0x160] sm:$0xff]   ;;  %v177_v12 = vld [vmem:[#allocation3 + $0xc8] sm:$0xff] }
  0x2c   :  { %52 = vst [vmem:[#allocation2 + $0x20] sm:$0x1] %v7987_v0  ;;  %53 = vst [vmem:[#allocation2 + $0x24] sm:$0xf] %v7987_v0  ;;  %v7510_v10 = vld [vmem:[#allocation6 + $0xe0] sm:$0xff]   ;;  %v7513_v13 = vld [vmem:[#allocation6 + $0x168] sm:$0xff]   ;;  %v7079_v15 = vpack.c.bf16 %v177_v12, %v177_v12 }
  0x2d   :  { %54 = vst [vmem:[#allocation2 + $0x28] sm:$0xf] %v7987_v0  ;;  %55 = vst [vmem:[#allocation2 + $0x2c] sm:$0x1] %v7987_v0  ;;  %3383 = vmatpush1.bf16.msra.mxu0 %v7504_v3  ;;  %v176_v11 = vld [vmem:[#allocation3 + $0xc0] sm:$0xff]  ;;  %v7512_v16 = vld [vmem:[#allocation6 + $0xe8] sm:$0xff]  }
  0x2e   :  { %56 = vst [vmem:[#allocation2 + $0x30] sm:$0xf] %v7987_v0  ;;  %57 = vst [vmem:[#allocation2 + $0x34] sm:$0xf] %v7987_v0  ;;  %3384 = vmatprep.subr.bf16.mxu0 %v7987_v0  ;;  %7487 = vmatpush3.bf16.msra.mxu1 %v7505_v4  ;;  %vm408_vm0 = vsmask.f32 256  ;;  %v7078_v14 = vpack.c.bf16 %v176_v11, %v176_v11 }
  0x2f   :  { %58 = vst [vmem:[#allocation2 + $0x38] sm:$0x1] %v7987_v0  ;;  %59 = vst [vmem:[#allocation2 + $0x3c] sm:$0xf] %v7987_v0  ;;  %7480 = vmatprep.subr.bf16.mxu1 %v7507_v5  ;;  %vm409_vm1 = vsmask.f32 4368 }
  0x30   :  { %60 = vst [vmem:[#allocation2 + $0x40] sm:$0xf] %v7987_v0  ;;  %61 = vst [vmem:[#allocation2 + $0x44] sm:$0x1] %v7987_v0  ;;  %vm1053_vm3 = vsmask.f32 7938 }
  0x31   :  { %62 = vst [vmem:[#allocation2 + $0x48] sm:$0xf] %v7987_v0  ;;  %63 = vst [vmem:[#allocation2 + $0x4c] sm:$0xf] %v7987_v0  ;;  %3385 = vmatpush1.bf16.msra.mxu0 %v7506_v6  ;;  %vm1059_vm4 = vcmask 1040384   ;;  %v178_v17 = vld [vmem:[#allocation3 + $0xd0] sm:$0xff] }
  0x32   :  { %64 = vst [vmem:[#allocation2 + $0x50] sm:$0x1] %v7987_v0  ;;  %65 = vst [vmem:[#allocation2 + $0x54] sm:$0xf] %v7987_v0  ;;  %3386 = vmatprep.subr.bf16.mxu0 %v7987_v0  ;;  %7488 = vmatpush3.bf16.msra.mxu1 %v7507_v5  ;;  %v179_v18 = vld [vmem:[#allocation3 + $0xd8] sm:$0xff]  ;;  %v7515_v19 = vld [vmem:[#allocation6 + $0x170] sm:$0xff]   ;;  %v7080_v27 = vpack.c.bf16 %v178_v17, %v178_v17 }
  0x33   :  { %66 = vst [vmem:[#allocation2 + $0x58] sm:$0xf] %v7987_v0  ;;  %67 = vst [vmem:[#allocation2 + $0x5c] sm:$0x1] %v7987_v0  ;;  %7481 = vmatprep.subr.bf16.mxu1 %v7509_v7  ;;  %v616_v21 = vshrl.u32 %v7078_v14, 16  ;;  %v619_v22 = vshll.u32 %v7078_v14, 16  ;;  %v7081_v28 = vpack.c.bf16 %v179_v18, %v179_v18 }
  0x34   :  { %68 = vst [vmem:[#allocation2 + $0x60] sm:$0xf] %v7987_v0  ;;  %69 = vst [vmem:[#allocation2 + $0x64] sm:$0xf] %v7987_v0  ;;  %v624_v23 = vshrl.u32 %v7079_v15, 16  ;;  %v627_v24 = vshll.u32 %v7079_v15, 16 }
  0x35   :  { %70 = vst [vmem:[#allocation2 + $0x68] sm:$0x1] %v7987_v0  ;;  %71 = vst [vmem:[#allocation2 + $0x6c] sm:$0xf] %v7987_v0  ;;  %3387 = vmatpush1.bf16.msra.mxu0 %v7508_v8  ;;  %v7514_v25 = vld [vmem:[#allocation6 + $0xf0] sm:$0xff]   ;;  %v618_v29 = vrot.slane %v616_v21, 7 }
  0x36   :  { %72 = vst [vmem:[#allocation2 + $0x70] sm:$0xf] %v7987_v0  ;;  %73 = vst [vmem:[#allocation2 + $0x74] sm:$0x1] %v7987_v0  ;;  %3388 = vmatprep.subr.bf16.mxu0 %v7987_v0  ;;  %7489 = vmatpush3.bf16.msra.mxu1 %v7509_v7  ;;  %v626_v30 = vrot.slane %v624_v23, 7  ;;  %v633_v34 = vshrl.u32 %v7080_v27, 16 }
  0x37   :  { %74 = vst [vmem:[#allocation2 + $0x78] sm:$0xf] %v7987_v0  ;;  %75 = vst [vmem:[#allocation2 + $0x7c] sm:$0xf] %v7987_v0  ;;  %7482 = vmatprep.subr.bf16.mxu1 %v7511_v9  ;;  %v636_v35 = vshll.u32 %v7080_v27, 16  ;;  %v641_v36 = vshrl.u32 %v7081_v28, 16  ;;  %v621_v38 = vor.u32 %v619_v22, %v618_v29 }
  0x38   :  { %76 = vst [vmem:[#allocation2 + $0x80] sm:$0x1] %v7987_v0  ;;  %77 = vst [vmem:[#allocation2 + $0x84] sm:$0xf] %v7987_v0  ;;  %v644_v37 = vshll.u32 %v7081_v28, 16  ;;  %v622_v39 = vrot.slane %v618_v29, 4  ;;  %v629_v40 = vor.u32 %v627_v24, %v626_v30 }
  0x39   :  { %78 = vst [vmem:[#allocation2 + $0x88] sm:$0xf] %v7987_v0  ;;  %79 = vst [vmem:[#allocation2 + $0x8c] sm:$0x1] %v7987_v0  ;;  %3389 = vmatpush1.bf16.msra.mxu0 %v7510_v10  ;;  %v631_v41 = vrot.slane %v626_v30, 4  ;;  %v7517_v42 = vld [vmem:[#allocation6 + $0x178] sm:$0xff]  }
  0x3a   :  { %80 = vst [vmem:[#allocation2 + $0x90] sm:$0xf] %v7987_v0  ;;  %81 = vst [vmem:[#allocation2 + $0x94] sm:$0xf] %v7987_v0  ;;  %3390 = vmatprep.subr.bf16.mxu0 %v7987_v0  ;;  %7490 = vmatpush3.bf16.msra.mxu1 %v7511_v9  ;;  %v635_v43 = vrot.slane %v633_v34, 7  ;;  %v643_v44 = vrot.slane %v641_v36, 7 }
  0x3b   :  { %82 = vst [vmem:[#allocation2 + $0x98] sm:$0x1] %v7987_v0  ;;  %83 = vst [vmem:[#allocation2 + $0x9c] sm:$0xf] %v7987_v0  ;;  %7483 = vmatprep.subr.bf16.mxu1 %v7513_v13  ;;  %v180_v45 = vld [vmem:[#allocation3 + $0xe0] sm:$0xff]  ;;  %v181_v46 = vld [vmem:[#allocation3 + $0xe8] sm:$0xff] }
  0x3c   :  { %84 = vst [vmem:[#allocation2 + $0xa0] sm:$0xf] %v7987_v0  ;;  %85 = vst [vmem:[#allocation2 + $0xa4] sm:$0x1] %v7987_v0  ;;  %v7082_v52 = vpack.c.bf16 %v180_v45, %v180_v45  ;;  %v7516_v53 = vld [vmem:[#allocation6 + $0xf8] sm:$0xff]   ;;  %v638_v54 = vor.u32 %v636_v35, %v635_v43  ;;  %v639_v55 = vrot.slane %v635_v43, 4  ;;  %v646_v56 = vor.u32 %v644_v37, %v643_v44 }
  0x3d   :  { %86 = vst [vmem:[#allocation2 + $0xa8] sm:$0xf] %v7987_v0  ;;  %87 = vst [vmem:[#allocation2 + $0xac] sm:$0xf] %v7987_v0  ;;  %3391 = vmatpush1.bf16.msra.mxu0 %v7512_v16  ;;  %v648_v57 = vrot.slane %v643_v44, 4  ;;  %v182_v58 = vld [vmem:[#allocation3 + $0xf0] sm:$0xff]  ;;  %v7083_v59 = vpack.c.bf16 %v181_v46, %v181_v46 }
  0x3e   :  { %88 = vst [vmem:[#allocation2 + $0xb0] sm:$0x1] %v7987_v0  ;;  %89 = vst [vmem:[#allocation2 + $0xb4] sm:$0xf] %v7987_v0  ;;  %3392 = vmatprep.subr.bf16.mxu0 %v7987_v0  ;;  %7491 = vmatpush3.bf16.msra.mxu1 %v7513_v13  ;;  %vm2082_vm8 = vcmask 1046528   ;;  %v650_v60 = vshrl.u32 %v7082_v52, 16  ;;  %v7084_v63 = vpack.c.bf16 %v182_v58, %v182_v58 }
  0x3f   :  { %90 = vst [vmem:[#allocation2 + $0xb8] sm:$0xf] %v7987_v0  ;;  %91 = vst [vmem:[#allocation2 + $0xbc] sm:$0x1] %v7987_v0  ;;  %7484 = vmatprep.subr.bf16.mxu1 %v7515_v19  ;;  %v653_v61 = vshll.u32 %v7082_v52, 16  ;;  %v183_v62 = vld [vmem:[#allocation3 + $0xf8] sm:$0xff] }
  0x40   :  { %92 = vst [vmem:[#allocation2 + $0xc0] sm:$0xf] %v7987_v0  ;;  %93 = vst [vmem:[#allocation2 + $0xc4] sm:$0xf] %v7987_v0  ;;  %v7085_v6 = vpack.c.bf16 %v183_v62, %v183_v62  ;;  %v652_v7 = vrot.slane %v650_v60, 7  ;;  %v658_v8 = vshrl.u32 %v7083_v59, 16 }
  0x41   :  { %94 = vst [vmem:[#allocation2 + $0xc8] sm:$0x1] %v7987_v0  ;;  %95 = vst [vmem:[#allocation2 + $0xcc] sm:$0xf] %v7987_v0  ;;  %3393 = vmatpush1.bf16.msra.mxu0 %v7514_v25  ;;  %v661_v9 = vshll.u32 %v7083_v59, 16  ;;  %v667_v10 = vshrl.u32 %v7084_v63, 16 }
  0x42   :  { %96 = vst [vmem:[#allocation2 + $0xd0] sm:$0xf] %v7987_v0  ;;  %97 = vst [vmem:[#allocation2 + $0xd4] sm:$0x1] %v7987_v0  ;;  %v1141_v26 = vld [vmem:[#allocation2 + $0x9c] sm:$0xf]  ;;  %3394 = vmatprep.subr.bf16.mxu0 %v7987_v0  ;;  %7492 = vmatpush3.bf16.msra.mxu1 %v7515_v19  ;;  %v655_v15 = vor.u32 %v653_v61, %v652_v7 }
  0x43   :  { %98 = vst [vmem:[#allocation2 + $0xd8] sm:$0xf] %v7987_v0  ;;  %99 = vst [vmem:[#allocation2 + $0xdc] sm:$0xf] %v7987_v0  ;;  %v1145_v32 = vld [vmem:[#allocation2 + $0xa4] sm:$0x1]  ;;  %7485 = vmatprep.subr.bf16.mxu1 %v7517_v42 }
  0x44   :  { %100 = vst [vmem:[#allocation2 + $0xe0] sm:$0x1] %v7987_v0  ;;  %101 = vst [vmem:[#allocation2 + $0xe4] sm:$0xf] %v7987_v0  ;;  %v1148_v50 = vld [vmem:[#allocation2 + $0xa8] sm:$0xf] }
  0x45   :  { %102 = vst [vmem:[#allocation2 + $0xe8] sm:$0xf] %v7987_v0  ;;  %103 = vst [vmem:[#allocation2 + $0xec] sm:$0x1] %v7987_v0  ;;  %v1152_v51 = vld [vmem:[#allocation2 + $0xb0] sm:$0x1]  ;;  %3395 = vmatpush1.bf16.msra.mxu0 %v7516_v53 }
  0x46   :  { %104 = vst [vmem:[#allocation2 + $0xf0] sm:$0xf] %v7987_v0  ;;  %105 = vst [vmem:[#allocation2 + $0xf4] sm:$0xf] %v7987_v0  ;;  %v1155_v5 = vld [vmem:[#allocation2 + $0xb4] sm:$0xf]  ;;  %3396 = vmatprep.subr.bf16.mxu0 %v7987_v0  ;;  %7493 = vmatpush3.bf16.msra.mxu1 %v7517_v42 }
  0x47   :  { %106 = vst [vmem:[#allocation2 + $0xf8] sm:$0x1] %v7987_v0  ;;  %107 = vst [vmem:[#allocation2 + $0xfc] sm:$0xf] %v7987_v0  ;;  %v7520_v11 = vld [vmem:[#allocation6 + $0x100] sm:$0xff]   ;;  %v670_v12 = vshll.u32 %v7084_v63, 16  ;;  %4102 = vmatprep.subr.bf16.mxu1 %v7987_v0 }
  0x48   :  { %108 = vst [vmem:[#allocation2 + $0x100] sm:$0xf] %v7987_v0  ;;  %109 = vst [vmem:[#allocation2 + $0x104] sm:$0x1] %v7987_v0  ;;  %v675_v13 = vshrl.u32 %v7085_v6, 16  ;;  %v678_v14 = vshll.u32 %v7085_v6, 16 }
  0x49   :  { %110 = vst [vmem:[#allocation2 + $0x108] sm:$0xf] %v7987_v0  ;;  %111 = vst [vmem:[#allocation2 + $0x10c] sm:$0xf] %v7987_v0  ;;  %v656_v16 = vrot.slane %v652_v7, 4  ;;  %v660_v17 = vrot.slane %v658_v8, 7  ;;  %3397 = vmatpush1.bf16.msra.mxu0 %v7520_v11 }
  0x4a   :  { %112 = vst [vmem:[#allocation2 + $0x110] sm:$0x1] %v7987_v0  ;;  %113 = vst [vmem:[#allocation2 + $0x114] sm:$0xf] %v7987_v0  ;;  %v1159_v18 = vld [vmem:[#allocation2 + $0xbc] sm:$0x1]  ;;  %3398 = vmatprep.subr.bf16.mxu0 %v7987_v0 }
  0x4b   :  { %114 = vst [vmem:[#allocation2 + $0x118] sm:$0xf] %v7987_v0  ;;  %115 = vst [vmem:[#allocation2 + $0x11c] sm:$0x1] %v7987_v0  ;;  %v669_v19 = vrot.slane %v667_v10, 7  ;;  %v184_v21 = vld [vmem:[#allocation3 + $0x100] sm:$0xff]  ;;  %v663_v29 = vor.u32 %v661_v9, %v660_v17 }
  0x4c   :  { %116 = vst [vmem:[#allocation2 + $0x120] sm:$0xf] %v7987_v0  ;;  %117 = vst [vmem:[#allocation2 + $0x124] sm:$0xf] %v7987_v0  ;;  %v185_v22 = vld [vmem:[#allocation3 + $0x108] sm:$0xff]  ;;  %v677_v24 = vrot.slane %v675_v13, 7  ;;  %v7086_v27 = vpack.c.bf16 %v184_v21, %v184_v21 }
  0x4d   :  { %118 = vst [vmem:[#allocation2 + $0x128] sm:$0x1] %v7987_v0  ;;  %119 = vst [vmem:[#allocation2 + $0x12c] sm:$0xf] %v7987_v0  ;;  %v7524_v23 = vld [vmem:[#allocation6 + $0x108] sm:$0xff]   ;;  %v186_v28 = vld [vmem:[#allocation3 + $0x110] sm:$0xff]  ;;  %v7087_v34 = vpack.c.bf16 %v185_v22, %v185_v22 }
  0x4e   :  { %120 = vst [vmem:[#allocation2 + $0x130] sm:$0xf] %v7987_v0  ;;  %121 = vst [vmem:[#allocation2 + $0x134] sm:$0x1] %v7987_v0  ;;  %v1162_v25 = vld [vmem:[#allocation2 + $0xc0] sm:$0xf]  ;;  %3399 = vmatpush1.bf16.msra.mxu0 %v7524_v23 }
  0x4f   :  { %122 = vst [vmem:[#allocation2 + $0x138] sm:$0xf] %v7987_v0  ;;  %123 = vst [vmem:[#allocation2 + $0x13c] sm:$0xf] %v7987_v0  ;;  %v665_v37 = vrot.slane %v660_v17, 4  ;;  %v682_v42 = vrot.slane %v677_v24, 4  ;;  %3400 = vmatprep.subr.bf16.mxu0 %v7987_v0 }
  0x50   :  { %124 = vst [vmem:[#allocation2 + $0x140] sm:$0x1] %v7987_v0  ;;  %125 = vst [vmem:[#allocation2 + $0x144] sm:$0xf] %v7987_v0  ;;  %v684_v44 = vshrl.u32 %v7086_v27, 16  ;;  %v187_v58 = vld [vmem:[#allocation3 + $0x118] sm:$0xff] }
  0x51   :  { %126 = vst [vmem:[#allocation2 + $0x148] sm:$0xf] %v7987_v0  ;;  %127 = vst [vmem:[#allocation2 + $0x14c] sm:$0x1] %v7987_v0  ;;  %v7523_v61 = vld [vmem:[#allocation6] sm:$0xff]   ;;  %v695_v62 = vshll.u32 %v7087_v34, 16 }
  0x52   :  { %128 = vst [vmem:[#allocation2 + $0x150] sm:$0xf] %v7987_v0  ;;  %129 = vst [vmem:[#allocation2 + $0x154] sm:$0xf] %v7987_v0  ;;  %v1173_v63 = vld [vmem:[#allocation2 + $0xec] sm:$0x1] }
  0x53   :  { %130 = vst [vmem:[#allocation2 + $0x158] sm:$0x1] %v7987_v0  ;;  %131 = vst [vmem:[#allocation2 + $0x15c] sm:$0xf] %v7987_v0  ;;  %v7525_v8 = vld [vmem:[#allocation6 + $0x8] sm:$0xff]   ;;  %v7532_v9 = vld [vmem:[#allocation6 + $0x118] sm:$0xff]  }
  0x54   :  { %132 = vst [vmem:[#allocation2 + $0x160] sm:$0xf] %v7987_v0  ;;  %133 = vst [vmem:[#allocation2 + $0x164] sm:$0x1] %v7987_v0  ;;  %v1176_v13 = vld [vmem:[#allocation2 + $0xf0] sm:$0xf] }
  0x55   :  { %134 = vst [vmem:[#allocation2 + $0x168] sm:$0xf] %v7987_v0  ;;  %135 = vst [vmem:[#allocation2 + $0x16c] sm:$0xf] %v7987_v0  ;;  %v1180_v21 = vld [vmem:[#allocation2 + $0xf8] sm:$0x1] }
  0x56   :  { %136 = vst [vmem:[#allocation2 + $0x170] sm:$0x1] %v7987_v0  ;;  %137 = vst [vmem:[#allocation2 + $0x174] sm:$0xf] %v7987_v0  ;;  %vm1665_vm9 = vsmask.f32 7424 }
  0x57   :  { %138 = vst [vmem:[#allocation2 + $0x178] sm:$0xf] %v7987_v0  ;;  %139 = vst [vmem:[#allocation2 + $0x17c] sm:$0x1] %v7987_v0 }
  0x58   :  { %140 = vst [vmem:[#allocation2 + $0x180] sm:$0xf] %v7987_v0  ;;  %141 = vst [vmem:[#allocation2 + $0x184] sm:$0xf] %v7987_v0 }
  0x59   :  { %142 = vst [vmem:[#allocation2 + $0x188] sm:$0x1] %v7987_v0  ;;  %143 = vst [vmem:[#allocation2 + $0x18c] sm:$0xf] %v7987_v0 }
  0x5a   :  { %144 = vst [vmem:[#allocation2 + $0x190] sm:$0xf] %v7987_v0  ;;  %145 = vst [vmem:[#allocation2 + $0x194] sm:$0x1] %v7987_v0 }
  0x5b   :  { %146 = vst [vmem:[#allocation2 + $0x198] sm:$0xf] %v7987_v0  ;;  %147 = vst [vmem:[#allocation2 + $0x19c] sm:$0xf] %v7987_v0 }
  0x5c   :  { %148 = vst [vmem:[#allocation2 + $0x1a0] sm:$0x1] %v7987_v0  ;;  %149 = vst [vmem:[#allocation2 + $0x1a4] sm:$0xf] %v7987_v0 }
  0x5d   :  { %150 = vst [vmem:[#allocation2 + $0x1a8] sm:$0xf] %v7987_v0  ;;  %151 = vst [vmem:[#allocation2 + $0x1ac] sm:$0x1] %v7987_v0 }
  0x5e   :  { %vm8155_vm5 = vmor %vm408_vm0, %vm409_vm1 }
  0x5f   :  { %vm8161_vm6 = vmand %vm1052_vm2, %vm1053_vm3  ;;  %v630_v47 = vsel %vm8155_vm5, %v622_v39, %v629_v40  ;;  %v647_v1 = vsel %vm8155_vm5, %v639_v55, %v646_v56  ;;  %v680_v39 = vor.u32 %v678_v14, %v677_v24  ;;  %v8189_v40 = vpack.c.bf16 %v186_v28, %v186_v28 }
  0x60   :  { %vm8167_vm7 = vmand %vm1059_vm4, %vm408_vm0  ;;  %v1142_v48 = vsel %vm8161_vm6, %v621_v38, %v1141_v26  ;;  %1144 = vst [vmem:[#allocation2 + $0xa0] sm:$0xf] %v630_v47  ;;  %v1149_v3 = vsel %vm8161_vm6, %v638_v54, %v1148_v50  ;;  %v1166_v26 = vld [vmem:[#allocation2 + $0xc8] sm:$0x1]  ;;  %v1156_v30 = vsel %vm8161_vm6, %v655_v15, %v1155_v5  ;;  %v673_v38 = vrot.slane %v669_v19, 4 }
  0x61   :  { %v1146_v49 = vsel %vm8167_vm7, %v631_v41, %v1145_v32  ;;  %1143 = vst [vmem:[#allocation2 + $0x9c] sm:$0xf] %v1142_v48  ;;  %v1153_v4 = vsel %vm8167_vm7, %v648_v57, %v1152_v51  ;;  %1150 = vst [vmem:[#allocation2 + $0xa8] sm:$0xf] %v1149_v3  ;;  %v672_v32 = vor.u32 %v670_v12, %v669_v19  ;;  %v7528_v48 = vld [vmem:[#allocation6 + $0x110] sm:$0xff]   ;;  %v686_v54 = vrot.slane %v684_v44, 7 }
  0x62   :  { %1147 = vst [vmem:[#allocation2 + $0xa4] sm:$0x1] %v1146_v49  ;;  %1151 = vst [vmem:[#allocation2 + $0xac] sm:$0xf] %v647_v1  ;;  %v664_v41 = vsel %vm8155_vm5, %v656_v16, %v663_v29  ;;  %v1160_v47 = vsel %vm8167_vm7, %v665_v37, %v1159_v18  ;;  %v681_v49 = vsel %vm8155_vm5, %v673_v38, %v680_v39  ;;  %v687_v55 = vshll.u32 %v7086_v27, 16  ;;  %v189_v44 = vld [vmem:[#allocation3 + $0x128] sm:$0xff] }
  0x63   :  { %1154 = vst [vmem:[#allocation2 + $0xb0] sm:$0x1] %v1153_v4  ;;  %1157 = vst [vmem:[#allocation2 + $0xb4] sm:$0xf] %v1156_v30  ;;  %v1163_v43 = vsel %vm8161_vm6, %v672_v32, %v1162_v25  ;;  %v1167_v52 = vsel %vm8167_vm7, %v682_v42, %v1166_v26  ;;  %v692_v56 = vshrl.u32 %v7087_v34, 16  ;;  %v7089_v1 = vpack.c.bf16 %v187_v58, %v187_v58  ;;  %v7535_v26 = vld [vmem:[#allocation6 + $0x120] sm:$0xff]  }
  0x64   :  { %1158 = vst [vmem:[#allocation2 + $0xb8] sm:$0xf] %v664_v41  ;;  %1164 = vst [vmem:[#allocation2 + $0xc0] sm:$0xf] %v1163_v43  ;;  %v1169_v57 = vld [vmem:[#allocation2 + $0xe4] sm:$0xf]  ;;  %v689_v3 = vor.u32 %v687_v55, %v686_v54  ;;  %3401 = vmatpush1.bf16.msra.mxu0 %v7528_v48 }
  0x65   :  { %1161 = vst [vmem:[#allocation2 + $0xbc] sm:$0x1] %v1160_v47  ;;  %1165 = vst [vmem:[#allocation2 + $0xc4] sm:$0xf] %v681_v49  ;;  %v690_v4 = vrot.slane %v686_v54, 4  ;;  %v694_v5 = vrot.slane %v692_v56, 7  ;;  %3402 = vmatprep.subr.bf16.mxu0 %v7987_v0 }
  0x66   :  { %1168 = vst [vmem:[#allocation2 + $0xc8] sm:$0x1] %v1167_v52  ;;  %v701_v6 = vshrl.u32 %v8189_v40, 16  ;;  %v704_v10 = vshll.u32 %v8189_v40, 16  ;;  %v709_v11 = vshrl.u32 %v7089_v1, 16  ;;  %v712_v12 = vshll.u32 %v7089_v1, 16 }
  0x67   :  { %v697_v14 = vor.u32 %v695_v62, %v694_v5  ;;  %v699_v15 = vrot.slane %v694_v5, 4  ;;  %v1170_v16 = vsel %vm8161_vm6, %v689_v3, %v1169_v57  ;;  %v7531_v41 = vld [vmem:[#allocation6 + $0x10] sm:$0xff]   ;;  %v188_v43 = vld [vmem:[#allocation3 + $0x120] sm:$0xff]  ;;  %v7539_v48 = vld [vmem:[#allocation6 + $0x128] sm:$0xff]  }
  0x68   :  { %v7518_v35 = vld [vmem:[#allocation2 + $0x9c] sm:$0xff]   ;;  %v703_v17 = vrot.slane %v701_v6, 7  ;;  %1171 = vst [vmem:[#allocation2 + $0xe4] sm:$0xf] %v1170_v16  ;;  %v711_v19 = vrot.slane %v709_v11, 7  ;;  %3403 = vmatpush1.bf16.msra.mxu0 %v7532_v9  ;;  %v191_v55 = vld [vmem:[#allocation3 + $0x138] sm:$0xff] }
  0x69   :  { %v7519_v36 = vld [vmem:[#allocation2 + $0xa4] ss:$0 sps:$4 sm:$0x11]   ;;  %v3095_v45 = vrot.slane %v7518_v35, 1  ;;  %v7521_v50 = vld [vmem:[#allocation2 + $0xa8] sm:$0xff]   ;;  %v698_v24 = vsel %vm8155_vm5, %v690_v4, %v697_v14  ;;  %v1174_v25 = vsel %vm8167_vm7, %v699_v15, %v1173_v63  ;;  %3404 = vmatprep.subr.bf16.mxu0 %v7987_v0  ;;  %v7540_v4 = vld [vmem:[#allocation6 + $0x20] sm:$0xff]  }
  0x6a   :  { %v3096_v46 = vrot.slane %v7519_v36, 1  ;;  %v7522_v51 = vld [vmem:[#allocation2 + $0xb0] ss:$0 sps:$4 sm:$0x11]   ;;  %v3098_v59 = vrot.slane %v7521_v50, 1  ;;  %v706_v27 = vor.u32 %v704_v10, %v703_v17  ;;  %v707_v29 = vrot.slane %v703_v17, 4 }
  0x6b   :  { %v3099_v60 = vrot.slane %v7522_v51, 1  ;;  %v7526_v18 = vld [vmem:[#allocation2 + $0xb4] sm:$0xff]   ;;  %1172 = vst [vmem:[#allocation2 + $0xe8] sm:$0xf] %v698_v24  ;;  %1175 = vst [vmem:[#allocation2 + $0xec] sm:$0x1] %v1174_v25  ;;  %v714_v30 = vor.u32 %v712_v12, %v711_v19 }
  0x6c   :  { %v3097_v53 = vsel %vm2082_vm8, %v3095_v45, %v3096_v46  ;;  %v7527_v22 = vld [vmem:[#allocation2 + $0xbc] ss:$0 sps:$4 sm:$0x11]   ;;  %v7529_v23 = vld [vmem:[#allocation2 + $0xc0] sm:$0xff]   ;;  %v3101_v28 = vrot.slane %v7526_v18, 1  ;;  %v716_v36 = vrot.slane %v711_v19, 4  ;;  %v1177_v37 = vsel %vm8161_vm6, %v706_v27, %v1176_v13  ;;  %3405 = vmatpush1.bf16.msra.mxu0 %v7535_v26 }
  0x6d   :  { %7278 = vmatprep.mubr.bf16.mxu1 %v3097_v53  ;;  %v3100_v7 = vsel %vm2082_vm8, %v3098_v59, %v3099_v60  ;;  %v3102_v32 = vrot.slane %v7527_v22, 1  ;;  %v7530_v34 = vld [vmem:[#allocation2 + $0xc8] ss:$0 sps:$4 sm:$0x11]   ;;  %v3104_v35 = vrot.slane %v7529_v23, 1  ;;  %v715_v38 = vsel %vm8155_vm5, %v707_v29, %v714_v30  ;;  %v190_v49 = vld [vmem:[#allocation3 + $0x130] sm:$0xff]  ;;  %3406 = vmatprep.subr.bf16.mxu0 %v7987_v0 }
  0x6e   :  { %7279 = vmatmul.mubr.bf16.vlgmr.msra.gmra.mrb[0].mxu1 %v3100_v7  ;;  %1178 = vst [vmem:[#allocation2 + $0xf0] sm:$0xf] %v1177_v37  ;;  %v3105_v40 = vrot.slane %v7530_v34, 1  ;;  %1179 = vst [vmem:[#allocation2 + $0xf4] sm:$0xf] %v715_v38  ;;  %v1181_v42 = vsel %vm8167_vm7, %v716_v36, %v1180_v21  ;;  %v7090_v45 = vpack.c.bf16 %v188_v43, %v188_v43  ;;  %v7538_v50 = vld [vmem:[#allocation6 + $0x18] sm:$0xff]  }
  0x6f   :  { %4103 = vmatpush1.bf16.msra.mxu1 %v7523_v61  ;;  %v3103_v39 = vsel %vm2082_vm8, %v3101_v28, %v3102_v32  ;;  %1182 = vst [vmem:[#allocation2 + $0xf8] sm:$0x1] %v1181_v42  ;;  %v7091_v46 = vpack.c.bf16 %v189_v44, %v189_v44  ;;  %v1183_v57 = vld [vmem:[#allocation2 + $0xfc] sm:$0xf]  ;;  %v7092_v58 = vpack.c.bf16 %v190_v49, %v190_v49  ;;  %v1187_v63 = vld [vmem:[#allocation2 + $0x104] sm:$0x1] }
  0x70   :  { %4104 = vmatprep.subr.bf16.mxu1 %v7987_v0  ;;  %7282 = vmatprep.mubr.bf16.mxu1 %v3103_v39  ;;  %v3106_v47 = vsel %vm2082_vm8, %v3104_v35, %v3105_v40  ;;  %v718_v51 = vshrl.u32 %v7090_v45, 16  ;;  %v721_v52 = vshll.u32 %v7090_v45, 16  ;;  %v7093_v59 = vpack.c.bf16 %v191_v55, %v191_v55  ;;  %v7543_v1 = vld [vmem:[#allocation6 + $0x130] sm:$0xff]   ;;  %v152_v13 = vld [vmem:[#allocation3] sm:$0xff]  ;;  %v7547_v16 = vld [vmem:[#allocation6 + $0x138] sm:$0xff]  }
  0x71   :  { %v726_v53 = vshrl.u32 %v7091_v46, 16  ;;  %v729_v54 = vshll.u32 %v7091_v46, 16  ;;  %3407 = vmatpush1.bf16.msra.mxu0 %v7539_v48  ;;  %v735_v5 = vshrl.u32 %v7092_v58, 16  ;;  %v738_v6 = vshll.u32 %v7092_v58, 16  ;;  %v1190_v23 = vld [vmem:[#allocation2 + $0x108] sm:$0xf] }
  0x72   :  { %v7533_v56 = vld [vmem:[#allocation2 + $0xe4] sm:$0xff]   ;;  %v7534_v60 = vld [vmem:[#allocation2 + $0xec] ss:$0 sps:$4 sm:$0x11]   ;;  %v720_v61 = vrot.slane %v718_v51, 7  ;;  %v743_v7 = vshrl.u32 %v7093_v59, 16  ;;  %3408 = vmatprep.subr.bf16.mxu0 %v7987_v0  ;;  %v7054_v17 = vpack.c.bf16 %v152_v13, %v152_v13 }
  0x73   :  { %4105 = vmatpush1.bf16.msra.mxu1 %v7525_v8  ;;  %v728_v62 = vrot.slane %v726_v53, 7  ;;  %v3107_v3 = vrot.slane %v7533_v56, 1  ;;  %v3108_v8 = vrot.slane %v7534_v60, 1  ;;  %v1194_v24 = vld [vmem:[#allocation2 + $0x110] sm:$0x1]  ;;  %v153_v25 = vld [vmem:[#allocation3 + $0x8] sm:$0xff] }
  0x74   :  { %4106 = vmatprep.subr.bf16.mxu1 %v7987_v0  ;;  %v723_v10 = vor.u32 %v721_v52, %v720_v61  ;;  %v724_v11 = vrot.slane %v720_v61, 4  ;;  %v737_v28 = vrot.slane %v735_v5, 7  ;;  %v745_v29 = vrot.slane %v743_v7, 7  ;;  %v192_v30 = vld [vmem:[#allocation3 + $0x140] sm:$0xff]  ;;  %v193_v46 = vld [vmem:[#allocation3 + $0x148] sm:$0xff]  ;;  %v7552_v53 = vld [vmem:[#allocation6 + $0x30] sm:$0xff]  }
  0x75   :  { %v7536_v9 = vld [vmem:[#allocation2 + $0xf0] sm:$0xff]   ;;  %v731_v12 = vor.u32 %v729_v54, %v728_v62  ;;  %v733_v15 = vrot.slane %v728_v62, 4  ;;  %v3109_v18 = vsel %vm2082_vm8, %v3107_v3, %v3108_v8  ;;  %3409 = vmatpush1.bf16.msra.mxu0 %v7543_v1  ;;  %v746_v32 = vshll.u32 %v7093_v59, 16  ;;  %v194_v62 = vld [vmem:[#allocation3 + $0x150] sm:$0xff] }
  0x76   :  { %7283 = vmatmul.mubr.bf16.gmra.mrb[4].mxu1 %v3106_v47  ;;  %v7537_v14 = vld [vmem:[#allocation2 + $0xf8] ss:$0 sps:$4 sm:$0x11]   ;;  %v3110_v19 = vrot.slane %v7536_v9, 1  ;;  %v1184_v22 = vsel %vm8161_vm6, %v723_v10, %v1183_v57  ;;  %3410 = vmatprep.subr.bf16.mxu0 %v7987_v0  ;;  %v7055_v34 = vpack.c.bf16 %v153_v25, %v153_v25  ;;  %v412_v35 = vshrl.u32 %v7054_v17, 16 }
  0x77   :  { %4107 = vmatpush1.bf16.msra.mxu1 %v7531_v41  ;;  %v732_v21 = vsel %vm8155_vm5, %v724_v11, %v731_v12  ;;  %7286 = vmatprep.mubr.bf16.mxu1 %v3109_v18  ;;  %v3111_v26 = vrot.slane %v7537_v14, 1  ;;  %1185 = vst [vmem:[#allocation2 + $0xfc] sm:$0xf] %v1184_v22  ;;  %v1188_v27 = vsel %vm8167_vm7, %v733_v15, %v1187_v63  ;;  %v741_v39 = vrot.slane %v737_v28, 4  ;;  %v7546_v41 = vld [vmem:[#allocation6 + $0x28] sm:$0xff]   ;;  %v195_v63 = vld [vmem:[#allocation3 + $0x158] sm:$0xff] }
  0x78   :  { %4108 = vmatprep.subr.bf16.mxu1 %v7987_v0  ;;  %1186 = vst [vmem:[#allocation2 + $0x100] sm:$0xf] %v732_v21  ;;  %1189 = vst [vmem:[#allocation2 + $0x104] sm:$0x1] %v1188_v27  ;;  %v7094_v36 = vpack.c.bf16 %v192_v30, %v192_v30  ;;  %v740_v38 = vor.u32 %v738_v6, %v737_v28  ;;  %v750_v40 = vrot.slane %v745_v29, 4  ;;  %v414_v43 = vrot.slane %v412_v35, 7 }
  0x79   :  { %v3112_v37 = vsel %vm2082_vm8, %v3110_v19, %v3111_v26  ;;  %v748_v42 = vor.u32 %v746_v32, %v745_v29  ;;  %v415_v44 = vshll.u32 %v7054_v17, 16  ;;  %v420_v45 = vshrl.u32 %v7055_v34, 16  ;;  %3411 = vmatpush1.bf16.msra.mxu0 %v7547_v16  ;;  %v1061_v51 = vld [vmem:[#allocation2 + $0x14] sm:$0x1]  ;;  %v1201_v14 = vld [vmem:[#allocation2 + $0x11c] sm:$0x1] }
  0x7a   :  { %v1191_v47 = vsel %vm8161_vm6, %v740_v38, %v1190_v23  ;;  %v1195_v48 = vsel %vm8167_vm7, %v750_v40, %v1194_v24  ;;  %v423_v49 = vshll.u32 %v7055_v34, 16  ;;  %v7095_v52 = vpack.c.bf16 %v193_v46, %v193_v46  ;;  %7238 = vmatprep.subr.bf16.mxu0 %v8145_v2  ;;  %v1197_v13 = vld [vmem:[#allocation2 + $0x114] sm:$0xf]  ;;  %v7555_v19 = vld [vmem:[#allocation6 + $0x38] sm:$0xff]   ;;  %v1204_v25 = vld [vmem:[#allocation2 + $0x120] sm:$0xf] }
  0x7b   :  { %4109 = vmatpush1.bf16.msra.mxu1 %v7538_v50  ;;  %v1055_v50 = vld [vmem:[#allocation2 + $0xc] sm:$0xf]  ;;  %v749_v54 = vsel %vm8155_vm5, %v741_v39, %v748_v42  ;;  %1192 = vst [vmem:[#allocation2 + $0x108] sm:$0xf] %v1191_v47  ;;  %1196 = vst [vmem:[#allocation2 + $0x110] sm:$0x1] %v1195_v48  ;;  %v417_v55 = vor.u32 %v415_v44, %v414_v43  ;;  %v7096_v6 = vpack.c.bf16 %v194_v62, %v194_v62 }
  0x7c   :  { %4110 = vmatprep.subr.bf16.mxu1 %v7987_v0  ;;  %v418_v56 = vrot.slane %v414_v43, 4  ;;  %v422_v57 = vrot.slane %v420_v45, 7  ;;  %1193 = vst [vmem:[#allocation2 + $0x10c] sm:$0xf] %v749_v54  ;;  %v752_v58 = vshrl.u32 %v7094_v36, 16  ;;  %v755_v59 = vshll.u32 %v7094_v36, 16 }
  0x7d   :  { %v760_v60 = vshrl.u32 %v7095_v52, 16  ;;  %v763_v61 = vshll.u32 %v7095_v52, 16  ;;  %v1056_v5 = vsel %vm8161_vm6, %v417_v55, %v1055_v50  ;;  %v7097_v8 = vpack.c.bf16 %v195_v63, %v195_v63  ;;  %v154_v26 = vld [vmem:[#allocation3 + $0x10] sm:$0xff]  ;;  %v155_v42 = vld [vmem:[#allocation3 + $0x18] sm:$0xff]  ;;  %v196_v43 = vld [vmem:[#allocation3 + $0x160] sm:$0xff] }
  0x7e   :  { %7287 = vmatmul.mubr.bf16.gmra.mrb[8].mxu1 %v3112_v37  ;;  %v425_v3 = vor.u32 %v423_v49, %v422_v57  ;;  %1057 = vst [vmem:[#allocation2 + $0xc] sm:$0xf] %v1056_v5  ;;  %v754_v2 = vrot.slane %v752_v58, 7  ;;  %v769_v18 = vshrl.u32 %v7096_v6, 16  ;;  %v772_v23 = vshll.u32 %v7096_v6, 16  ;;  %v197_v48 = vld [vmem:[#allocation3 + $0x168] sm:$0xff] }
  0x7f   :  { %4111 = vmatpush1.bf16.msra.mxu1 %v7540_v4  ;;  %v7541_v1 = vld [vmem:[#allocation2 + $0xfc] sm:$0xff]   ;;  %v427_v4 = vrot.slane %v422_v57, 4  ;;  %v7542_v7 = vld [vmem:[#allocation2 + $0x104] ss:$0 sps:$4 sm:$0x11]   ;;  %v762_v12 = vrot.slane %v760_v60, 7  ;;  %v7056_v37 = vpack.c.bf16 %v154_v26, %v154_v26  ;;  %v7057_v46 = vpack.c.bf16 %v155_v42, %v155_v42 }
  0x80   :  { %4112 = vmatprep.subr.bf16.mxu1 %v7987_v0  ;;  %v3113_v9 = vrot.slane %v7541_v1, 1  ;;  %v426_v10 = vsel %vm8155_vm5, %v418_v56, %v425_v3  ;;  %v3114_v15 = vrot.slane %v7542_v7, 1  ;;  %v757_v16 = vor.u32 %v755_v59, %v754_v2  ;;  %v198_v1 = vld [vmem:[#allocation3 + $0x170] sm:$0xff] }
  0x81   :  { %v1062_v11 = vsel %vm8167_vm7, %v427_v4, %v1061_v51  ;;  %1058 = vst [vmem:[#allocation2 + $0x10] sm:$0xf] %v426_v10  ;;  %v758_v17 = vrot.slane %v754_v2, 4  ;;  %v765_v21 = vor.u32 %v763_v61, %v762_v12  ;;  %v767_v22 = vrot.slane %v762_v12, 4  ;;  %v1068_v7 = vld [vmem:[#allocation2 + $0x20] sm:$0x1] }
  0x82   :  { %1063 = vst [vmem:[#allocation2 + $0x14] sm:$0x1] %v1062_v11  ;;  %v777_v24 = vshrl.u32 %v7097_v8, 16  ;;  %v3115_v27 = vsel %vm2082_vm8, %v3113_v9, %v3114_v15  ;;  %v1198_v28 = vsel %vm8161_vm6, %v757_v16, %v1197_v13  ;;  %v771_v29 = vrot.slane %v769_v18, 7  ;;  %v199_v2 = vld [vmem:[#allocation3 + $0x178] sm:$0xff] }
  0x83   :  { %4113 = vmatpush1.bf16.msra.mxu1 %v7546_v41  ;;  %v780_v30 = vshll.u32 %v7097_v8, 16  ;;  %7290 = vmatprep.mubr.bf16.mxu1 %v3115_v27  ;;  %v7544_v32 = vld [vmem:[#allocation2 + $0x108] sm:$0xff]   ;;  %v7545_v34 = vld [vmem:[#allocation2 + $0x110] ss:$0 sps:$4 sm:$0x11]   ;;  %v766_v35 = vsel %vm8155_vm5, %v758_v17, %v765_v21  ;;  %v1202_v36 = vsel %vm8167_vm7, %v767_v22, %v1201_v14  ;;  %v429_v47 = vshrl.u32 %v7056_v37, 16 }
  0x84   :  { %4114 = vmatprep.subr.bf16.mxu1 %v7987_v0  ;;  %1199 = vst [vmem:[#allocation2 + $0x114] sm:$0xf] %v1198_v28  ;;  %1200 = vst [vmem:[#allocation2 + $0x118] sm:$0xf] %v766_v35  ;;  %v774_v38 = vor.u32 %v772_v23, %v771_v29  ;;  %v775_v39 = vrot.slane %v771_v29, 4  ;;  %v779_v40 = vrot.slane %v777_v24, 7  ;;  %v7098_v57 = vpack.c.bf16 %v196_v43, %v196_v43 }
  0x85   :  { %1203 = vst [vmem:[#allocation2 + $0x11c] sm:$0x1] %v1202_v36  ;;  %v1208_v41 = vld [vmem:[#allocation2 + $0x128] sm:$0x1]  ;;  %v3116_v44 = vrot.slane %v7544_v32, 1  ;;  %v3117_v45 = vrot.slane %v7545_v34, 1  ;;  %v8267_v58 = vpack.c.bf16 %v197_v48, %v197_v48  ;;  %v7100_v15 = vpack.c.bf16 %v198_v1, %v198_v1 }
  0x86   :  { %v782_v49 = vor.u32 %v780_v30, %v779_v40  ;;  %v784_v50 = vrot.slane %v779_v40, 4  ;;  %v1205_v51 = vsel %vm8161_vm6, %v774_v38, %v1204_v25  ;;  %v432_v52 = vshll.u32 %v7056_v37, 16  ;;  %v1211_v27 = vld [vmem:[#allocation2 + $0x12c] sm:$0xf]  ;;  %v7562_v28 = vld [vmem:[#allocation6 + $0x40] sm:$0xff]  }
  0x87   :  { %4115 = vmatpush1.bf16.msra.mxu1 %v7552_v53  ;;  %v1064_v53 = vld [vmem:[#allocation2 + $0x18] sm:$0xf]  ;;  %v3118_v54 = vsel %vm2082_vm8, %v3116_v44, %v3117_v45  ;;  %1206 = vst [vmem:[#allocation2 + $0x120] sm:$0xf] %v1205_v51  ;;  %v431_v56 = vrot.slane %v429_v47, 7  ;;  %v437_v62 = vshrl.u32 %v7057_v46, 16  ;;  %v8277_v16 = vpack.c.bf16 %v199_v2, %v199_v2 }
  0x88   :  { %4116 = vmatprep.subr.bf16.mxu1 %v7987_v0  ;;  %v8265_v55 = vld [vmem:[#allocation2 + $0xc] sm:$0xff]   ;;  %7291 = vmatmul.mubr.bf16.gmra.mrb[12].mxu1 %v3118_v54  ;;  %v783_v60 = vsel %vm8155_vm5, %v775_v39, %v782_v49  ;;  %v1209_v61 = vsel %vm8167_vm7, %v784_v50, %v1208_v41  ;;  %v440_v63 = vshll.u32 %v7057_v46, 16  ;;  %v786_v10 = vshrl.u32 %v7098_v57, 16  ;;  %v1215_v35 = vld [vmem:[#allocation2 + $0x134] sm:$0x1]  ;;  %v157_v41 = vld [vmem:[#allocation3 + $0x28] sm:$0xff] }
  0x89   :  { %v7549_v59 = vld [vmem:[#allocation2 + $0x14] ss:$0 sps:$4 sm:$0x11]   ;;  %v2644_v3 = vshrl.u32 %v8265_v55, 16  ;;  %v2646_v4 = vshll.u32 %v8265_v55, 16  ;;  %v434_v5 = vor.u32 %v432_v52, %v431_v56  ;;  %v435_v6 = vrot.slane %v431_v56, 4 }
  0x8a   :  { %1207 = vst [vmem:[#allocation2 + $0x124] sm:$0xf] %v783_v60  ;;  %1210 = vst [vmem:[#allocation2 + $0x128] sm:$0x1] %v1209_v61  ;;  %v2651_v8 = vshll.u32 %v7549_v59, 16  ;;  %v439_v9 = vrot.slane %v437_v62, 7 }
  0x8b   :  { %4117 = vmatpush1.bf16.msra.mxu1 %v7555_v19  ;;  %v789_v11 = vshll.u32 %v7098_v57, 16  ;;  %v2648_v12 = vrot.slane %v2646_v4, 1  ;;  %v7550_v13 = vld [vmem:[#allocation2 + $0x114] sm:$0xff]   ;;  %v1065_v14 = vsel %vm8161_vm6, %v434_v5, %v1064_v53  ;;  %v788_v22 = vrot.slane %v786_v10, 7  ;;  %v1071_v2 = vld [vmem:[#allocation2 + $0x24] sm:$0xf] }
  0x8c   :  { %4118 = vmatprep.subr.bf16.mxu1 %v7987_v0  ;;  %v2653_v17 = vrot.slane %v2651_v8, 1  ;;  %v7551_v18 = vld [vmem:[#allocation2 + $0x11c] ss:$0 sps:$4 sm:$0x11]   ;;  %v442_v19 = vor.u32 %v440_v63, %v439_v9  ;;  %v444_v21 = vrot.slane %v439_v9, 4  ;;  %v3119_v24 = vrot.slane %v7550_v13, 1 }
  0x8d   :  { %1066 = vst [vmem:[#allocation2 + $0x18] sm:$0xf] %v1065_v14  ;;  %v2649_v23 = vor.u32 %v2648_v12, %v2644_v3  ;;  %v794_v25 = vshrl.u32 %v8267_v58, 16  ;;  %v797_v26 = vshll.u32 %v8267_v58, 16  ;;  %v3120_v29 = vrot.slane %v7551_v18, 1  ;;  %v156_v36 = vld [vmem:[#allocation3 + $0x20] sm:$0xff] }
  0x8e   :  { %v443_v30 = vsel %vm8155_vm5, %v435_v6, %v442_v19  ;;  %v1069_v32 = vsel %vm8167_vm7, %v444_v21, %v1068_v7  ;;  %v791_v34 = vor.u32 %v789_v11, %v788_v22  ;;  %v792_v38 = vrot.slane %v788_v22, 4  ;;  %v1218_v46 = vld [vmem:[#allocation2 + $0x138] sm:$0xf]  ;;  %v7766_v53 = vld [vmem:[#allocation6 + $0x140] sm:$0xff]   ;;  %v1222_v63 = vld [vmem:[#allocation2 + $0x140] sm:$0x1] }
  0x8f   :  { %v2654_v37 = vsel %vm1665_vm9, %v2649_v23, %v2653_v17  ;;  %1067 = vst [vmem:[#allocation2 + $0x1c] sm:$0xf] %v443_v30  ;;  %1070 = vst [vmem:[#allocation2 + $0x20] sm:$0x1] %v1069_v32  ;;  %v796_v39 = vrot.slane %v794_v25, 7  ;;  %v803_v40 = vshrl.u32 %v7100_v15, 16  ;;  %4119 = vmatpush1.bf16.msra.mxu1 %v7562_v28  ;;  %v3121_v42 = vsel %vm2082_vm8, %v3119_v24, %v3120_v29 }
  0x90   :  { %3412 = vmatprep.mubr.bf16.mxu0 %v2654_v37  ;;  %v1212_v44 = vsel %vm8161_vm6, %v791_v34, %v1211_v27  ;;  %v806_v45 = vshll.u32 %v7100_v15, 16  ;;  %4120 = vmatprep.subr.bf16.mxu1 %v7987_v0  ;;  %v7058_v47 = vpack.c.bf16 %v156_v36, %v156_v36  ;;  %v811_v52 = vshrl.u32 %v8277_v16, 16  ;;  %v7565_v59 = vld [vmem:[#allocation6 + $0x48] sm:$0xff]   ;;  %v200_v1 = vld [vmem:[#allocation3 + $0x180] sm:$0xff]  ;;  %v7768_v22 = vld [vmem:[#allocation6 + $0x150] sm:$0xff]  }
  0x91   :  { %v7553_v43 = vld [vmem:[#allocation2 + $0x120] sm:$0xff]   ;;  %3413 = vmatmul.mubr.bf16.vlgmr.msra.gmra.mrb[0].mxu0 %v8265_v55  ;;  %7294 = vmatprep.mubr.bf16.mxu1 %v3121_v42  ;;  %v7554_v48 = vld [vmem:[#allocation2 + $0x128] ss:$0 sps:$4 sm:$0x11]   ;;  %v799_v49 = vor.u32 %v797_v26, %v796_v39  ;;  %v801_v50 = vrot.slane %v796_v39, 4  ;;  %v805_v51 = vrot.slane %v803_v40, 7  ;;  %v7059_v57 = vpack.c.bf16 %v157_v41, %v157_v41 }
  0x92   :  { %1213 = vst [vmem:[#allocation2 + $0x12c] sm:$0xf] %v1212_v44  ;;  %7239 = vmatpush3.bf16.msra.mxu0 %v7766_v53  ;;  %v3122_v54 = vrot.slane %v7553_v43, 1  ;;  %v814_v56 = vshll.u32 %v8277_v16, 16  ;;  %v446_v58 = vshrl.u32 %v7058_v47, 16  ;;  %v3123_v60 = vrot.slane %v7554_v48, 1 }
  0x93   :  { %v800_v55 = vsel %vm8155_vm5, %v792_v38, %v799_v49  ;;  %v1216_v61 = vsel %vm8167_vm7, %v801_v50, %v1215_v35  ;;  %v808_v62 = vor.u32 %v806_v45, %v805_v51  ;;  %v7767_v3 = vld [vmem:[#allocation6 + $0x148] sm:$0xff]   ;;  %v809_v4 = vrot.slane %v805_v51, 4  ;;  %4121 = vmatpush1.bf16.msra.mxu1 %v7565_v59  ;;  %v1075_v27 = vld [vmem:[#allocation2 + $0x2c] sm:$0x1]  ;;  %v202_v34 = vld [vmem:[#allocation3 + $0x190] sm:$0xff] }
  0x94   :  { %7240 = vmatprep.subr.bf16.mxu0 %v7767_v3  ;;  %1214 = vst [vmem:[#allocation2 + $0x130] sm:$0xf] %v800_v55  ;;  %1217 = vst [vmem:[#allocation2 + $0x134] sm:$0x1] %v1216_v61  ;;  %v813_v5 = vrot.slane %v811_v52, 7  ;;  %v448_v6 = vrot.slane %v446_v58, 7  ;;  %v3124_v8 = vsel %vm2082_vm8, %v3122_v54, %v3123_v60  ;;  %4122 = vmatprep.subr.bf16.mxu1 %v7987_v0 }
  0x95   :  { %v449_v7 = vshll.u32 %v7058_v47, 16  ;;  %v1219_v9 = vsel %vm8161_vm6, %v808_v62, %v1218_v46  ;;  %v454_v10 = vshrl.u32 %v7059_v57, 16  ;;  %v457_v11 = vshll.u32 %v7059_v57, 16  ;;  %7295 = vmatmul.mubr.bf16.gmra.mrb[16].mxu1 %v3124_v8  ;;  %v201_v21 = vld [vmem:[#allocation3 + $0x188] sm:$0xff]  ;;  %v203_v39 = vld [vmem:[#allocation3 + $0x198] sm:$0xff]  ;;  %v7570_v40 = vld [vmem:[#allocation6 + $0x50] sm:$0xff]  }
  0x96   :  { %v8301_v12 = vld [vmem:[#allocation2 + $0x18] sm:$0xff]   ;;  %v816_v13 = vor.u32 %v814_v56, %v813_v5  ;;  %v818_v14 = vrot.slane %v813_v5, 4  ;;  %1220 = vst [vmem:[#allocation2 + $0x138] sm:$0xf] %v1219_v9  ;;  %v7102_v16 = vpack.c.bf16 %v200_v1, %v200_v1  ;;  %7241 = vmatpush3.bf16.msra.mxu0 %v7767_v3  ;;  %v452_v18 = vrot.slane %v448_v6, 4  ;;  %v7769_v47 = vld [vmem:[#allocation6 + $0x158] sm:$0xff]  }
  0x97   :  { %v451_v15 = vor.u32 %v449_v7, %v448_v6  ;;  %v7557_v17 = vld [vmem:[#allocation2 + $0x20] ss:$0 sps:$4 sm:$0x11]   ;;  %v456_v19 = vrot.slane %v454_v10, 7  ;;  %7242 = vmatprep.subr.bf16.mxu0 %v7768_v22  ;;  %v2656_v23 = vshrl.u32 %v8301_v12, 16  ;;  %v2658_v24 = vshll.u32 %v8301_v12, 16  ;;  %4123 = vmatpush1.bf16.msra.mxu1 %v7570_v40 }
  0x98   :  { %v817_v25 = vsel %vm8155_vm5, %v809_v4, %v816_v13  ;;  %v1223_v26 = vsel %vm8167_vm7, %v818_v14, %v1222_v63  ;;  %v2663_v28 = vshll.u32 %v7557_v17, 16  ;;  %v7103_v36 = vpack.c.bf16 %v201_v21, %v201_v21  ;;  %v1225_v45 = vld [vmem:[#allocation2 + $0x144] sm:$0xf]  ;;  %4124 = vmatprep.subr.bf16.mxu1 %v7987_v0  ;;  %v1229_v61 = vld [vmem:[#allocation2 + $0x14c] sm:$0x1]  ;;  %v7770_v5 = vld [vmem:[#allocation6 + $0x160] sm:$0xff]  }
  0x99   :  { %1221 = vst [vmem:[#allocation2 + $0x13c] sm:$0xf] %v817_v25  ;;  %1224 = vst [vmem:[#allocation2 + $0x140] sm:$0x1] %v1223_v26  ;;  %v459_v29 = vor.u32 %v457_v11, %v456_v19  ;;  %v461_v30 = vrot.slane %v456_v19, 4  ;;  %v1072_v32 = vsel %vm8161_vm6, %v451_v15, %v1071_v2  ;;  %v2660_v35 = vrot.slane %v2658_v24, 1 }
  0x9a   :  { %1073 = vst [vmem:[#allocation2 + $0x24] sm:$0xf] %v1072_v32  ;;  %v820_v37 = vshrl.u32 %v7102_v16, 16  ;;  %v823_v38 = vshll.u32 %v7102_v16, 16  ;;  %7243 = vmatpush3.bf16.msra.mxu0 %v7768_v22  ;;  %v2665_v41 = vrot.slane %v2663_v28, 1  ;;  %v7104_v46 = vpack.c.bf16 %v202_v34, %v202_v34  ;;  %v158_v58 = vld [vmem:[#allocation3 + $0x30] sm:$0xff] }
  0x9b   :  { %v7558_v42 = vld [vmem:[#allocation2 + $0x12c] sm:$0xff]   ;;  %v460_v43 = vsel %vm8155_vm5, %v452_v18, %v459_v29  ;;  %v1076_v44 = vsel %vm8167_vm7, %v461_v30, %v1075_v27  ;;  %7244 = vmatprep.subr.bf16.mxu0 %v7769_v47  ;;  %v2661_v48 = vor.u32 %v2660_v35, %v2656_v23  ;;  %v7559_v49 = vld [vmem:[#allocation2 + $0x134] ss:$0 sps:$4 sm:$0x11]   ;;  %v828_v51 = vshrl.u32 %v7103_v36, 16  ;;  %v7771_v26 = vld [vmem:[#allocation6 + $0x168] sm:$0xff]  }
  0x9c   :  { %1074 = vst [vmem:[#allocation2 + $0x28] sm:$0xf] %v460_v43  ;;  %1077 = vst [vmem:[#allocation2 + $0x2c] sm:$0x1] %v1076_v44  ;;  %v822_v50 = vrot.slane %v820_v37, 7  ;;  %v831_v52 = vshll.u32 %v7103_v36, 16  ;;  %v7105_v54 = vpack.c.bf16 %v203_v39, %v203_v39  ;;  %v7060_v9 = vpack.c.bf16 %v158_v58, %v158_v58 }
  0x9d   :  { %v3125_v53 = vrot.slane %v7558_v42, 1  ;;  %v837_v56 = vshrl.u32 %v7104_v46, 16  ;;  %v840_v57 = vshll.u32 %v7104_v46, 16  ;;  %v2666_v59 = vsel %vm1665_vm9, %v2661_v48, %v2665_v41  ;;  %v1232_v62 = vld [vmem:[#allocation2 + $0x150] sm:$0xf]  ;;  %v159_v19 = vld [vmem:[#allocation3 + $0x38] sm:$0xff] }
  0x9e   :  { %v3126_v60 = vrot.slane %v7559_v49, 1  ;;  %v825_v55 = vor.u32 %v823_v38, %v822_v50  ;;  %7245 = vmatpush3.bf16.msra.mxu0 %v7769_v47  ;;  %3420 = vmatprep.mubr.bf16.mxu0 %v2666_v59  ;;  %v826_v63 = vrot.slane %v822_v50, 4  ;;  %v830_v1 = vrot.slane %v828_v51, 7  ;;  %v1236_v15 = vld [vmem:[#allocation2 + $0x158] sm:$0x1]  ;;  %v204_v38 = vld [vmem:[#allocation3 + $0x1a0] sm:$0xff] }
  0x9f   :  { %v839_v3 = vrot.slane %v837_v56, 7  ;;  %v845_v4 = vshrl.u32 %v7105_v54, 16  ;;  %7246 = vmatprep.subr.bf16.mxu0 %v7770_v5  ;;  %3421 = vmatmul.mubr.bf16.gmra.mrb[4].mxu0 %v8301_v12  ;;  %v848_v8 = vshll.u32 %v7105_v54, 16  ;;  %v463_v12 = vshrl.u32 %v7060_v9, 16  ;;  %v205_v39 = vld [vmem:[#allocation3 + $0x1a8] sm:$0xff]  ;;  %v206_v48 = vld [vmem:[#allocation3 + $0x1b0] sm:$0xff] }
  0xa0   :  { %v3127_v6 = vsel %vm2082_vm8, %v3125_v53, %v3126_v60  ;;  %v7560_v7 = vld [vmem:[#allocation2 + $0x138] sm:$0xff]   ;;  %v1226_v2 = vsel %vm8161_vm6, %v825_v55, %v1225_v45  ;;  %v7561_v10 = vld [vmem:[#allocation2 + $0x140] ss:$0 sps:$4 sm:$0x11]   ;;  %v833_v11 = vor.u32 %v831_v52, %v830_v1  ;;  %v835_v13 = vrot.slane %v830_v1, 4  ;;  %v7577_v54 = vld [vmem:[#allocation6 + $0x58] sm:$0xff]  }
  0xa1   :  { %7298 = vmatprep.mubr.bf16.mxu1 %v3127_v6  ;;  %1227 = vst [vmem:[#allocation2 + $0x144] sm:$0xf] %v1226_v2  ;;  %v842_v14 = vor.u32 %v840_v57, %v839_v3  ;;  %v3128_v16 = vrot.slane %v7560_v7, 1  ;;  %v843_v17 = vrot.slane %v839_v3, 4  ;;  %v847_v18 = vrot.slane %v845_v4, 7  ;;  %v7772_v49 = vld [vmem:[#allocation6 + $0x170] sm:$0xff]   ;;  %4125 = vmatpush1.bf16.msra.mxu1 %v7577_v54 }
  0xa2   :  { %7247 = vmatpush3.bf16.msra.mxu0 %v7770_v5  ;;  %v3129_v21 = vrot.slane %v7561_v10, 1  ;;  %v834_v23 = vsel %vm8155_vm5, %v826_v63, %v833_v11  ;;  %v1230_v24 = vsel %vm8167_vm7, %v835_v13, %v1229_v61  ;;  %v7061_v30 = vpack.c.bf16 %v159_v19, %v159_v19  ;;  %v1078_v43 = vld [vmem:[#allocation2 + $0x30] sm:$0xf]  ;;  %v1082_v51 = vld [vmem:[#allocation2 + $0x38] sm:$0x1]  ;;  %v207_v60 = vld [vmem:[#allocation3 + $0x1b8] sm:$0xff]  ;;  %4126 = vmatprep.subr.bf16.mxu1 %v7987_v0 }
  0xa3   :  { %v8321_v22 = vld [vmem:[#allocation2 + $0x24] sm:$0xff]   ;;  %v1233_v25 = vsel %vm8161_vm6, %v842_v14, %v1232_v62  ;;  %7248 = vmatprep.subr.bf16.mxu0 %v7771_v26  ;;  %v7564_v27 = vld [vmem:[#allocation2 + $0x2c] ss:$0 sps:$4 sm:$0x11]   ;;  %1228 = vst [vmem:[#allocation2 + $0x148] sm:$0xf] %v834_v23  ;;  %v850_v28 = vor.u32 %v848_v8, %v847_v18  ;;  %v7106_v52 = vpack.c.bf16 %v204_v38, %v204_v38 }
  0xa4   :  { %1231 = vst [vmem:[#allocation2 + $0x14c] sm:$0x1] %v1230_v24  ;;  %v852_v29 = vrot.slane %v847_v18, 4  ;;  %1234 = vst [vmem:[#allocation2 + $0x150] sm:$0xf] %v1233_v25  ;;  %v465_v32 = vrot.slane %v463_v12, 7  ;;  %v3130_v34 = vsel %vm2082_vm8, %v3128_v16, %v3129_v21  ;;  %v7107_v53 = vpack.c.bf16 %v205_v39, %v205_v39 }
  0xa5   :  { %v2668_v35 = vshrl.u32 %v8321_v22, 16  ;;  %v2670_v36 = vshll.u32 %v8321_v22, 16  ;;  %v466_v37 = vshll.u32 %v7060_v9, 16  ;;  %7299 = vmatmul.mubr.bf16.gmra.mrb[20].mxu1 %v3130_v34  ;;  %v2675_v40 = vshll.u32 %v7564_v27, 16  ;;  %v7578_v55 = vld [vmem:[#allocation6 + $0x60] sm:$0xff]   ;;  %v7773_v8 = vld [vmem:[#allocation6 + $0x178] sm:$0xff]  }
  0xa6   :  { %v851_v41 = vsel %vm8155_vm5, %v843_v17, %v850_v28  ;;  %v1237_v42 = vsel %vm8167_vm7, %v852_v29, %v1236_v15  ;;  %7249 = vmatpush3.bf16.msra.mxu0 %v7771_v26  ;;  %v471_v46 = vshrl.u32 %v7061_v30, 16  ;;  %v474_v47 = vshll.u32 %v7061_v30, 16  ;;  %v1239_v7 = vld [vmem:[#allocation2 + $0x15c] sm:$0xf]  ;;  %v1243_v11 = vld [vmem:[#allocation2 + $0x164] sm:$0x1]  ;;  %4127 = vmatpush1.bf16.msra.mxu1 %v7578_v55 }
  0xa7   :  { %v2672_v44 = vrot.slane %v2670_v36, 1  ;;  %1235 = vst [vmem:[#allocation2 + $0x154] sm:$0xf] %v851_v41  ;;  %1238 = vst [vmem:[#allocation2 + $0x158] sm:$0x1] %v1237_v42  ;;  %v468_v45 = vor.u32 %v466_v37, %v465_v32  ;;  %7250 = vmatprep.subr.bf16.mxu0 %v7772_v49  ;;  %v2677_v50 = vrot.slane %v2675_v40, 1  ;;  %v7108_v2 = vpack.c.bf16 %v206_v48, %v206_v48 }
  0xa8   :  { %v469_v57 = vrot.slane %v465_v32, 4  ;;  %v473_v58 = vrot.slane %v471_v46, 7  ;;  %v854_v61 = vshrl.u32 %v7106_v52, 16  ;;  %v857_v62 = vshll.u32 %v7106_v52, 16  ;;  %4128 = vmatprep.subr.bf16.mxu1 %v7987_v0  ;;  %v160_v30 = vld [vmem:[#allocation3 + $0x40] sm:$0xff]  ;;  %v161_v32 = vld [vmem:[#allocation3 + $0x48] sm:$0xff] }
  0xa9   :  { %v2673_v56 = vor.u32 %v2672_v44, %v2668_v35  ;;  %v1079_v59 = vsel %vm8161_vm6, %v468_v45, %v1078_v43  ;;  %v862_v63 = vshrl.u32 %v7107_v53, 16  ;;  %v865_v1 = vshll.u32 %v7107_v53, 16  ;;  %v1246_v40 = vld [vmem:[#allocation2 + $0x168] sm:$0xf]  ;;  %v208_v43 = vld [vmem:[#allocation3 + $0x1c0] sm:$0xff]  ;;  %v209_v44 = vld [vmem:[#allocation3 + $0x1c8] sm:$0xff] }
  0xaa   :  { %1080 = vst [vmem:[#allocation2 + $0x30] sm:$0xf] %v1079_v59  ;;  %7251 = vmatpush3.bf16.msra.mxu0 %v7772_v49  ;;  %v7566_v4 = vld [vmem:[#allocation2 + $0x144] sm:$0xff]   ;;  %v476_v5 = vor.u32 %v474_v47, %v473_v58  ;;  %v478_v6 = vrot.slane %v473_v58, 4  ;;  %v856_v10 = vrot.slane %v854_v61, 7  ;;  %v7109_v12 = vpack.c.bf16 %v207_v60, %v207_v60 }
  0xab   :  { %v2678_v3 = vsel %vm1665_vm9, %v2673_v56, %v2677_v50  ;;  %7252 = vmatprep.subr.bf16.mxu0 %v7773_v8  ;;  %v7567_v9 = vld [vmem:[#allocation2 + $0x14c] ss:$0 sps:$4 sm:$0x11]   ;;  %v3131_v13 = vrot.slane %v7566_v4, 1  ;;  %v864_v16 = vrot.slane %v862_v63, 7  ;;  %v871_v25 = vshrl.u32 %v7108_v2, 16 }
  0xac   :  { %3428 = vmatprep.mubr.bf16.mxu0 %v2678_v3  ;;  %v477_v14 = vsel %vm8155_vm5, %v469_v57, %v476_v5  ;;  %v1083_v15 = vsel %vm8167_vm7, %v478_v6, %v1082_v51  ;;  %v3132_v17 = vrot.slane %v7567_v9, 1  ;;  %v859_v19 = vor.u32 %v857_v62, %v856_v10  ;;  %v1250_v48 = vld [vmem:[#allocation2 + $0x170] sm:$0x1]  ;;  %v210_v54 = vld [vmem:[#allocation3 + $0x1d0] sm:$0xff]  ;;  %v211_v56 = vld [vmem:[#allocation3 + $0x1d8] sm:$0xff] }
  0xad   :  { %3429 = vmatmul.mubr.bf16.gmra.mrb[8].mxu0 %v8321_v22  ;;  %1081 = vst [vmem:[#allocation2 + $0x34] sm:$0xf] %v477_v14  ;;  %1084 = vst [vmem:[#allocation2 + $0x38] sm:$0x1] %v1083_v15  ;;  %v860_v23 = vrot.slane %v856_v10, 4  ;;  %v867_v24 = vor.u32 %v865_v1, %v864_v16  ;;  %v869_v22 = vrot.slane %v864_v16, 4  ;;  %v7062_v41 = vpack.c.bf16 %v160_v30, %v160_v30 }
  0xae   :  { %v7568_v18 = vld [vmem:[#allocation2 + $0x150] sm:$0xff]   ;;  %7253 = vmatpush3.bf16.msra.mxu0 %v7773_v8  ;;  %v7569_v21 = vld [vmem:[#allocation2 + $0x158] ss:$0 sps:$4 sm:$0x11]   ;;  %v3133_v26 = vsel %vm2082_vm8, %v3131_v13, %v3132_v17  ;;  %v1240_v28 = vsel %vm8161_vm6, %v859_v19, %v1239_v7  ;;  %v874_v29 = vshll.u32 %v7108_v2, 16  ;;  %v873_v37 = vrot.slane %v871_v25, 7 }
  0xaf   :  { %v3134_v27 = vrot.slane %v7568_v18, 1  ;;  %7302 = vmatprep.mubr.bf16.mxu1 %v3133_v26  ;;  %v3135_v34 = vrot.slane %v7569_v21, 1  ;;  %v868_v35 = vsel %vm8155_vm5, %v860_v23, %v867_v24  ;;  %1241 = vst [vmem:[#allocation2 + $0x15c] sm:$0xf] %v1240_v28  ;;  %v1244_v36 = vsel %vm8167_vm7, %v869_v22, %v1243_v11  ;;  %v1085_v60 = vld [vmem:[#allocation2 + $0x3c] sm:$0xf] }
  0xb0   :  { %1242 = vst [vmem:[#allocation2 + $0x160] sm:$0xf] %v868_v35  ;;  %1245 = vst [vmem:[#allocation2 + $0x164] sm:$0x1] %v1244_v36  ;;  %v879_v38 = vshrl.u32 %v7109_v12, 16  ;;  %v882_v39 = vshll.u32 %v7109_v12, 16  ;;  %v7063_v42 = vpack.c.bf16 %v161_v32, %v161_v32  ;;  %v876_v46 = vor.u32 %v874_v29, %v873_v37 }
  0xb1   :  { %v3136_v45 = vsel %vm2082_vm8, %v3134_v27, %v3135_v34  ;;  %v877_v47 = vrot.slane %v873_v37, 4  ;;  %v7110_v49 = vpack.c.bf16 %v208_v43, %v208_v43  ;;  %v480_v51 = vshrl.u32 %v7062_v41, 16  ;;  %v1089_v6 = vld [vmem:[#allocation2 + $0x44] sm:$0x1]  ;;  %v7585_v13 = vld [vmem:[#allocation6 + $0x68] sm:$0xff]  }
  0xb2   :  { %7303 = vmatmul.mubr.bf16.gmra.mrb[24].mxu1 %v3136_v45  ;;  %v881_v50 = vrot.slane %v879_v38, 7  ;;  %v483_v52 = vshll.u32 %v7062_v41, 16  ;;  %v488_v53 = vshrl.u32 %v7063_v42, 16  ;;  %v1247_v58 = vsel %vm8161_vm6, %v876_v46, %v1246_v40  ;;  %v1253_v34 = vld [vmem:[#allocation2 + $0x174] sm:$0xf]  ;;  %v163_v40 = vld [vmem:[#allocation3 + $0x58] sm:$0xff] }
  0xb3   :  { %v491_v59 = vshll.u32 %v7063_v42, 16  ;;  %v7111_v55 = vpack.c.bf16 %v209_v44, %v209_v44  ;;  %1248 = vst [vmem:[#allocation2 + $0x168] sm:$0xf] %v1247_v58  ;;  %v482_v1 = vrot.slane %v480_v51, 7  ;;  %v888_v7 = vshrl.u32 %v7110_v49, 16  ;;  %4129 = vmatpush1.bf16.msra.mxu1 %v7585_v13  ;;  %v212_v46 = vld [vmem:[#allocation3 + $0x1e0] sm:$0xff] }
  0xb4   :  { %v7571_v57 = vld [vmem:[#allocation2 + $0x30] sm:$0xff]   ;;  %v7572_v61 = vld [vmem:[#allocation2 + $0x38] ss:$0 sps:$4 sm:$0x11]   ;;  %v884_v62 = vor.u32 %v882_v39, %v881_v50  ;;  %v886_v63 = vrot.slane %v881_v50, 4  ;;  %v490_v3 = vrot.slane %v488_v53, 7  ;;  %v7112_v17 = vpack.c.bf16 %v210_v54, %v210_v54  ;;  %4130 = vmatprep.subr.bf16.mxu1 %v7987_v0 }
  0xb5   :  { %v2680_v4 = vshrl.u32 %v7571_v57, 16  ;;  %v2682_v5 = vshll.u32 %v7571_v57, 16  ;;  %v891_v2 = vshll.u32 %v7110_v49, 16  ;;  %v2687_v8 = vshll.u32 %v7572_v61, 16  ;;  %v162_v39 = vld [vmem:[#allocation3 + $0x50] sm:$0xff] }
  0xb6   :  { %v885_v9 = vsel %vm8155_vm5, %v877_v47, %v884_v62  ;;  %v1251_v10 = vsel %vm8167_vm7, %v886_v63, %v1250_v48  ;;  %v485_v11 = vor.u32 %v483_v52, %v482_v1  ;;  %v493_v16 = vor.u32 %v491_v59, %v490_v3  ;;  %v1257_v42 = vld [vmem:[#allocation2 + $0x17c] sm:$0x1]  ;;  %v1260_v51 = vld [vmem:[#allocation2 + $0x180] sm:$0xf] }
  0xb7   :  { %v2684_v14 = vrot.slane %v2682_v5, 1  ;;  %v7573_v15 = vld [vmem:[#allocation2 + $0x15c] sm:$0xff]   ;;  %1249 = vst [vmem:[#allocation2 + $0x16c] sm:$0xf] %v885_v9  ;;  %1252 = vst [vmem:[#allocation2 + $0x170] sm:$0x1] %v1251_v10  ;;  %v7113_v18 = vpack.c.bf16 %v211_v56, %v211_v56  ;;  %v7064_v58 = vpack.c.bf16 %v162_v39, %v162_v39  ;;  %v7065_v59 = vpack.c.bf16 %v163_v40, %v163_v40 }
  0xb8   :  { %v2689_v19 = vrot.slane %v2687_v8, 1  ;;  %v7574_v12 = vld [vmem:[#allocation2 + $0x164] ss:$0 sps:$4 sm:$0x11]   ;;  %v486_v21 = vrot.slane %v482_v1, 4  ;;  %v495_v23 = vrot.slane %v490_v3, 4  ;;  %v1086_v24 = vsel %vm8161_vm6, %v485_v11, %v1085_v60 }
  0xb9   :  { %v2685_v22 = vor.u32 %v2684_v14, %v2680_v4  ;;  %v3137_v25 = vrot.slane %v7573_v15, 1  ;;  %1087 = vst [vmem:[#allocation2 + $0x3c] sm:$0xf] %v1086_v24  ;;  %v890_v26 = vrot.slane %v888_v7, 7  ;;  %v896_v27 = vshrl.u32 %v7111_v55, 16  ;;  %v213_v52 = vld [vmem:[#allocation3 + $0x1e8] sm:$0xff] }
  0xba   :  { %v3138_v28 = vrot.slane %v7574_v12, 1  ;;  %v494_v29 = vsel %vm8155_vm5, %v486_v21, %v493_v16  ;;  %v1090_v30 = vsel %vm8167_vm7, %v495_v23, %v1089_v6  ;;  %v899_v32 = vshll.u32 %v7111_v55, 16  ;;  %v1264_v56 = vld [vmem:[#allocation2 + $0x188] sm:$0x1]  ;;  %v7590_v5 = vld [vmem:[#allocation6 + $0x70] sm:$0xff]   ;;  %v164_v39 = vld [vmem:[#allocation3 + $0x60] sm:$0xff] }
  0xbb   :  { %v2690_v35 = vsel %vm1665_vm9, %v2685_v22, %v2689_v19  ;;  %1088 = vst [vmem:[#allocation2 + $0x40] sm:$0xf] %v494_v29  ;;  %1091 = vst [vmem:[#allocation2 + $0x44] sm:$0x1] %v1090_v30  ;;  %v893_v36 = vor.u32 %v891_v2, %v890_v26  ;;  %v894_v37 = vrot.slane %v890_v26, 4  ;;  %v898_v38 = vrot.slane %v896_v27, 7  ;;  %4131 = vmatpush1.bf16.msra.mxu1 %v7590_v5 }
  0xbc   :  { %3436 = vmatprep.mubr.bf16.mxu0 %v2690_v35  ;;  %v3139_v41 = vsel %vm2082_vm8, %v3137_v25, %v3138_v28  ;;  %v905_v43 = vshrl.u32 %v7112_v17, 16  ;;  %v908_v44 = vshll.u32 %v7112_v17, 16  ;;  %v913_v45 = vshrl.u32 %v7113_v18, 16  ;;  %v214_v9 = vld [vmem:[#allocation3 + $0x1f0] sm:$0xff]  ;;  %v7593_v10 = vld [vmem:[#allocation6 + $0x78] sm:$0xff]   ;;  %4132 = vmatprep.subr.bf16.mxu1 %v7987_v0  ;;  %v165_v40 = vld [vmem:[#allocation3 + $0x68] sm:$0xff] }
  0xbd   :  { %3437 = vmatmul.mubr.bf16.gmra.mrb[12].mxu0 %v7571_v57  ;;  %7306 = vmatprep.mubr.bf16.mxu1 %v3139_v41  ;;  %v901_v47 = vor.u32 %v899_v32, %v898_v38  ;;  %v903_v48 = vrot.slane %v898_v38, 4  ;;  %v1254_v49 = vsel %vm8161_vm6, %v893_v36, %v1253_v34  ;;  %v916_v50 = vshll.u32 %v7113_v18, 16  ;;  %v1092_v23 = vld [vmem:[#allocation2 + $0x48] sm:$0xf]  ;;  %v1096_v32 = vld [vmem:[#allocation2 + $0x50] sm:$0x1] }
  0xbe   :  { %v7575_v53 = vld [vmem:[#allocation2 + $0x168] sm:$0xff]   ;;  %1255 = vst [vmem:[#allocation2 + $0x174] sm:$0xf] %v1254_v49  ;;  %v907_v54 = vrot.slane %v905_v43, 7  ;;  %v915_v61 = vrot.slane %v913_v45, 7  ;;  %v8375_v62 = vpack.c.bf16 %v212_v46, %v212_v46  ;;  %v497_v4 = vshrl.u32 %v7064_v58, 16 }
  0xbf   :  { %v7576_v60 = vld [vmem:[#allocation2 + $0x170] ss:$0 sps:$4 sm:$0x11]   ;;  %v902_v55 = vsel %vm8155_vm5, %v894_v37, %v901_v47  ;;  %v1258_v57 = vsel %vm8167_vm7, %v903_v48, %v1257_v42  ;;  %v3140_v63 = vrot.slane %v7575_v53, 1  ;;  %v500_v8 = vshll.u32 %v7064_v58, 16  ;;  %v215_v27 = vld [vmem:[#allocation3 + $0x1f8] sm:$0xff]  ;;  %4133 = vmatpush1.bf16.msra.mxu1 %v7593_v10 }
  0xc0   :  { %1256 = vst [vmem:[#allocation2 + $0x178] sm:$0xf] %v902_v55  ;;  %1259 = vst [vmem:[#allocation2 + $0x17c] sm:$0x1] %v1258_v57  ;;  %v910_v1 = vor.u32 %v908_v44, %v907_v54  ;;  %v911_v3 = vrot.slane %v907_v54, 4  ;;  %v3141_v6 = vrot.slane %v7576_v60, 1  ;;  %v918_v7 = vor.u32 %v916_v50, %v915_v61  ;;  %5802 = vmatprep.subr.bf16.mxu1 %v7987_v0 }
  0xc1   :  { %v920_v2 = vrot.slane %v915_v61, 4  ;;  %v499_v14 = vrot.slane %v497_v4, 7  ;;  %v7115_v15 = vpack.c.bf16 %v213_v52, %v213_v52  ;;  %v8381_v16 = vpack.c.bf16 %v214_v9, %v214_v9  ;;  %v1267_v44 = vld [vmem:[#allocation2 + $0x18c] sm:$0xf]  ;;  %v1271_v55 = vld [vmem:[#allocation2 + $0x194] sm:$0x1] }
  0xc2   :  { %v8377_v11 = vld [vmem:[#allocation2 + $0x3c] sm:$0xff]   ;;  %v1261_v13 = vsel %vm8161_vm6, %v910_v1, %v1260_v51  ;;  %v3142_v17 = vsel %vm2082_vm8, %v3140_v63, %v3141_v6  ;;  %v7580_v18 = vld [vmem:[#allocation2 + $0x44] ss:$0 sps:$4 sm:$0x11]   ;;  %v919_v19 = vsel %vm8155_vm5, %v911_v3, %v918_v7  ;;  %v505_v21 = vshrl.u32 %v7065_v59, 16 }
  0xc3   :  { %1262 = vst [vmem:[#allocation2 + $0x180] sm:$0xf] %v1261_v13  ;;  %v1265_v12 = vsel %vm8167_vm7, %v920_v2, %v1264_v56  ;;  %7307 = vmatmul.mubr.bf16.gmra.mrb[28].mxu1 %v3142_v17  ;;  %v2692_v24 = vshrl.u32 %v8377_v11, 16  ;;  %v2694_v22 = vshll.u32 %v8377_v11, 16  ;;  %1263 = vst [vmem:[#allocation2 + $0x184] sm:$0xf] %v919_v19  ;;  %v502_v25 = vor.u32 %v500_v8, %v499_v14 }
  0xc4   :  { %1266 = vst [vmem:[#allocation2 + $0x188] sm:$0x1] %v1265_v12  ;;  %v503_v26 = vrot.slane %v499_v14, 4  ;;  %v2699_v28 = vshll.u32 %v7580_v18, 16  ;;  %v507_v29 = vrot.slane %v505_v21, 7  ;;  %v508_v30 = vshll.u32 %v7065_v59, 16 }
  0xc5   :  { %v922_v34 = vshrl.u32 %v8375_v62, 16  ;;  %v2696_v35 = vrot.slane %v2694_v22, 1  ;;  %v1093_v36 = vsel %vm8161_vm6, %v502_v25, %v1092_v23  ;;  %v925_v37 = vshll.u32 %v8375_v62, 16  ;;  %v1274_v13 = vld [vmem:[#allocation2 + $0x198] sm:$0xf] }
  0xc6   :  { %v930_v38 = vshrl.u32 %v7115_v15, 16  ;;  %v2701_v41 = vrot.slane %v2699_v28, 1  ;;  %v510_v43 = vor.u32 %v508_v30, %v507_v29  ;;  %1094 = vst [vmem:[#allocation2 + $0x48] sm:$0xf] %v1093_v36  ;;  %v7117_v45 = vpack.c.bf16 %v215_v27, %v215_v27  ;;  %v1278_v18 = vld [vmem:[#allocation2 + $0x1a0] sm:$0x1] }
  0xc7   :  { %v7581_v42 = vld [vmem:[#allocation2 + $0x174] sm:$0xff]   ;;  %v2697_v46 = vor.u32 %v2696_v35, %v2692_v24  ;;  %v7582_v47 = vld [vmem:[#allocation2 + $0x17c] ss:$0 sps:$4 sm:$0x11]   ;;  %v512_v48 = vrot.slane %v507_v29, 4  ;;  %v924_v49 = vrot.slane %v922_v34, 7  ;;  %v7066_v63 = vpack.c.bf16 %v164_v39, %v164_v39 }
  0xc8   :  { %v932_v50 = vrot.slane %v930_v38, 7  ;;  %v3143_v51 = vrot.slane %v7581_v42, 1  ;;  %v511_v52 = vsel %vm8155_vm5, %v503_v26, %v510_v43  ;;  %v933_v53 = vshll.u32 %v7115_v15, 16  ;;  %v166_v24 = vld [vmem:[#allocation3 + $0x70] sm:$0xff]  ;;  %v167_v34 = vld [vmem:[#allocation3 + $0x78] sm:$0xff] }
  0xc9   :  { %v939_v54 = vshrl.u32 %v8381_v16, 16  ;;  %v2702_v56 = vsel %vm1665_vm9, %v2697_v46, %v2701_v41  ;;  %v3144_v58 = vrot.slane %v7582_v47, 1  ;;  %1095 = vst [vmem:[#allocation2 + $0x4c] sm:$0xf] %v511_v52  ;;  %v1097_v59 = vsel %vm8167_vm7, %v512_v48, %v1096_v32  ;;  %v1099_v32 = vld [vmem:[#allocation2 + $0x54] sm:$0xf] }
  0xca   :  { %v927_v60 = vor.u32 %v925_v37, %v924_v49  ;;  %3444 = vmatprep.mubr.bf16.mxu0 %v2702_v56  ;;  %v7583_v57 = vld [vmem:[#allocation2 + $0x180] sm:$0xff]   ;;  %1098 = vst [vmem:[#allocation2 + $0x50] sm:$0x1] %v1097_v59  ;;  %v928_v61 = vrot.slane %v924_v49, 4  ;;  %v935_v62 = vor.u32 %v933_v53, %v932_v50  ;;  %v7067_v1 = vpack.c.bf16 %v165_v40, %v165_v40  ;;  %v1103_v37 = vld [vmem:[#allocation2 + $0x5c] sm:$0x1] }
  0xcb   :  { %3445 = vmatmul.mubr.bf16.gmra.mrb[16].mxu0 %v8377_v11  ;;  %v3145_v3 = vsel %vm2082_vm8, %v3143_v51, %v3144_v58  ;;  %v7584_v4 = vld [vmem:[#allocation2 + $0x188] ss:$0 sps:$4 sm:$0x11]   ;;  %v937_v5 = vrot.slane %v932_v50, 4  ;;  %v941_v7 = vrot.slane %v939_v54, 7  ;;  %v3146_v2 = vrot.slane %v7583_v57, 1 }
  0xcc   :  { %v1268_v6 = vsel %vm8161_vm6, %v927_v60, %v1267_v44  ;;  %7310 = vmatprep.mubr.bf16.mxu1 %v3145_v3  ;;  %v936_v8 = vsel %vm8155_vm5, %v928_v61, %v935_v62  ;;  %v942_v9 = vshll.u32 %v8381_v16, 16  ;;  %v947_v10 = vshrl.u32 %v7117_v45, 16  ;;  %v8418_v43 = vld [vmem:[#allocation2] sm:$0xff]   ;;  %v7597_v44 = vld [vmem:[#allocation2 + $0x8] ss:$0 sps:$4 sm:$0x11]  }
  0xcd   :  { %1269 = vst [vmem:[#allocation2 + $0x18c] sm:$0xf] %v1268_v6  ;;  %v3147_v14 = vrot.slane %v7584_v4, 1  ;;  %1270 = vst [vmem:[#allocation2 + $0x190] sm:$0xf] %v936_v8  ;;  %v1272_v11 = vsel %vm8167_vm7, %v937_v5, %v1271_v55  ;;  %v945_v15 = vrot.slane %v941_v7, 4  ;;  %v7068_v38 = vpack.c.bf16 %v166_v24, %v166_v24 }
  0xce   :  { %v950_v17 = vshll.u32 %v7117_v45, 16  ;;  %1273 = vst [vmem:[#allocation2 + $0x194] sm:$0x1] %v1272_v11  ;;  %v944_v19 = vor.u32 %v942_v9, %v941_v7  ;;  %v949_v12 = vrot.slane %v947_v10, 7  ;;  %v514_v21 = vshrl.u32 %v7066_v63, 16  ;;  %v168_v4 = vld [vmem:[#allocation3 + $0x80] sm:$0xff] }
  0xcf   :  { %v517_v23 = vshll.u32 %v7066_v63, 16  ;;  %v3148_v22 = vsel %vm2082_vm8, %v3146_v2, %v3147_v14  ;;  %v522_v25 = vshrl.u32 %v7067_v1, 16  ;;  %v525_v16 = vshll.u32 %v7067_v1, 16  ;;  %v1106_v8 = vld [vmem:[#allocation2 + $0x60] sm:$0xf]  ;;  %v169_v9 = vld [vmem:[#allocation3 + $0x88] sm:$0xff] }
  0xd0   :  { %7311 = vmatmul.mubr.bf16.gmra.mrb[32].mxu1 %v3148_v22  ;;  %v7586_v26 = vld [vmem:[#allocation2 + $0x48] sm:$0xff]   ;;  %v952_v27 = vor.u32 %v950_v17, %v949_v12  ;;  %v954_v28 = vrot.slane %v949_v12, 4  ;;  %v1275_v29 = vsel %vm8161_vm6, %v944_v19, %v1274_v13  ;;  %v516_v30 = vrot.slane %v514_v21, 7 }
  0xd1   :  { %v7587_v35 = vld [vmem:[#allocation2 + $0x50] ss:$0 sps:$4 sm:$0x11]   ;;  %1276 = vst [vmem:[#allocation2 + $0x198] sm:$0xf] %v1275_v29  ;;  %v524_v36 = vrot.slane %v522_v25, 7  ;;  %v7069_v53 = vpack.c.bf16 %v167_v34, %v167_v34 }
  0xd2   :  { %v2704_v39 = vshrl.u32 %v7586_v26, 16  ;;  %v2706_v40 = vshll.u32 %v7586_v26, 16  ;;  %v953_v41 = vsel %vm8155_vm5, %v945_v15, %v952_v27  ;;  %v1279_v42 = vsel %vm8167_vm7, %v954_v28, %v1278_v18  ;;  %v1110_v11 = vld [vmem:[#allocation2 + $0x68] sm:$0x1]  ;;  %v8430_v15 = vld [vmem:[#allocation2 + $0xc] sm:$0xff]  }
  0xd3   :  { %v2711_v45 = vshll.u32 %v7587_v35, 16  ;;  %1277 = vst [vmem:[#allocation2 + $0x19c] sm:$0xf] %v953_v41  ;;  %1280 = vst [vmem:[#allocation2 + $0x1a0] sm:$0x1] %v1279_v42  ;;  %v519_v46 = vor.u32 %v517_v23, %v516_v30  ;;  %v520_v47 = vrot.slane %v516_v30, 4  ;;  %v527_v48 = vor.u32 %v525_v16, %v524_v36 }
  0xd4   :  { %v2708_v49 = vrot.slane %v2706_v40, 1  ;;  %v7588_v50 = vld [vmem:[#allocation2 + $0x18c] sm:$0xff]   ;;  %v529_v51 = vrot.slane %v524_v36, 4  ;;  %v1667_v52 = vshrl.u32 %v8418_v43, 16  ;;  %v1669_v61 = vshll.u32 %v8418_v43, 16  ;;  %v8442_v42 = vld [vmem:[#allocation2 + $0x18] sm:$0xff]  }
  0xd5   :  { %v2713_v54 = vrot.slane %v2711_v45, 1  ;;  %v7589_v56 = vld [vmem:[#allocation2 + $0x194] ss:$0 sps:$4 sm:$0x11]   ;;  %v528_v58 = vsel %vm8155_vm5, %v520_v47, %v527_v48  ;;  %v1100_v59 = vsel %vm8161_vm6, %v519_v46, %v1099_v32  ;;  %v3149_v55 = vrot.slane %v7588_v50, 1  ;;  %v170_v48 = vld [vmem:[#allocation3 + $0x90] sm:$0xff] }
  0xd6   :  { %v2709_v60 = vor.u32 %v2708_v49, %v2704_v39  ;;  %1101 = vst [vmem:[#allocation2 + $0x54] sm:$0xf] %v1100_v59  ;;  %1102 = vst [vmem:[#allocation2 + $0x58] sm:$0xf] %v528_v58  ;;  %v1104_v57 = vsel %vm8167_vm7, %v529_v51, %v1103_v37  ;;  %v3150_v62 = vrot.slane %v7589_v56, 1  ;;  %v1674_v63 = vshll.u32 %v7597_v44, 16 }
  0xd7   :  { %1105 = vst [vmem:[#allocation2 + $0x5c] sm:$0x1] %v1104_v57  ;;  %v531_v1 = vshrl.u32 %v7068_v38, 16  ;;  %v534_v3 = vshll.u32 %v7068_v38, 16  ;;  %v1671_v6 = vrot.slane %v1669_v61, 1  ;;  %v539_v7 = vshrl.u32 %v7069_v53, 16 }
  0xd8   :  { %v2714_v5 = vsel %vm1665_vm9, %v2709_v60, %v2713_v54  ;;  %v542_v2 = vshll.u32 %v7069_v53, 16  ;;  %v3151_v10 = vsel %vm2082_vm8, %v3149_v55, %v3150_v62  ;;  %v1676_v13 = vrot.slane %v1674_v63, 1  ;;  %v7602_v16 = vld [vmem:[#allocation2 + $0x14] ss:$0 sps:$4 sm:$0x11]   ;;  %v171_v49 = vld [vmem:[#allocation3 + $0x98] sm:$0xff] }
  0xd9   :  { %3452 = vmatprep.mubr.bf16.mxu0 %v2714_v5  ;;  %v533_v14 = vrot.slane %v531_v1, 7  ;;  %7314 = vmatprep.mubr.bf16.mxu1 %v3151_v10  ;;  %v1672_v18 = vor.u32 %v1671_v6, %v1667_v52  ;;  %v541_v19 = vrot.slane %v539_v7, 7  ;;  %v7070_v27 = vpack.c.bf16 %v168_v4, %v168_v4  ;;  %v1113_v54 = vld [vmem:[#allocation2 + $0x6c] sm:$0xf]  ;;  %v1117_v60 = vld [vmem:[#allocation2 + $0x74] sm:$0x1] }
  0xda   :  { %3453 = vmatmul.mubr.bf16.gmra.mrb[20].mxu0 %v7586_v26  ;;  %v7591_v17 = vld [vmem:[#allocation2 + $0x198] sm:$0xff]   ;;  %v7592_v12 = vld [vmem:[#allocation2 + $0x1a0] ss:$0 sps:$4 sm:$0x11]   ;;  %v7071_v32 = vpack.c.bf16 %v169_v9, %v169_v9  ;;  %v1679_v37 = vshrl.u32 %v8430_v15, 16  ;;  %v1681_v41 = vshll.u32 %v8430_v15, 16  ;;  %v7072_v1 = vpack.c.bf16 %v170_v48, %v170_v48 }
  0xdb   :  { %v536_v21 = vor.u32 %v534_v3, %v533_v14  ;;  %v537_v23 = vrot.slane %v533_v14, 4  ;;  %v3152_v24 = vrot.slane %v7591_v17, 1  ;;  %v544_v22 = vor.u32 %v542_v2, %v541_v19  ;;  %v7606_v63 = vld [vmem:[#allocation2 + $0x20] ss:$0 sps:$4 sm:$0x11]   ;;  %v7598_v7 = vld [vmem:[#allocation6 + $0x180] sm:$0xff]  }
  0xdc   :  { %v546_v25 = vrot.slane %v541_v19, 4  ;;  %v3153_v28 = vrot.slane %v7592_v12, 1  ;;  %v1677_v26 = vsel %vm1665_vm9, %v1672_v18, %v1676_v13  ;;  %v1686_v45 = vshll.u32 %v7602_v16, 16  ;;  %v7607_v16 = vld [vmem:[#allocation6 + $0x188] sm:$0xff]   ;;  %v1124_v48 = vld [vmem:[#allocation2 + $0x80] sm:$0x1] }
  0xdd   :  { %v7594_v29 = vld [vmem:[#allocation2 + $0x54] sm:$0xff]   ;;  %v1107_v30 = vsel %vm8161_vm6, %v536_v21, %v1106_v8  ;;  %v545_v35 = vsel %vm8155_vm5, %v537_v23, %v544_v22  ;;  %v548_v46 = vshrl.u32 %v7070_v27, 16  ;;  %v551_v47 = vshll.u32 %v7070_v27, 16  ;;  %v8495_v31 = vld [vmem:[#allocation2 + $0x48] sm:$0xff]  }
  0xde   :  { %v7595_v34 = vld [vmem:[#allocation2 + $0x5c] ss:$0 sps:$4 sm:$0x11]   ;;  %1108 = vst [vmem:[#allocation2 + $0x60] sm:$0xf] %v1107_v30  ;;  %v1111_v36 = vsel %vm8167_vm7, %v546_v25, %v1110_v11  ;;  %v3154_v38 = vsel %vm2082_vm8, %v3152_v24, %v3153_v28  ;;  %v2716_v39 = vshrl.u32 %v7594_v29, 16  ;;  %v7073_v9 = vpack.c.bf16 %v171_v49, %v171_v49 }
  0xdf   :  { %v2718_v40 = vshll.u32 %v7594_v29, 16  ;;  %1109 = vst [vmem:[#allocation2 + $0x64] sm:$0xf] %v545_v35  ;;  %1112 = vst [vmem:[#allocation2 + $0x68] sm:$0x1] %v1111_v36  ;;  %7315 = vmatmul.mubr.bf16.gmra.mrb[36].mxu1 %v3154_v38  ;;  %v2723_v44 = vshll.u32 %v7595_v34, 16 }
  0xe0   :  { %4134 = vmatprep.mubr.bf16.mxu1 %v1677_v26  ;;  %v1683_v51 = vrot.slane %v1681_v41, 1  ;;  %v556_v52 = vshrl.u32 %v7071_v32, 16  ;;  %v559_v53 = vshll.u32 %v7071_v32, 16  ;;  %v1688_v58 = vrot.slane %v1686_v45, 1  ;;  %v172_v23 = vld [vmem:[#allocation3 + $0xa0] sm:$0xff]  ;;  %v173_v30 = vld [vmem:[#allocation3 + $0xa8] sm:$0xff] }
  0xe1   :  { %v2720_v50 = vrot.slane %v2718_v40, 1  ;;  %v2725_v56 = vrot.slane %v2723_v44, 1  ;;  %v550_v59 = vrot.slane %v548_v46, 7  ;;  %v1691_v55 = vshrl.u32 %v8442_v42, 16  ;;  %v1120_v28 = vld [vmem:[#allocation2 + $0x78] sm:$0xf] }
  0xe2   :  { %v1684_v61 = vor.u32 %v1683_v51, %v1679_v37  ;;  %v558_v62 = vrot.slane %v556_v52, 7  ;;  %v1693_v5 = vshll.u32 %v8442_v42, 16  ;;  %v1698_v12 = vshll.u32 %v7606_v63, 16  ;;  %v7611_v45 = vld [vmem:[#allocation2 + $0x2c] ss:$0 sps:$4 sm:$0x11]  }
  0xe3   :  { %v2721_v57 = vor.u32 %v2720_v50, %v2716_v39  ;;  %v553_v3 = vor.u32 %v551_v47, %v550_v59  ;;  %v554_v4 = vrot.slane %v550_v59, 4  ;;  %v565_v21 = vshrl.u32 %v7072_v1, 16  ;;  %v174_v59 = vld [vmem:[#allocation3 + $0xb0] sm:$0xff]  ;;  %v7622_v33 = vld [vmem:[#allocation2 + $0x50] ss:$0 sps:$4 sm:$0x11]  }
  0xe4   :  { %v561_v2 = vor.u32 %v559_v53, %v558_v62  ;;  %v563_v8 = vrot.slane %v558_v62, 4  ;;  %v1689_v13 = vsel %vm1665_vm9, %v1684_v61, %v1688_v58  ;;  %v1695_v11 = vrot.slane %v1693_v5, 1  ;;  %v7616_v58 = vld [vmem:[#allocation6 + $0x190] sm:$0xff]  }
  0xe5   :  { %v2726_v6 = vsel %vm1665_vm9, %v2721_v57, %v2725_v56  ;;  %v1114_v14 = vsel %vm8161_vm6, %v553_v3, %v1113_v54  ;;  %v568_v27 = vshll.u32 %v7072_v1, 16  ;;  %v1700_v34 = vrot.slane %v1698_v12, 1  ;;  %v8463_v56 = vld [vmem:[#allocation2 + $0x30] sm:$0xff]   ;;  %v1127_v1 = vld [vmem:[#allocation2 + $0x84] sm:$0xf] }
  0xe6   :  { %3460 = vmatprep.mubr.bf16.mxu0 %v2726_v6  ;;  %v7599_v10 = vld [vmem:[#allocation2 + $0x60] sm:$0xff]   ;;  %v7600_v17 = vld [vmem:[#allocation2 + $0x68] ss:$0 sps:$4 sm:$0x11]   ;;  %v562_v18 = vsel %vm8155_vm5, %v554_v4, %v561_v2  ;;  %1115 = vst [vmem:[#allocation2 + $0x6c] sm:$0xf] %v1114_v14  ;;  %v1118_v19 = vsel %vm8167_vm7, %v563_v8, %v1117_v60  ;;  %v1696_v25 = vor.u32 %v1695_v11, %v1691_v55 }
  0xe7   :  { %3461 = vmatmul.mubr.bf16.gmra.mrb[24].mxu0 %v7594_v29  ;;  %4135 = vmatmul.mubr.bf16.vlgmr.msra.gmra.mrb[40].mxu1 %v8418_v43  ;;  %v2728_v24 = vshrl.u32 %v7599_v10, 16  ;;  %v2730_v22 = vshll.u32 %v7599_v10, 16  ;;  %1116 = vst [vmem:[#allocation2 + $0x70] sm:$0xf] %v562_v18  ;;  %1119 = vst [vmem:[#allocation2 + $0x74] sm:$0x1] %v1118_v19  ;;  %v7074_v37 = vpack.c.bf16 %v172_v23, %v172_v23 }
  0xe8   :  { %v8455_v29 = vld [vmem:[#allocation2 + $0x24] sm:$0xff]   ;;  %5803 = vmatpush1.bf16.msra.mxu1 %v7598_v7  ;;  %v2735_v32 = vshll.u32 %v7600_v17, 16  ;;  %4142 = vmatprep.mubr.bf16.mxu1 %v1689_v13  ;;  %v567_v26 = vrot.slane %v565_v21, 7  ;;  %v573_v35 = vshrl.u32 %v7073_v9, 16  ;;  %v576_v43 = vshll.u32 %v7073_v9, 16 }
  0xe9   :  { %v2732_v36 = vrot.slane %v2730_v22, 1  ;;  %5804 = vmatprep.subr.bf16.mxu1 %v7987_v0  ;;  %v7075_v38 = vpack.c.bf16 %v173_v30, %v173_v30  ;;  %v1701_v40 = vsel %vm1665_vm9, %v1696_v25, %v1700_v34  ;;  %v1703_v49 = vshrl.u32 %v8455_v29, 16  ;;  %v7615_v17 = vld [vmem:[#allocation2 + $0x38] ss:$0 sps:$4 sm:$0x11]   ;;  %v175_v18 = vld [vmem:[#allocation3 + $0xb8] sm:$0xff] }
  0xea   :  { %v2737_v39 = vrot.slane %v2735_v32, 1  ;;  %v570_v41 = vor.u32 %v568_v27, %v567_v26  ;;  %v571_v44 = vrot.slane %v567_v26, 4  ;;  %v575_v47 = vrot.slane %v573_v35, 7  ;;  %v1131_v25 = vld [vmem:[#allocation2 + $0x8c] sm:$0x1] }
  0xeb   :  { %v2733_v46 = vor.u32 %v2732_v36, %v2728_v24  ;;  %v1705_v50 = vshll.u32 %v8455_v29, 16  ;;  %v1710_v52 = vshll.u32 %v7611_v45, 16  ;;  %v582_v53 = vshrl.u32 %v7074_v37, 16 }
  0xec   :  { %5805 = vmatpush1.bf16.msra.mxu1 %v7607_v16  ;;  %v1121_v51 = vsel %vm8161_vm6, %v570_v41, %v1120_v28  ;;  %v585_v54 = vshll.u32 %v7074_v37, 16  ;;  %v578_v55 = vor.u32 %v576_v43, %v575_v47  ;;  %v580_v57 = vrot.slane %v575_v47, 4  ;;  %v8483_v41 = vld [vmem:[#allocation2 + $0x3c] sm:$0xff]  }
  0xed   :  { %v2738_v60 = vsel %vm1665_vm9, %v2733_v46, %v2737_v39  ;;  %1122 = vst [vmem:[#allocation2 + $0x78] sm:$0xf] %v1121_v51  ;;  %v1707_v61 = vrot.slane %v1705_v50, 1  ;;  %5806 = vmatprep.subr.bf16.mxu1 %v7987_v0  ;;  %v1712_v63 = vrot.slane %v1710_v52, 1  ;;  %v584_v6 = vrot.slane %v582_v53, 7 }
  0xee   :  { %3468 = vmatprep.mubr.bf16.mxu0 %v2738_v60  ;;  %v7603_v62 = vld [vmem:[#allocation2 + $0x6c] sm:$0xff]   ;;  %v7604_v3 = vld [vmem:[#allocation2 + $0x74] ss:$0 sps:$4 sm:$0x11]   ;;  %v579_v4 = vsel %vm8155_vm5, %v571_v44, %v578_v55  ;;  %v1125_v5 = vsel %vm8167_vm7, %v580_v57, %v1124_v48  ;;  %v7076_v7 = vpack.c.bf16 %v174_v59, %v174_v59  ;;  %v590_v9 = vshrl.u32 %v7075_v38, 16 }
  0xef   :  { %3469 = vmatmul.mubr.bf16.gmra.mrb[28].mxu0 %v7599_v10  ;;  %4143 = vmatmul.mubr.bf16.gmra.mrb[44].mxu1 %v8430_v15  ;;  %v2740_v2 = vshrl.u32 %v7603_v62, 16  ;;  %v2742_v8 = vshll.u32 %v7603_v62, 16  ;;  %1123 = vst [vmem:[#allocation2 + $0x7c] sm:$0xf] %v579_v4  ;;  %1126 = vst [vmem:[#allocation2 + $0x80] sm:$0x1] %v1125_v5  ;;  %v1708_v14 = vor.u32 %v1707_v61, %v1703_v49 }
  0xf0   :  { %4150 = vmatprep.mubr.bf16.mxu1 %v1701_v40  ;;  %v593_v13 = vshll.u32 %v7075_v38, 16  ;;  %5807 = vmatpush1.bf16.msra.mxu1 %v7616_v58  ;;  %v2747_v10 = vshll.u32 %v7604_v3, 16  ;;  %v587_v15 = vor.u32 %v585_v54, %v584_v6  ;;  %v588_v11 = vrot.slane %v584_v6, 4  ;;  %v1134_v40 = vld [vmem:[#allocation2 + $0x90] sm:$0xf] }
  0xf1   :  { %5808 = vmatprep.subr.bf16.mxu1 %v7987_v0  ;;  %v2744_v19 = vrot.slane %v2742_v8, 1  ;;  %v592_v12 = vrot.slane %v590_v9, 7  ;;  %v1715_v21 = vshrl.u32 %v8463_v56, 16  ;;  %v1717_v23 = vshll.u32 %v8463_v56, 16  ;;  %v1138_v46 = vld [vmem:[#allocation2 + $0x98] sm:$0x1] }
  0xf2   :  { %v2749_v24 = vrot.slane %v2747_v10, 1  ;;  %v1128_v22 = vsel %vm8161_vm6, %v587_v15, %v1127_v1  ;;  %v1722_v16 = vshll.u32 %v7615_v17, 16  ;;  %v7077_v27 = vpack.c.bf16 %v175_v18, %v175_v18  ;;  %v7620_v59 = vld [vmem:[#allocation2 + $0x44] ss:$0 sps:$4 sm:$0x11]  }
  0xf3   :  { %v2745_v28 = vor.u32 %v2744_v19, %v2740_v2  ;;  %v595_v30 = vor.u32 %v593_v13, %v592_v12  ;;  %v597_v32 = vrot.slane %v592_v12, 4  ;;  %1129 = vst [vmem:[#allocation2 + $0x84] sm:$0xf] %v1128_v22  ;;  %v1719_v34 = vrot.slane %v1717_v23, 1  ;;  %v7628_v19 = vld [vmem:[#allocation6 + $0x1a0] sm:$0xff]  }
  0xf4   :  { %v1713_v26 = vsel %vm1665_vm9, %v1708_v14, %v1712_v63  ;;  %v599_v35 = vshrl.u32 %v7076_v7, 16  ;;  %v602_v36 = vshll.u32 %v7076_v7, 16  ;;  %v607_v43 = vshrl.u32 %v7077_v27, 16  ;;  %v7623_v63 = vld [vmem:[#allocation6 + $0x198] sm:$0xff]   ;;  %v8505_v22 = vld [vmem:[#allocation2 + $0x54] sm:$0xff]  }
  0xf5   :  { %v2750_v37 = vsel %vm1665_vm9, %v2745_v28, %v2749_v24  ;;  %v596_v38 = vsel %vm8155_vm5, %v588_v11, %v595_v30  ;;  %v1132_v39 = vsel %vm8167_vm7, %v597_v32, %v1131_v25  ;;  %v1720_v48 = vor.u32 %v1719_v34, %v1715_v21  ;;  %5809 = vmatpush1.bf16.msra.mxu1 %v7623_v63  ;;  %v8501_v21 = vld [vmem:[#allocation2 + $0x9c] sm:$0xff]  }
  0xf6   :  { %3476 = vmatprep.mubr.bf16.mxu0 %v2750_v37  ;;  %v7608_v44 = vld [vmem:[#allocation2 + $0x78] sm:$0xff]   ;;  %1130 = vst [vmem:[#allocation2 + $0x88] sm:$0xf] %v596_v38  ;;  %1133 = vst [vmem:[#allocation2 + $0x8c] sm:$0x1] %v1132_v39  ;;  %v601_v45 = vrot.slane %v599_v35, 7  ;;  %5810 = vmatprep.subr.bf16.mxu1 %v7987_v0 }
  0xf7   :  { %4151 = vmatmul.mubr.bf16.gmra.mrb[48].mxu1 %v8442_v42  ;;  %3477 = vmatmul.mubr.bf16.gmra.mrb[32].mxu0 %v7603_v62  ;;  %v7609_v47 = vld [vmem:[#allocation2 + $0x80] ss:$0 sps:$4 sm:$0x11]   ;;  %v1724_v49 = vrot.slane %v1722_v16, 1  ;;  %v609_v50 = vrot.slane %v607_v43, 7  ;;  %v610_v51 = vshll.u32 %v7077_v27, 16 }
  0xf8   :  { %4158 = vmatprep.mubr.bf16.mxu1 %v1713_v26  ;;  %v2752_v52 = vshrl.u32 %v7608_v44, 16  ;;  %v2754_v53 = vshll.u32 %v7608_v44, 16  ;;  %v604_v54 = vor.u32 %v602_v36, %v601_v45  ;;  %v605_v58 = vrot.slane %v601_v45, 4  ;;  %v7775_v38 = vld [vmem:[#allocation2 + $0xa4] ss:$0 sps:$4 sm:$0x11]  }
  0xf9   :  { %v2759_v60 = vshll.u32 %v7609_v47, 16  ;;  %v612_v55 = vor.u32 %v610_v51, %v609_v50  ;;  %v614_v42 = vrot.slane %v609_v50, 4  ;;  %v1729_v57 = vshll.u32 %v8483_v41, 16  ;;  %5811 = vmatpush1.bf16.msra.mxu1 %v7628_v19 }
  0xfa   :  { %v2756_v61 = vrot.slane %v2754_v53, 1  ;;  %v1135_v62 = vsel %vm8161_vm6, %v604_v54, %v1134_v40  ;;  %v1725_v3 = vsel %vm1665_vm9, %v1720_v48, %v1724_v49  ;;  %v1727_v7 = vshrl.u32 %v8483_v41, 16  ;;  %5812 = vmatprep.subr.bf16.mxu1 %v7987_v0 }
  0xfb   :  { %v2761_v1 = vrot.slane %v2759_v60, 1  ;;  %v613_v4 = vsel %vm8155_vm5, %v605_v58, %v612_v55  ;;  %1136 = vst [vmem:[#allocation2 + $0x90] sm:$0xf] %v1135_v62  ;;  %v1139_v5 = vsel %vm8167_vm7, %v614_v42, %v1138_v46  ;;  %v1731_v2 = vrot.slane %v1729_v57, 1  ;;  %v8518_v58 = vld [vmem:[#allocation2 + $0x60] sm:$0xff]  }
  0xfc   :  { %v2757_v6 = vor.u32 %v2756_v61, %v2752_v52  ;;  %1137 = vst [vmem:[#allocation2 + $0x94] sm:$0xf] %v613_v4  ;;  %1140 = vst [vmem:[#allocation2 + $0x98] sm:$0x1] %v1139_v5  ;;  %v1734_v8 = vshll.u32 %v7620_v59, 16  ;;  %v1741_v18 = vshll.u32 %v8495_v31, 16 }
  0xfd   :  { %v7612_v9 = vld [vmem:[#allocation2 + $0x84] sm:$0xff]   ;;  %v7613_v13 = vld [vmem:[#allocation2 + $0x8c] ss:$0 sps:$4 sm:$0x11]   ;;  %v1732_v11 = vor.u32 %v1731_v2, %v1727_v7  ;;  %v2790_v23 = vshll.u32 %v8501_v21, 16  ;;  %v1746_v27 = vshll.u32 %v7622_v33, 16 }
  0xfe   :  { %v2762_v20 = vsel %vm1665_vm9, %v2757_v6, %v2761_v1  ;;  %v2764_v10 = vshrl.u32 %v7612_v9, 16  ;;  %v2766_v14 = vshll.u32 %v7612_v9, 16  ;;  %v2771_v15 = vshll.u32 %v7613_v13, 16  ;;  %v8513_v52 = vld [vmem:[#allocation2 + $0xa8] sm:$0xff]   ;;  %v7633_v59 = vld [vmem:[#allocation6 + $0x1a8] sm:$0xff]  }
  0xff   :  { %4159 = vmatmul.mubr.bf16.gmra.mrb[52].mxu1 %v8455_v29  ;;  %3484 = vmatprep.mubr.bf16.mxu0 %v2762_v20  ;;  %v1736_v17 = vrot.slane %v1734_v8, 1  ;;  %v1739_v29 = vshrl.u32 %v8495_v31, 16  ;;  %v1743_v32 = vrot.slane %v1741_v18, 1  ;;  %v2788_v43 = vshrl.u32 %v8501_v21, 16  ;;  %v8526_v8 = vld [vmem:[#allocation2 + $0xb4] sm:$0xff]  }
 0x100   :  { %4166 = vmatprep.mubr.bf16.mxu1 %v1725_v3  ;;  %3485 = vmatmul.mubr.bf16.gmra.mrb[36].mxu0 %v7608_v44  ;;  %v2768_v12 = vrot.slane %v2766_v14, 1  ;;  %v2773_v24 = vrot.slane %v2771_v15, 1  ;;  %v2792_v37 = vrot.slane %v2790_v23, 1  ;;  %v2795_v39 = vshll.u32 %v7775_v38, 16  ;;  %v7638_v14 = vld [vmem:[#allocation6 + $0x1b0] sm:$0xff]  }
 0x101   :  { %v1737_v30 = vsel %vm1665_vm9, %v1732_v11, %v1736_v17  ;;  %v7625_v44 = vld [vmem:[#allocation2 + $0x5c] ss:$0 sps:$4 sm:$0x11]   ;;  %v1744_v46 = vor.u32 %v1743_v32, %v1739_v29  ;;  %v1748_v47 = vrot.slane %v1746_v27, 1  ;;  %v1753_v48 = vshll.u32 %v8505_v22, 16  ;;  %5813 = vmatpush1.bf16.msra.mxu1 %v7633_v59  ;;  %v8539_v27 = vld [vmem:[#allocation2 + $0xc0] sm:$0xff]  }
 0x102   :  { %v2769_v25 = vor.u32 %v2768_v12, %v2764_v10  ;;  %v2793_v50 = vor.u32 %v2792_v37, %v2788_v43  ;;  %v2797_v51 = vrot.slane %v2795_v39, 1  ;;  %v1751_v54 = vshrl.u32 %v8505_v22, 16  ;;  %v7777_v61 = vld [vmem:[#allocation2 + $0xb0] ss:$0 sps:$4 sm:$0x11]   ;;  %5814 = vmatprep.subr.bf16.mxu1 %v7987_v0 }
 0x103   :  { %v7617_v16 = vld [vmem:[#allocation2 + $0x90] sm:$0xff]   ;;  %v7618_v28 = vld [vmem:[#allocation2 + $0x98] ss:$0 sps:$4 sm:$0x11]   ;;  %v1749_v60 = vsel %vm1665_vm9, %v1744_v46, %v1748_v47  ;;  %v1755_v55 = vrot.slane %v1753_v48, 1  ;;  %v1758_v42 = vshll.u32 %v7625_v44, 16 }
 0x104   :  { %v2774_v34 = vsel %vm1665_vm9, %v2769_v25, %v2773_v24  ;;  %v2776_v26 = vshrl.u32 %v7617_v16, 16  ;;  %v2778_v35 = vshll.u32 %v7617_v16, 16  ;;  %v2783_v36 = vshll.u32 %v7618_v28, 16  ;;  %v7627_v3 = vld [vmem:[#allocation2 + $0x68] ss:$0 sps:$4 sm:$0x11]  }
 0x105   :  { %3492 = vmatprep.mubr.bf16.mxu0 %v2774_v34  ;;  %v2800_v57 = vshrl.u32 %v8513_v52, 16  ;;  %v2807_v62 = vshll.u32 %v7777_v61, 16  ;;  %v2798_v63 = vsel %vm1665_vm9, %v2793_v50, %v2797_v51  ;;  %v1756_v4 = vor.u32 %v1755_v55, %v1751_v54  ;;  %v8531_v10 = vld [vmem:[#allocation2 + $0x6c] sm:$0xff]   ;;  %v7779_v18 = vld [vmem:[#allocation2 + $0xbc] ss:$0 sps:$4 sm:$0x11]   ;;  %5815 = vmatpush1.bf16.msra.mxu1 %v7638_v14 }
 0x106   :  { %v2780_v40 = vrot.slane %v2778_v35, 1  ;;  %v2785_v45 = vrot.slane %v2783_v36, 1  ;;  %v1760_v5 = vrot.slane %v1758_v42, 1  ;;  %v1765_v6 = vshll.u32 %v8518_v58, 16  ;;  %5816 = vmatprep.subr.bf16.mxu1 %v7987_v0  ;;  %v7648_v46 = vld [vmem:[#allocation6 + $0x1c0] sm:$0xff]  }
 0x107   :  { %4167 = vmatmul.mubr.bf16.gmra.mrb[56].mxu1 %v8463_v56  ;;  %v2802_v56 = vshll.u32 %v8513_v52, 16  ;;  %v2809_v2 = vrot.slane %v2807_v62, 1  ;;  %v1763_v13 = vshrl.u32 %v8518_v58, 16  ;;  %v2812_v11 = vshrl.u32 %v8526_v8, 16 }
 0x108   :  { %4174 = vmatprep.mubr.bf16.mxu1 %v1737_v30  ;;  %3493 = vmatmul.mubr.bf16.gmra.mrb[40].mxu0 %v7612_v9  ;;  %v2781_v49 = vor.u32 %v2780_v40, %v2776_v26  ;;  %v2814_v9 = vshll.u32 %v8526_v8, 16  ;;  %v1761_v20 = vsel %vm1665_vm9, %v1756_v4, %v1760_v5  ;;  %v1767_v33 = vrot.slane %v1765_v6, 1  ;;  %v7630_v29 = vld [vmem:[#allocation2 + $0x74] ss:$0 sps:$4 sm:$0x11]   ;;  %v8544_v26 = vld [vmem:[#allocation2 + $0x78] sm:$0xff]  }
 0x109   :  { %v2804_v1 = vrot.slane %v2802_v56, 1  ;;  %v2819_v19 = vshll.u32 %v7779_v18, 16  ;;  %v1777_v24 = vshll.u32 %v8531_v10, 16  ;;  %v2826_v28 = vshll.u32 %v8539_v27, 16  ;;  %v8565_v4 = vld [vmem:[#allocation2 + $0xf0] sm:$0xff]   ;;  %v7653_v5 = vld [vmem:[#allocation6 + $0x1c8] sm:$0xff]  }
 0x10a   :  { %v2786_v53 = vsel %vm1665_vm9, %v2781_v49, %v2785_v45  ;;  %v2816_v17 = vrot.slane %v2814_v9, 1  ;;  %v1768_v23 = vor.u32 %v1767_v33, %v1763_v13  ;;  %v1775_v32 = vshrl.u32 %v8531_v10, 16  ;;  %v7781_v37 = vld [vmem:[#allocation2 + $0xc8] ss:$0 sps:$4 sm:$0x11]  }
 0x10b   :  { %3500 = vmatprep.mubr.bf16.mxu0 %v2786_v53  ;;  %v2805_v7 = vor.u32 %v2804_v1, %v2800_v57  ;;  %v1782_v34 = vshll.u32 %v7630_v29, 16  ;;  %v2824_v35 = vshrl.u32 %v8539_v27, 16  ;;  %v2828_v43 = vrot.slane %v2826_v28, 1  ;;  %v7632_v39 = vld [vmem:[#allocation2 + $0x80] ss:$0 sps:$4 sm:$0x11]  }
 0x10c   :  { %v2817_v25 = vor.u32 %v2816_v17, %v2812_v11  ;;  %v2831_v38 = vshll.u32 %v7781_v37, 16  ;;  %v1789_v45 = vshll.u32 %v8544_v26, 16  ;;  %v8552_v49 = vld [vmem:[#allocation2 + $0xe4] sm:$0xff]   ;;  %v1787_v51 = vshrl.u32 %v8544_v26, 16  ;;  %v8581_v29 = vld [vmem:[#allocation2 + $0x9c] sm:$0xff]  }
 0x10d   :  { %v2810_v15 = vsel %vm1665_vm9, %v2805_v7, %v2809_v2  ;;  %v1784_v44 = vrot.slane %v1782_v34, 1  ;;  %v2829_v47 = vor.u32 %v2828_v43, %v2824_v35  ;;  %v1794_v56 = vshll.u32 %v7632_v39, 16  ;;  %v8558_v53 = vld [vmem:[#allocation2 + $0x84] sm:$0xff]   ;;  %v7783_v55 = vld [vmem:[#allocation2 + $0xec] ss:$0 sps:$4 sm:$0x11]  }
 0x10e   :  { %v2833_v48 = vrot.slane %v2831_v38, 1  ;;  %v2836_v59 = vshrl.u32 %v8552_v49, 16  ;;  %v2843_v42 = vshll.u32 %v7783_v55, 16  ;;  %v7635_v57 = vld [vmem:[#allocation2 + $0x8c] ss:$0 sps:$4 sm:$0x11]  }
 0x10f   :  { %4175 = vmatmul.mubr.bf16.gmra.mrb[60].mxu1 %v8483_v41  ;;  %v1770_v41 = vshll.u32 %v7627_v3, 16  ;;  %v1796_v62 = vrot.slane %v1794_v56, 1  ;;  %v1799_v7 = vshrl.u32 %v8558_v53, 16  ;;  %v1806_v9 = vshll.u32 %v7635_v57, 16 }
 0x110   :  { %4182 = vmatprep.mubr.bf16.mxu1 %v1749_v60  ;;  %3501 = vmatmul.mubr.bf16.gmra.mrb[44].mxu0 %v7617_v16  ;;  %v2821_v16 = vrot.slane %v2819_v19, 1  ;;  %v2834_v54 = vsel %vm1665_vm9, %v2829_v47, %v2833_v48  ;;  %v2845_v3 = vrot.slane %v2843_v42, 1  ;;  %v7785_v33 = vld [vmem:[#allocation2 + $0xf8] ss:$0 sps:$4 sm:$0x11]   ;;  %v1823_v48 = vshrl.u32 %v8581_v29, 16 }
 0x111   :  { %3508 = vmatprep.mubr.bf16.mxu0 %v2798_v63  ;;  %v1772_v12 = vrot.slane %v1770_v41, 1  ;;  %v1801_v63 = vshll.u32 %v8558_v53, 16  ;;  %v8570_v41 = vld [vmem:[#allocation2 + $0x90] sm:$0xff]   ;;  %v2855_v14 = vshll.u32 %v7785_v33, 16  ;;  %v1808_v17 = vrot.slane %v1806_v9, 1 }
 0x112   :  { %v2822_v36 = vsel %vm1665_vm9, %v2817_v25, %v2821_v16  ;;  %v1813_v18 = vshll.u32 %v8570_v41, 16  ;;  %v1811_v25 = vshrl.u32 %v8570_v41, 16  ;;  %v7787_v35 = vld [vmem:[#allocation2 + $0x104] ss:$0 sps:$4 sm:$0x11]  }
 0x113   :  { %v1773_v30 = vsel %vm1665_vm9, %v1768_v23, %v1772_v12  ;;  %v1803_v2 = vrot.slane %v1801_v63, 1  ;;  %v2857_v12 = vrot.slane %v2855_v14, 1  ;;  %v8578_v23 = vld [vmem:[#allocation2 + $0xfc] sm:$0xff]   ;;  %v7640_v37 = vld [vmem:[#allocation2 + $0xa4] ss:$0 sps:$4 sm:$0x11]  }
 0x114   :  { %v1815_v16 = vrot.slane %v1813_v18, 1  ;;  %v7642_v42 = vld [vmem:[#allocation2 + $0xb0] ss:$0 sps:$4 sm:$0x11]   ;;  %v7663_v63 = vld [vmem:[#allocation6 + $0x1d8] sm:$0xff]  }
 0x115   :  { %v1804_v11 = vor.u32 %v1803_v2, %v1799_v7  ;;  %v7668_v18 = vld [vmem:[#allocation6 + $0x1e0] sm:$0xff]  }
 0x116   :  { %v1816_v39 = vor.u32 %v1815_v16, %v1811_v25 }
 0x117   :  { %4183 = vmatmul.mubr.bf16.gmra.mrb[64].mxu1 %v8495_v31  ;;  %v7643_v31 = vld [vmem:[#allocation6 + $0x1b8] sm:$0xff]  }
 0x118   :  { %4190 = vmatprep.mubr.bf16.mxu1 %v1761_v20  ;;  %3509 = vmatmul.mubr.bf16.gmra.mrb[48].mxu0 %v8501_v21  ;;  %v1779_v21 = vrot.slane %v1777_v24, 1  ;;  %v2848_v20 = vshrl.u32 %v8565_v4, 16  ;;  %v7658_v24 = vld [vmem:[#allocation6 + $0x1d0] sm:$0xff]  }
 0x119   :  { %3516 = vmatprep.mubr.bf16.mxu0 %v2810_v15  ;;  %5817 = vmatpush1.bf16.msra.mxu1 %v7643_v31  ;;  %v7637_v15 = vld [vmem:[#allocation2 + $0x98] ss:$0 sps:$4 sm:$0x11]   ;;  %v1809_v31 = vsel %vm1665_vm9, %v1804_v11, %v1808_v17 }
 0x11a   :  { %5818 = vmatprep.subr.bf16.mxu1 %v7987_v0  ;;  %v1780_v40 = vor.u32 %v1779_v21, %v1775_v32  ;;  %v2860_v21 = vshrl.u32 %v8578_v23, 16 }
 0x11c   :  { %v1785_v50 = vsel %vm1665_vm9, %v1780_v40, %v1784_v44 }
 0x11d   :  { %5819 = vmatpush1.bf16.msra.mxu1 %v7648_v46  ;;  %v8599_v46 = vld [vmem:[#allocation2 + $0x108] sm:$0xff]  }
 0x11e   :  { %5820 = vmatprep.subr.bf16.mxu1 %v7987_v0  ;;  %v2874_v47 = vshll.u32 %v8599_v46, 16 }
 0x11f   :  { %4191 = vmatmul.mubr.bf16.gmra.mrb[68].mxu1 %v8505_v22  ;;  %v2838_v22 = vshll.u32 %v8552_v49, 16 }
 0x120   :  { %4198 = vmatprep.mubr.bf16.mxu1 %v1773_v30  ;;  %3517 = vmatmul.mubr.bf16.gmra.mrb[52].mxu0 %v8513_v52  ;;  %v1791_v52 = vrot.slane %v1789_v45, 1 }
 0x121   :  { %3524 = vmatprep.mubr.bf16.mxu0 %v2822_v36  ;;  %v2840_v60 = vrot.slane %v2838_v22, 1  ;;  %5821 = vmatpush1.bf16.msra.mxu1 %v7653_v5  ;;  %v2867_v36 = vshll.u32 %v7787_v35, 16  ;;  %v8603_v22 = vld [vmem:[#allocation2 + $0xa8] sm:$0xff]  }
 0x122   :  { %v1792_v61 = vor.u32 %v1791_v52, %v1787_v51  ;;  %5822 = vmatprep.subr.bf16.mxu1 %v7987_v0  ;;  %v1830_v52 = vshll.u32 %v7640_v37, 16  ;;  %v1835_v2 = vshrl.u32 %v8603_v22, 16 }
 0x123   :  { %v2841_v1 = vor.u32 %v2840_v60, %v2836_v59  ;;  %v2869_v45 = vrot.slane %v2867_v36, 1  ;;  %v2876_v59 = vrot.slane %v2874_v47, 1  ;;  %v7789_v60 = vld [vmem:[#allocation2 + $0x110] ss:$0 sps:$4 sm:$0x11]  }
 0x124   :  { %v1797_v6 = vsel %vm1665_vm9, %v1792_v61, %v1796_v62  ;;  %v2879_v55 = vshll.u32 %v7789_v60, 16  ;;  %v1837_v61 = vshll.u32 %v8603_v22, 16  ;;  %v7647_v47 = vld [vmem:[#allocation2 + $0xe0] ss:$0 sps:$4 sm:$0x11]  }
 0x125   :  { %5823 = vmatpush1.bf16.msra.mxu1 %v7658_v24 }
 0x126   :  { %5824 = vmatprep.subr.bf16.mxu1 %v7987_v0  ;;  %v2881_v5 = vrot.slane %v2879_v55, 1  ;;  %v1839_v9 = vrot.slane %v1837_v61, 1  ;;  %v1866_v61 = vshll.u32 %v7647_v47, 16 }
 0x127   :  { %4199 = vmatmul.mubr.bf16.gmra.mrb[72].mxu1 %v8518_v58  ;;  %v2850_v58 = vshll.u32 %v8565_v4, 16 }
 0x128   :  { %4206 = vmatprep.mubr.bf16.mxu1 %v1785_v50  ;;  %3525 = vmatmul.mubr.bf16.gmra.mrb[56].mxu0 %v8526_v8  ;;  %v2846_v8 = vsel %vm1665_vm9, %v2841_v1, %v2845_v3  ;;  %v1832_v3 = vrot.slane %v1830_v52, 1 }
 0x129   :  { %3532 = vmatprep.mubr.bf16.mxu0 %v2834_v54  ;;  %v2852_v13 = vrot.slane %v2850_v58, 1  ;;  %5825 = vmatpush1.bf16.msra.mxu1 %v7663_v63  ;;  %v8662_v63 = vld [vmem:[#allocation2 + $0xe4] sm:$0xff]  }
 0x12a   :  { %5826 = vmatprep.subr.bf16.mxu1 %v7987_v0 }
 0x12b   :  { %v2853_v19 = vor.u32 %v2852_v13, %v2848_v20  ;;  %v8624_v20 = vld [vmem:[#allocation2 + $0xb4] sm:$0xff]  }
 0x12c   :  { %v1849_v24 = vshll.u32 %v8624_v20, 16 }
 0x12d   :  { %v2858_v32 = vsel %vm1665_vm9, %v2853_v19, %v2857_v12  ;;  %v1840_v19 = vor.u32 %v1839_v9, %v1835_v2  ;;  %5827 = vmatpush1.bf16.msra.mxu1 %v7668_v18  ;;  %v8677_v18 = vld [vmem:[#allocation2 + $0x138] sm:$0xff]  }
 0x12e   :  { %5828 = vmatprep.subr.bf16.mxu1 %v7987_v0  ;;  %v1851_v36 = vrot.slane %v1849_v24, 1 }
 0x12f   :  { %4207 = vmatmul.mubr.bf16.gmra.mrb[76].mxu1 %v8531_v10  ;;  %v2862_v10 = vshll.u32 %v8578_v23, 16 }
 0x130   :  { %4214 = vmatprep.mubr.bf16.mxu1 %v1797_v6  ;;  %3533 = vmatmul.mubr.bf16.gmra.mrb[60].mxu0 %v8539_v27  ;;  %v1818_v27 = vshll.u32 %v7637_v15, 16  ;;  %v8619_v6 = vld [vmem:[#allocation2 + $0x114] sm:$0xff]   ;;  %v7791_v15 = vld [vmem:[#allocation2 + $0x11c] ss:$0 sps:$4 sm:$0x11]  }
 0x131   :  { %3540 = vmatprep.mubr.bf16.mxu0 %v2846_v8  ;;  %v2864_v34 = vrot.slane %v2862_v10, 1  ;;  %v2886_v7 = vshll.u32 %v8619_v6, 16  ;;  %v1842_v8 = vshll.u32 %v7642_v42, 16  ;;  %v2884_v33 = vshrl.u32 %v8619_v6, 16 }
 0x132   :  { %v1820_v40 = vrot.slane %v1818_v27, 1  ;;  %v2891_v11 = vshll.u32 %v7791_v15, 16  ;;  %v7645_v10 = vld [vmem:[#allocation2 + $0xbc] ss:$0 sps:$4 sm:$0x11]   ;;  %v8638_v27 = vld [vmem:[#allocation2 + $0x120] sm:$0xff]  }
 0x133   :  { %v2865_v44 = vor.u32 %v2864_v34, %v2860_v21  ;;  %v2888_v14 = vrot.slane %v2886_v7, 1  ;;  %v1844_v12 = vrot.slane %v1842_v8, 1  ;;  %v8645_v34 = vld [vmem:[#allocation2 + $0xd8] sm:$0xff]   ;;  %v1854_v37 = vshll.u32 %v7645_v10, 16 }
 0x134   :  { %v1821_v50 = vsel %vm1665_vm9, %v1816_v39, %v1820_v40  ;;  %v2893_v16 = vrot.slane %v2891_v11, 1  ;;  %v2896_v39 = vshrl.u32 %v8638_v27, 16  ;;  %v7793_v40 = vld [vmem:[#allocation2 + $0x128] ss:$0 sps:$4 sm:$0x11]   ;;  %v1861_v52 = vshll.u32 %v8645_v34, 16 }
 0x135   :  { %v2870_v54 = vsel %vm1665_vm9, %v2865_v44, %v2869_v45  ;;  %v2889_v25 = vor.u32 %v2888_v14, %v2884_v33  ;;  %v1845_v35 = vsel %vm1665_vm9, %v1840_v19, %v1844_v12  ;;  %v1873_v33 = vshll.u32 %v8662_v63, 16  ;;  %v7682_v12 = vld [vmem:[#allocation6 + $0x1f0] sm:$0xff]  }
 0x136   :  { %v1863_v42 = vrot.slane %v1861_v52, 1  ;;  %v2922_v19 = vshll.u32 %v8677_v18, 16  ;;  %v1871_v10 = vshrl.u32 %v8662_v63, 16 }
 0x137   :  { %4215 = vmatmul.mubr.bf16.gmra.mrb[80].mxu1 %v8544_v26  ;;  %v1825_v26 = vshll.u32 %v8581_v29, 16  ;;  %v2894_v44 = vsel %vm1665_vm9, %v2889_v25, %v2893_v16  ;;  %v1875_v25 = vrot.slane %v1873_v33, 1 }
 0x138   :  { %4222 = vmatprep.mubr.bf16.mxu1 %v1809_v31  ;;  %3541 = vmatmul.mubr.bf16.gmra.mrb[64].mxu0 %v8552_v49  ;;  %v2872_v49 = vshrl.u32 %v8599_v46, 16 }
 0x139   :  { %3548 = vmatprep.mubr.bf16.mxu0 %v2858_v32  ;;  %v1827_v51 = vrot.slane %v1825_v26, 1  ;;  %v2898_v32 = vshll.u32 %v8638_v27, 16  ;;  %v2903_v26 = vshll.u32 %v7793_v40, 16 }
 0x13b   :  { %v1828_v1 = vor.u32 %v1827_v51, %v1823_v48  ;;  %v2900_v45 = vrot.slane %v2898_v32, 1  ;;  %v8651_v48 = vld [vmem:[#allocation6 + $0x80] sm:$0xff]   ;;  %v1856_v51 = vrot.slane %v1854_v37, 1  ;;  %v2920_v32 = vshrl.u32 %v8677_v18, 16 }
 0x13c   :  { %7318 = vmatprep.subr.bf16.mxu0 %v8651_v48 }
 0x13f   :  { %4223 = vmatmul.mubr.bf16.gmra.mrb[84].mxu1 %v8558_v53  ;;  %v2877_v53 = vor.u32 %v2876_v59, %v2872_v49  ;;  %v7674_v49 = vld [vmem:[#allocation6 + $0x1e8] sm:$0xff]   ;;  %v2905_v59 = vrot.slane %v2903_v26, 1  ;;  %v1876_v26 = vor.u32 %v1875_v25, %v1871_v10  ;;  %v8714_v10 = vld [vmem:[#allocation2 + $0x150] sm:$0xff]   ;;  %v8717_v25 = vld [vmem:[#allocation2 + $0x108] sm:$0xff]  }
 0x140   :  { %4230 = vmatprep.mubr.bf16.mxu1 %v1821_v50  ;;  %3549 = vmatmul.mubr.bf16.gmra.mrb[68].mxu0 %v8565_v4  ;;  %v1833_v4 = vsel %vm1665_vm9, %v1828_v1, %v1832_v3  ;;  %v7795_v1 = vld [vmem:[#allocation2 + $0x134] ss:$0 sps:$4 sm:$0x11]  }
 0x141   :  { %v8585_v28 = vpop.f32.mrb[0].mxu1  ;;  %3556 = vmatprep.mubr.bf16.mxu0 %v2870_v54  ;;  %v2882_v13 = vsel %vm1665_vm9, %v2877_v53, %v2881_v5  ;;  %v2901_v54 = vor.u32 %v2900_v45, %v2896_v39  ;;  %5829 = vmatpush1.bf16.msra.mxu1 %v7674_v49  ;;  %v2915_v3 = vshll.u32 %v7795_v1, 16  ;;  %v7652_v39 = vld [vmem:[#allocation2 + $0xf8] ss:$0 sps:$4 sm:$0x11]  }
 0x142   :  { %v8587_v30 = vpop.f32.mrb[1].mxu1  ;;  %5830 = vmatprep.subr.bf16.mxu1 %v7987_v0 }
 0x143   :  { %v8592_v43 = vpop.f32.mrb[2].mxu1  ;;  %v2906_v53 = vsel %vm1665_vm9, %v2901_v54, %v2905_v59 }
 0x144   :  { %v8595_v38 = vpop.f32.mrb[3].mxu1 }
 0x145   :  { %5831 = vmatpush1.bf16.msra.mxu1 %v7682_v12 }
 0x146   :  { %5832 = vmatprep.subr.bf16.mxu1 %v7987_v0  ;;  %v8692_v0 = vld [vmem:[#allocation2 + $0x144] sm:$0xff]  }
 0x147   :  { %4231 = vmatmul.mubr.bf16.gmra.mrb[88].mxu1 %v8570_v41 }
 0x148   :  { %4238 = vmatprep.mubr.bf16.mxu1 %v1833_v4  ;;  %3557 = vmatmul.mubr.bf16.gmra.mrb[72].mxu0 %v8578_v23  ;;  %v1847_v23 = vshrl.u32 %v8624_v20, 16  ;;  %v1868_v4 = vrot.slane %v1866_v61, 1  ;;  %v2932_v61 = vshrl.u32 %v8692_v0, 16 }
 0x149   :  { %v8607_v56 = vpop.f32.mrb[4].mxu1  ;;  %3564 = vmatprep.mubr.bf16.mxu0 %v2882_v13  ;;  %v7650_v13 = vld [vmem:[#allocation2 + $0xec] ss:$0 sps:$4 sm:$0x11]  }
 0x14a   :  { %v8611_v57 = vpop.f32.mrb[5].mxu1  ;;  %v1852_v50 = vor.u32 %v1851_v36, %v1847_v23  ;;  %v1878_v16 = vshll.u32 %v7650_v13, 16  ;;  %v7797_v36 = vld [vmem:[#allocation2 + $0x140] ss:$0 sps:$4 sm:$0x11]  }
 0x14b   :  { %v8614_v62 = vpop.f32.mrb[6].mxu1  ;;  %v2927_v37 = vshll.u32 %v7797_v36, 16 }
 0x14c   :  { %v8617_v58 = vpop.f32.mrb[7].mxu1  ;;  %v1857_v55 = vsel %vm1665_vm9, %v1852_v50, %v1856_v51  ;;  %v7689_v51 = vld [vmem:[#allocation6 + $0x1f8] sm:$0xff]  }
 0x14d   :  { %v2929_v49 = vrot.slane %v2927_v37, 1  ;;  %5833 = vmatpush1.bf16.msra.mxu1 %v7689_v51  ;;  %v7801_v37 = vld [vmem:[#allocation2 + $0x158] ss:$0 sps:$4 sm:$0x11]  }
 0x14e   :  { %v7657_v51 = vld [vmem:[#allocation2 + $0x110] ss:$0 sps:$4 sm:$0x11]  }
 0x14f   :  { %4239 = vmatmul.mubr.bf16.gmra.mrb[92].mxu1 %v8581_v29  ;;  %v8656_v29 = vld [vmem:[#allocation2 + $0x12c] sm:$0xff]  }
 0x150   :  { %4246 = vmatprep.mubr.bf16.mxu1 %v1845_v35  ;;  %3565 = vmatmul.mubr.bf16.gmra.mrb[76].mxu0 %v8599_v46  ;;  %v2910_v60 = vshll.u32 %v8656_v29, 16  ;;  %v1859_v46 = vshrl.u32 %v8645_v34, 16  ;;  %v2908_v5 = vshrl.u32 %v8656_v29, 16  ;;  %v2924_v35 = vrot.slane %v2922_v19, 1 }
 0x151   :  { %v8630_v17 = vpop.f32.mrb[8].mxu1  ;;  %3572 = vmatprep.mubr.bf16.mxu0 %v2894_v44  ;;  %v1880_v44 = vrot.slane %v1878_v16, 1 }
 0x152   :  { %v8634_v31 = vpop.f32.mrb[9].mxu1  ;;  %v2912_v7 = vrot.slane %v2910_v60, 1  ;;  %v1864_v8 = vor.u32 %v1863_v42, %v1859_v46  ;;  %v2925_v52 = vor.u32 %v2924_v35, %v2920_v32  ;;  %v1890_v60 = vshll.u32 %v7652_v39, 16 }
 0x153   :  { %v8636_v41 = vpop.f32.mrb[10].mxu1  ;;  %v2944_v35 = vshrl.u32 %v8714_v10, 16  ;;  %v2951_v39 = vshll.u32 %v7801_v37, 16  ;;  %v8753_v37 = vld [vmem:[#allocation2 + $0x120] sm:$0xff]  }
 0x154   :  { %v8641_v21 = vpop.f32.mrb[11].mxu1  ;;  %v2913_v11 = vor.u32 %v2912_v7, %v2908_v5  ;;  %v1869_v24 = vsel %vm1665_vm9, %v1864_v8, %v1868_v4  ;;  %v2930_v7 = vsel %vm1665_vm9, %v2925_v52, %v2929_v49  ;;  %v7655_v8 = vld [vmem:[#allocation2 + $0x104] ss:$0 sps:$4 sm:$0x11]  }
 0x157   :  { %4247 = vmatmul.mubr.bf16.gmra.mrb[96].mxu1 %v8603_v22  ;;  %v2917_v22 = vrot.slane %v2915_v3, 1  ;;  %v7799_v3 = vld [vmem:[#allocation2 + $0x14c] ss:$0 sps:$4 sm:$0x11]  }
 0x158   :  { %4254 = vmatprep.mubr.bf16.mxu1 %v1857_v55  ;;  %3573 = vmatmul.mubr.bf16.gmra.mrb[80].mxu0 %v8619_v6  ;;  %v8681_v6 = vld [vmem:[#allocation2 + $0xf0] sm:$0xff]   ;;  %v1881_v55 = vsel %vm1665_vm9, %v1876_v26, %v1880_v44 }
 0x159   :  { %3580 = vmatprep.mubr.bf16.mxu0 %v2906_v53  ;;  %v2918_v23 = vsel %vm1665_vm9, %v2913_v11, %v2917_v22  ;;  %v1885_v45 = vshll.u32 %v8681_v6, 16  ;;  %v1883_v59 = vshrl.u32 %v8681_v6, 16  ;;  %v2939_v53 = vshll.u32 %v7799_v3, 16  ;;  %v8735_v3 = vld [vmem:[#allocation2 + $0x114] sm:$0xff]  }
 0x15a   :  { %v1892_v22 = vrot.slane %v1890_v60, 1 }
 0x15b   :  { %v8667_v2 = vpop.f32.mrb[12].mxu1  ;;  %v1887_v46 = vrot.slane %v1885_v45, 1  ;;  %v2941_v12 = vrot.slane %v2939_v53, 1  ;;  %v1909_v45 = vshll.u32 %v8717_v25, 16 }
 0x15c   :  { %v8669_v9 = vpop.f32.mrb[13].mxu1 }
 0x15d   :  { %v8673_v14 = vpop.f32.mrb[14].mxu1  ;;  %v1888_v33 = vor.u32 %v1887_v46, %v1883_v59  ;;  %v8730_v59 = vld [vmem:[#allocation2 + $0x15c] sm:$0xff]  }
 0x15e   :  { %v8675_v15 = vpop.f32.mrb[15].mxu1  ;;  %v2958_v60 = vshll.u32 %v8730_v59, 16  ;;  %v2956_v53 = vshrl.u32 %v8730_v59, 16 }
 0x15f   :  { %4255 = vmatmul.mubr.bf16.gmra.mrb[100].mxu1 %v8624_v20  ;;  %v2934_v20 = vshll.u32 %v8692_v0, 16  ;;  %v1893_v16 = vsel %vm1665_vm9, %v1888_v33, %v1892_v22  ;;  %v7660_v33 = vld [vmem:[#allocation2 + $0x11c] ss:$0 sps:$4 sm:$0x11]  }
 0x160   :  { %4262 = vmatprep.mubr.bf16.mxu1 %v1869_v24  ;;  %3581 = vmatmul.mubr.bf16.gmra.mrb[84].mxu0 %v8638_v27  ;;  %v8698_v27 = vld [vmem:[#allocation2 + $0xfc] sm:$0xff]   ;;  %v1902_v24 = vshll.u32 %v7655_v8, 16 }
 0x161   :  { %3588 = vmatprep.mubr.bf16.mxu0 %v2918_v23  ;;  %v2936_v1 = vrot.slane %v2934_v20, 1  ;;  %v1897_v11 = vshll.u32 %v8698_v27, 16  ;;  %v1895_v32 = vshrl.u32 %v8698_v27, 16 }
 0x162   :  { %v1904_v44 = vrot.slane %v1902_v24, 1 }
 0x163   :  { %v2937_v19 = vor.u32 %v2936_v1, %v2932_v61  ;;  %v1899_v23 = vrot.slane %v1897_v11, 1  ;;  %v1911_v61 = vrot.slane %v1909_v45, 1  ;;  %v1914_v1 = vshll.u32 %v7657_v51, 16 }
 0x164   :  { %v8688_v40 = vpop.f32.mrb[0].mxu0 }
 0x165   :  { %10250 = vst [vmem:[#allocation12_spill] sm:$0xff] %v8688_v40  ;;  %v3416_v47 = vpop.f32.mrb[1].mxu0  ;;  %v1900_v20 = vor.u32 %v1899_v23, %v1895_v32  ;;  %v1921_v32 = vshll.u32 %v8735_v3, 16 }
 0x166   :  { %v8695_v50 = vpop.f32.mrb[2].mxu0 }
 0x167   :  { %10251 = vst [vmem:[#allocation13_spill] sm:$0xff] %v8695_v50  ;;  %v3419_v54 = vpop.f32.mrb[3].mxu0  ;;  %4263 = vmatmul.mubr.bf16.gmra.mrb[104].mxu1 %v8645_v34  ;;  %v2946_v34 = vshll.u32 %v8714_v10, 16  ;;  %v1905_v46 = vsel %vm1665_vm9, %v1900_v20, %v1904_v44  ;;  %v1923_v45 = vrot.slane %v1921_v32, 1 }
 0x168   :  { %v8701_v42 = vpop.f32.mrb[16].mxu1  ;;  %4270 = vmatprep.mubr.bf16.mxu1 %v1881_v55  ;;  %3589 = vmatmul.mubr.bf16.gmra.mrb[88].mxu0 %v8656_v29  ;;  %v2942_v29 = vsel %vm1665_vm9, %v2937_v19, %v2941_v12  ;;  %v2953_v54 = vrot.slane %v2951_v39, 1  ;;  %v1907_v55 = vshrl.u32 %v8717_v25, 16  ;;  %v2960_v19 = vrot.slane %v2958_v60, 1 }
 0x169   :  { %v8704_v5 = vpop.f32.mrb[17].mxu1  ;;  %3596 = vmatprep.mubr.bf16.mxu0 %v2930_v7  ;;  %v2948_v36 = vrot.slane %v2946_v34, 1  ;;  %v7803_v7 = vld [vmem:[#allocation2 + $0x164] ss:$0 sps:$4 sm:$0x11]  }
 0x16a   :  { %v8708_v4 = vpop.f32.mrb[18].mxu1  ;;  %v2963_v8 = vshll.u32 %v7803_v7, 16  ;;  %v1912_v24 = vor.u32 %v1911_v61, %v1907_v55  ;;  %v8764_v55 = vld [vmem:[#allocation2 + $0x174] sm:$0xff]   ;;  %v7662_v61 = vld [vmem:[#allocation2 + $0x128] ss:$0 sps:$4 sm:$0x11]  }
 0x16b   :  { %v8710_v13 = vpop.f32.mrb[19].mxu1  ;;  %v2949_v49 = vor.u32 %v2948_v36, %v2944_v35  ;;  %v2961_v35 = vor.u32 %v2960_v19, %v2956_v53  ;;  %v1926_v36 = vshll.u32 %v7660_v33, 16  ;;  %v1933_v7 = vshll.u32 %v8753_v37, 16 }
 0x16c   :  { %v2965_v23 = vrot.slane %v2963_v8, 1 }
 0x16d   :  { %v2954_v11 = vsel %vm1665_vm9, %v2949_v49, %v2953_v54  ;;  %v1928_v53 = vrot.slane %v1926_v36, 1  ;;  %v1935_v36 = vrot.slane %v1933_v7, 1 }
 0x16e   :  { %v2966_v60 = vsel %vm1665_vm9, %v2961_v35, %v2965_v23  ;;  %v1931_v23 = vshrl.u32 %v8753_v37, 16 }
 0x16f   :  { %4271 = vmatmul.mubr.bf16.gmra.mrb[108].mxu1 %v8662_v63 }
 0x170   :  { %4278 = vmatprep.mubr.bf16.mxu1 %v1893_v16  ;;  %3597 = vmatmul.mubr.bf16.gmra.mrb[92].mxu0 %v8677_v18  ;;  %v1916_v16 = vrot.slane %v1914_v1, 1 }
 0x171   :  { %3604 = vmatprep.mubr.bf16.mxu0 %v2942_v29  ;;  %v8750_v29 = vld [vmem:[#allocation2 + $0x168] sm:$0xff]  }
 0x172   :  { %v8724_v26 = vpop.f32.mrb[4].mxu0  ;;  %v1917_v44 = vsel %vm1665_vm9, %v1912_v24, %v1916_v16  ;;  %v2968_v20 = vshrl.u32 %v8750_v29, 16  ;;  %v7807_v16 = vld [vmem:[#allocation2 + $0x17c] ss:$0 sps:$4 sm:$0x11]  }
 0x173   :  { %10252 = vst [vmem:[#allocation14_spill] sm:$0xff] %v8724_v26  ;;  %v3424_v47 = vpop.f32.mrb[5].mxu0  ;;  %v2987_v32 = vshll.u32 %v7807_v16, 16 }
 0x174   :  { %v8728_v52 = vpop.f32.mrb[6].mxu0 }
 0x175   :  { %10253 = vst [vmem:[#allocation15_spill] sm:$0xff] %v8728_v52  ;;  %v3427_v63 = vpop.f32.mrb[7].mxu0 }
 0x176   :  { %v7805_v63 = vld [vmem:[#allocation2 + $0x170] ss:$0 sps:$4 sm:$0x11]  }
 0x177   :  { %4279 = vmatmul.mubr.bf16.gmra.mrb[112].mxu1 %v8681_v6  ;;  %v2970_v6 = vshll.u32 %v8750_v29, 16  ;;  %v2975_v49 = vshll.u32 %v7805_v63, 16 }
 0x178   :  { %v8737_v18 = vpop.f32.mrb[20].mxu1  ;;  %4286 = vmatprep.mubr.bf16.mxu1 %v1905_v46  ;;  %3605 = vmatmul.mubr.bf16.gmra.mrb[96].mxu0 %v8692_v0  ;;  %v1919_v0 = vshrl.u32 %v8735_v3, 16  ;;  %v2982_v46 = vshll.u32 %v8764_v55, 16 }
 0x179   :  { %v8740_v22 = vpop.f32.mrb[21].mxu1  ;;  %3612 = vmatprep.mubr.bf16.mxu0 %v2954_v11  ;;  %v2972_v51 = vrot.slane %v2970_v6, 1  ;;  %v2977_v33 = vrot.slane %v2975_v49, 1 }
 0x17a   :  { %v8744_v12 = vpop.f32.mrb[22].mxu1  ;;  %v1924_v8 = vor.u32 %v1923_v45, %v1919_v0  ;;  %v2984_v24 = vrot.slane %v2982_v46, 1  ;;  %v8778_v0 = vld [vmem:[#allocation2 + $0x12c] sm:$0xff]   ;;  %v8786_v46 = vld [vmem:[#allocation2 + $0x180] sm:$0xff]  }
 0x17b   :  { %v8746_v34 = vpop.f32.mrb[23].mxu1  ;;  %v2973_v11 = vor.u32 %v2972_v51, %v2968_v20  ;;  %v1936_v51 = vor.u32 %v1935_v36, %v1931_v23  ;;  %v1945_v49 = vshll.u32 %v8778_v0, 16 }
 0x17c   :  { %v1929_v35 = vsel %vm1665_vm9, %v1924_v8, %v1928_v53  ;;  %v1943_v53 = vshrl.u32 %v8778_v0, 16 }
 0x17d   :  { %v2978_v20 = vsel %vm1665_vm9, %v2973_v11, %v2977_v33  ;;  %v1947_v8 = vrot.slane %v1945_v49, 1  ;;  %v8791_v33 = vld [vmem:[#allocation2 + $0x138] sm:$0xff]   ;;  %v7809_v11 = vld [vmem:[#allocation2 + $0x188] ss:$0 sps:$4 sm:$0x11]   ;;  %v8802_v49 = vld [vmem:[#allocation2 + $0x18c] sm:$0xff]  }
 0x17e   :  { %v2999_v16 = vshll.u32 %v7809_v11, 16 }
 0x17f   :  { %4287 = vmatmul.mubr.bf16.gmra.mrb[116].mxu1 %v8698_v27  ;;  %v2980_v27 = vshrl.u32 %v8764_v55, 16 }
 0x180   :  { %v8755_v39 = vpop.f32.mrb[8].mxu0  ;;  %4294 = vmatprep.mubr.bf16.mxu1 %v1917_v44  ;;  %3613 = vmatmul.mubr.bf16.gmra.mrb[100].mxu0 %v8714_v10  ;;  %v1938_v44 = vshll.u32 %v7662_v61, 16  ;;  %v2994_v61 = vshll.u32 %v8786_v46, 16 }
 0x181   :  { %10254 = vst [vmem:[#allocation16_spill] sm:$0xff] %v8755_v39  ;;  %v3432_v47 = vpop.f32.mrb[9].mxu0  ;;  %3620 = vmatprep.mubr.bf16.mxu0 %v2966_v60  ;;  %v2989_v60 = vrot.slane %v2987_v32, 1 }
 0x182   :  { %v8760_v54 = vpop.f32.mrb[10].mxu0  ;;  %v7665_v47 = vld [vmem:[#allocation2 + $0x134] ss:$0 sps:$4 sm:$0x11]   ;;  %v1940_v63 = vrot.slane %v1938_v44, 1 }
 0x183   :  { %10255 = vst [vmem:[#allocation17_spill] sm:$0xff] %v8760_v54  ;;  %v3435_v1 = vpop.f32.mrb[11].mxu0  ;;  %v1950_v7 = vshll.u32 %v7665_v47, 16  ;;  %v1948_v47 = vor.u32 %v1947_v8, %v1943_v53  ;;  %v8822_v54 = vld [vmem:[#allocation2 + $0x198] sm:$0xff]  }
 0x184   :  { %v2985_v1 = vor.u32 %v2984_v24, %v2980_v27  ;;  %v7667_v24 = vld [vmem:[#allocation2 + $0x140] ss:$0 sps:$4 sm:$0x11]  }
 0x185   :  { %v8770_v19 = vpop.f32.mrb[24].mxu1  ;;  %v1952_v36 = vrot.slane %v1950_v7, 1  ;;  %v1955_v7 = vshrl.u32 %v8791_v33, 16  ;;  %v1962_v8 = vshll.u32 %v7667_v24, 16 }
 0x186   :  { %v8773_v6 = vpop.f32.mrb[25].mxu1  ;;  %v2990_v32 = vsel %vm1665_vm9, %v2985_v1, %v2989_v60  ;;  %v7811_v1 = vld [vmem:[#allocation2 + $0x194] ss:$0 sps:$4 sm:$0x11]  }
 0x187   :  { %v8776_v10 = vpop.f32.mrb[26].mxu1  ;;  %4295 = vmatmul.mubr.bf16.gmra.mrb[120].mxu1 %v8717_v25  ;;  %v1941_v25 = vsel %vm1665_vm9, %v1936_v51, %v1940_v63  ;;  %v1957_v51 = vshll.u32 %v8791_v33, 16  ;;  %v3001_v63 = vrot.slane %v2999_v16, 1  ;;  %v1953_v11 = vsel %vm1665_vm9, %v1948_v47, %v1952_v36 }
 0x188   :  { %v8780_v45 = vpop.f32.mrb[27].mxu1  ;;  %4302 = vmatprep.mubr.bf16.mxu1 %v1929_v35  ;;  %3621 = vmatmul.mubr.bf16.gmra.mrb[104].mxu0 %v8730_v59  ;;  %v2992_v59 = vshrl.u32 %v8786_v46, 16  ;;  %v2996_v35 = vrot.slane %v2994_v61, 1  ;;  %v3004_v61 = vshrl.u32 %v8802_v49, 16  ;;  %v1964_v47 = vrot.slane %v1962_v8, 1 }
 0x189   :  { %3628 = vmatprep.mubr.bf16.mxu0 %v2978_v20  ;;  %v1959_v53 = vrot.slane %v1957_v51, 1  ;;  %v3016_v8 = vshrl.u32 %v8822_v54, 16 }
 0x18a   :  { %v2997_v60 = vor.u32 %v2996_v35, %v2992_v59 }
 0x18b   :  { %v1960_v36 = vor.u32 %v1959_v53, %v1955_v7 }
 0x18c   :  { %v3002_v59 = vsel %vm1665_vm9, %v2997_v60, %v3001_v63 }
 0x18f   :  { %4303 = vmatmul.mubr.bf16.gmra.mrb[124].mxu1 %v8735_v3  ;;  %v3006_v3 = vshll.u32 %v8802_v49, 16 }
 0x190   :  { %v8794_v23 = vpop.f32.mrb[12].mxu0  ;;  %4310 = vmatprep.mubr.bf16.mxu1 %v1941_v25  ;;  %3629 = vmatmul.mubr.bf16.gmra.mrb[108].mxu0 %v8750_v29  ;;  %v3011_v25 = vshll.u32 %v7811_v1, 16 }
 0x191   :  { %10256 = vst [vmem:[#allocation18_spill] sm:$0xff] %v8794_v23  ;;  %v3440_v27 = vpop.f32.mrb[13].mxu0  ;;  %3636 = vmatprep.mubr.bf16.mxu0 %v2990_v32  ;;  %v7670_v32 = vld [vmem:[#allocation2 + $0x14c] ss:$0 sps:$4 sm:$0x11]  }
 0x192   :  { %v8798_v44 = vpop.f32.mrb[14].mxu0  ;;  %v8810_v27 = vld [vmem:[#allocation2 + $0x144] sm:$0xff]   ;;  %v3013_v51 = vrot.slane %v3011_v25, 1  ;;  %v1974_v60 = vshll.u32 %v7670_v32, 16 }
 0x193   :  { %10257 = vst [vmem:[#allocation19_spill] sm:$0xff] %v8798_v44  ;;  %v3443_v20 = vpop.f32.mrb[15].mxu0  ;;  %v1969_v24 = vshll.u32 %v8810_v27, 16  ;;  %v8825_v44 = vld [vmem:[#allocation2 + $0x150] sm:$0xff]  }
 0x194   :  { %v3008_v20 = vrot.slane %v3006_v3, 1  ;;  %v1965_v3 = vsel %vm1665_vm9, %v1960_v36, %v1964_v47  ;;  %v7813_v25 = vld [vmem:[#allocation2 + $0x1a0] ss:$0 sps:$4 sm:$0x11]   ;;  %v1981_v32 = vshll.u32 %v8825_v44, 16  ;;  %v1976_v36 = vrot.slane %v1974_v60, 1 }
 0x195   :  { %v1971_v7 = vrot.slane %v1969_v24, 1  ;;  %v3023_v39 = vshll.u32 %v7813_v25, 16 }
 0x196   :  { %v8808_v29 = vpop.f32.mrb[28].mxu1  ;;  %v3009_v63 = vor.u32 %v3008_v20, %v3004_v61  ;;  %v7672_v61 = vld [vmem:[#allocation2 + $0x158] ss:$0 sps:$4 sm:$0x11]  }
 0x197   :  { %v8812_v16 = vpop.f32.mrb[29].mxu1  ;;  %4311 = vmatmul.mubr.bf16.gmra.mrb[128].mxu1 %v8753_v37  ;;  %v3018_v37 = vshll.u32 %v8822_v54, 16  ;;  %v1986_v60 = vshll.u32 %v7672_v61, 16 }
 0x198   :  { %v8816_v35 = vpop.f32.mrb[30].mxu1  ;;  %4318 = vmatprep.mubr.bf16.mxu1 %v1953_v11  ;;  %3637 = vmatmul.mubr.bf16.gmra.mrb[112].mxu0 %v8764_v55  ;;  %v1967_v55 = vshrl.u32 %v8810_v27, 16  ;;  %v3014_v23 = vsel %vm1665_vm9, %v3009_v63, %v3013_v51  ;;  %v1979_v51 = vshrl.u32 %v8825_v44, 16 }
 0x199   :  { %v8818_v1 = vpop.f32.mrb[31].mxu1  ;;  %3644 = vmatprep.mubr.bf16.mxu0 %v3002_v59  ;;  %v3020_v59 = vrot.slane %v3018_v37, 1 }
 0x19a   :  { %v1972_v47 = vor.u32 %v1971_v7, %v1967_v55  ;;  %v1988_v55 = vrot.slane %v1986_v60, 1  ;;  %v7680_v60 = vld [vmem:[#allocation2 + $0x170] ss:$0 sps:$4 sm:$0x11]  }
 0x19e   :  { %v8828_v11 = vpop.f32.mrb[16].mxu0 }
 0x19f   :  { %10258 = vst [vmem:[#allocation20_spill] sm:$0xff] %v8828_v11  ;;  %v3448_v53 = vpop.f32.mrb[17].mxu0  ;;  %4319 = vmatmul.mubr.bf16.gmra.mrb[132].mxu1 %v8778_v0  ;;  %v3025_v0 = vrot.slane %v3023_v39, 1  ;;  %v8856_v11 = vld [vmem:[#allocation2 + $0x168] sm:$0xff]  }
 0x1a0   :  { %v8834_v50 = vpop.f32.mrb[18].mxu0  ;;  %4326 = vmatprep.mubr.bf16.mxu1 %v1965_v3  ;;  %3645 = vmatmul.mubr.bf16.gmra.mrb[116].mxu0 %v8786_v46  ;;  %v3021_v53 = vor.u32 %v3020_v59, %v3016_v8  ;;  %v1977_v3 = vsel %vm1665_vm9, %v1972_v47, %v1976_v36  ;;  %v7677_v46 = vld [vmem:[#allocation2 + $0x164] ss:$0 sps:$4 sm:$0x11]   ;;  %v7814_v8 = vld [vmem:[#allocation2 + $0xc] sm:$0xff]  }
 0x1a1   :  { %10259 = vst [vmem:[#allocation21_spill] sm:$0xff] %v8834_v50  ;;  %v3451_v20 = vpop.f32.mrb[19].mxu0  ;;  %3652 = vmatprep.mubr.bf16.mxu0 %v3014_v23  ;;  %v8848_v50 = vld [vmem:[#allocation2 + $0x15c] sm:$0xff]   ;;  %v3059_v59 = vrot.slane %v7814_v8, 1  ;;  %v1998_v47 = vshll.u32 %v7677_v46, 16  ;;  %v2005_v46 = vshll.u32 %v8856_v11, 16 }
 0x1a2   :  { %v1983_v20 = vrot.slane %v1981_v32, 1  ;;  %v3026_v23 = vsel %vm1665_vm9, %v3021_v53, %v3025_v0  ;;  %v1993_v7 = vshll.u32 %v8848_v50, 16  ;;  %v7815_v36 = vld [vmem:[#allocation2 + $0x14] ss:$0 sps:$4 sm:$0x11]   ;;  %v1991_v0 = vshrl.u32 %v8848_v50, 16 }
 0x1a3   :  { %v8838_v24 = vpop.f32.mrb[32].mxu1  ;;  %v3060_v32 = vrot.slane %v7815_v36, 1 }
 0x1a4   :  { %10260 = vst [vmem:[#allocation22_spill] sm:$0xff] %v8838_v24  ;;  %v8840_v37 = vpop.f32.mrb[33].mxu1  ;;  %v1984_v39 = vor.u32 %v1983_v20, %v1979_v51  ;;  %v7867_v24 = vld [vmem:[#allocation2 + $0xb0] ss:$0 sps:$4 sm:$0x11]  }
 0x1a5   :  { %v8842_v25 = vpop.f32.mrb[34].mxu1  ;;  %v3061_v20 = vsel %vm2082_vm8, %v3059_v59, %v3060_v32  ;;  %v7819_v59 = vld [vmem:[#allocation2 + $0x2c] ss:$0 sps:$4 sm:$0x11]  }
 0x1a6   :  { %10261 = vst [vmem:[#allocation23_spill] sm:$0xff] %v8842_v25  ;;  %v8845_v63 = vpop.f32.mrb[35].mxu1  ;;  %v1989_v53 = vsel %vm1665_vm9, %v1984_v39, %v1988_v55  ;;  %v7816_v39 = vld [vmem:[#allocation2 + $0x18] sm:$0xff]   ;;  %v3066_v32 = vrot.slane %v7819_v59, 1 }
 0x1a7   :  { %4327 = vmatmul.mubr.bf16.gmra.mrb[136].mxu1 %v8791_v33  ;;  %v3062_v55 = vrot.slane %v7816_v39, 1 }
 0x1a8   :  { %4334 = vmatprep.mubr.bf16.mxu1 %v1977_v3  ;;  %3653 = vmatmul.mubr.bf16.gmra.mrb[120].mxu0 %v8802_v49  ;;  %v1995_v49 = vrot.slane %v1993_v7, 1  ;;  %v7817_v7 = vld [vmem:[#allocation2 + $0x20] ss:$0 sps:$4 sm:$0x11]  }
 0x1a9   :  { %3660 = vmatprep.mubr.bf16.mxu0 %v3026_v23  ;;  %v2000_v23 = vrot.slane %v1998_v47, 1 }
 0x1aa   :  { %v1996_v8 = vor.u32 %v1995_v49, %v1991_v0  ;;  %v2003_v0 = vshrl.u32 %v8856_v11, 16  ;;  %v2007_v49 = vrot.slane %v2005_v46, 1 }
 0x1ac   :  { %v2008_v52 = vor.u32 %v2007_v49, %v2003_v0  ;;  %v7822_v0 = vld [vmem:[#allocation2 + $0x3c] sm:$0xff]  }
 0x1ad   :  { %v8854_v61 = vpop.f32.mrb[20].mxu0  ;;  %v3071_v49 = vrot.slane %v7822_v0, 1 }
 0x1ae   :  { %10262 = vst [vmem:[#allocation24_spill] sm:$0xff] %v8854_v61  ;;  %v3456_v33 = vpop.f32.mrb[21].mxu0  ;;  %v8876_v61 = vld [vmem:[#allocation2 + $0x174] sm:$0xff]  }
 0x1af   :  { %v8860_v51 = vpop.f32.mrb[22].mxu0  ;;  %4335 = vmatmul.mubr.bf16.gmra.mrb[140].mxu1 %v8810_v27  ;;  %v3063_v33 = vrot.slane %v7817_v7, 1  ;;  %v7818_v27 = vld [vmem:[#allocation2 + $0x24] sm:$0xff]   ;;  %v7675_v7 = vld [vmem:[#allocation6 + $0x88] sm:$0xff]  }
 0x1b0   :  { %10263 = vst [vmem:[#allocation25_spill] sm:$0xff] %v8860_v51  ;;  %v3459_v3 = vpop.f32.mrb[23].mxu0  ;;  %4342 = vmatprep.mubr.bf16.mxu1 %v1989_v53  ;;  %3661 = vmatmul.mubr.bf16.gmra.mrb[124].mxu0 %v8822_v54  ;;  %v2001_v54 = vsel %vm1665_vm9, %v1996_v8, %v2000_v23  ;;  %v7684_v23 = vld [vmem:[#allocation2 + $0x17c] ss:$0 sps:$4 sm:$0x11]   ;;  %v2017_v8 = vshll.u32 %v8876_v61, 16 }
 0x1b1   :  { %7254 = vmatprep.mubr.bf16.mxu0 %v3061_v20  ;;  %v3065_v3 = vrot.slane %v7818_v27, 1  ;;  %v2010_v20 = vshll.u32 %v7680_v60, 16  ;;  %v3064_v39 = vsel %vm2082_vm8, %v3062_v55, %v3063_v33  ;;  %v7820_v55 = vld [vmem:[#allocation2 + $0x30] sm:$0xff]   ;;  %v7821_v33 = vld [vmem:[#allocation2 + $0x38] ss:$0 sps:$4 sm:$0x11]  }
 0x1b2   :  { %v8866_v36 = vpop.f32.mrb[36].mxu1  ;;  %v3069_v26 = vrot.slane %v7821_v33, 1  ;;  %v8893_v33 = vld [vmem:[#allocation2 + $0x180] sm:$0xff]  }
 0x1b3   :  { %10264 = vst [vmem:[#allocation26_spill] sm:$0xff] %v8866_v36  ;;  %v8868_v51 = vpop.f32.mrb[37].mxu1  ;;  %v3067_v27 = vsel %vm2082_vm8, %v3065_v3, %v3066_v32  ;;  %v2012_v40 = vrot.slane %v2010_v20, 1  ;;  %v7823_v20 = vld [vmem:[#allocation2 + $0x44] ss:$0 sps:$4 sm:$0x11]  }
 0x1b4   :  { %10265 = vst [vmem:[#allocation27_spill] sm:$0xff] %v8868_v51  ;;  %v8870_v53 = vpop.f32.mrb[38].mxu1 }
 0x1b5   :  { %10266 = vst [vmem:[#allocation28_spill] sm:$0xff] %v8870_v53  ;;  %v8872_v47 = vpop.f32.mrb[39].mxu1 }
 0x1b6   :  { %10267 = vst [vmem:[#allocation29_spill] sm:$0xff] %v8872_v47 }
 0x1b7   :  { %4343 = vmatmul.mubr.bf16.gmra.mrb[144].mxu1 %v8825_v44  ;;  %v3068_v44 = vrot.slane %v7820_v55, 1  ;;  %v2019_v55 = vrot.slane %v2017_v8, 1 }
 0x1b8   :  { %4350 = vmatprep.mubr.bf16.mxu1 %v2001_v54  ;;  %7255 = vmatmul.mubr.bf16.vlgmr.msra.gmra.mrb[128].mxu0 %v3064_v39  ;;  %v7678_v54 = vld [vmem:[#allocation6 + $0x90] sm:$0xff]   ;;  %v3072_v39 = vrot.slane %v7823_v20, 1 }
 0x1b9   :  { %7319 = vmatpush3.bf16.msra.mxu0 %v8651_v48  ;;  %7258 = vmatprep.mubr.bf16.mxu0 %v3067_v27  ;;  %v2015_v27 = vshrl.u32 %v8876_v61, 16 }
 0x1ba   :  { %v8881_v59 = vpop.f32.mrb[24].mxu0  ;;  %v8885_v46 = vpop.f32.mrb[40].mxu1  ;;  %7320 = vmatprep.subr.bf16.mxu0 %v7675_v7  ;;  %v3073_v0 = vsel %vm2082_vm8, %v3071_v49, %v3072_v39  ;;  %v7826_v39 = vld [vmem:[#allocation2 + $0x54] sm:$0xff]  }
 0x1bb   :  { %10268 = vst [vmem:[#allocation30_spill] sm:$0xff] %v8881_v59  ;;  %v3464_v60 = vpop.f32.mrb[25].mxu0  ;;  %10269 = vst [vmem:[#allocation31_spill] sm:$0xff] %v8885_v46  ;;  %v4138_v32 = vpop.f32.mrb[41].mxu1  ;;  %v2022_v46 = vshll.u32 %v7684_v23, 16  ;;  %v2020_v20 = vor.u32 %v2019_v55, %v2015_v27  ;;  %v7685_v55 = vld [vmem:[#allocation6 + $0xa0] sm:$0xff]  }
 0x1bc   :  { %v8887_v3 = vpop.f32.mrb[26].mxu0  ;;  %v8889_v53 = vpop.f32.mrb[42].mxu1  ;;  %v2013_v60 = vsel %vm1665_vm9, %v2008_v52, %v2012_v40  ;;  %v3070_v32 = vsel %vm2082_vm8, %v3068_v44, %v3069_v26  ;;  %v7688_v40 = vld [vmem:[#allocation2 + $0x188] ss:$0 sps:$4 sm:$0x11]   ;;  %v2029_v52 = vshll.u32 %v8893_v33, 16 }
 0x1bd   :  { %10270 = vst [vmem:[#allocation32_spill] sm:$0xff] %v8887_v3  ;;  %v3467_v59 = vpop.f32.mrb[27].mxu0  ;;  %10271 = vst [vmem:[#allocation33_spill] sm:$0xff] %v8889_v53  ;;  %v4141_v48 = vpop.f32.mrb[43].mxu1  ;;  %7321 = vmatpush3.bf16.msra.mxu0 %v7675_v7  ;;  %v7824_v26 = vld [vmem:[#allocation2 + $0x48] sm:$0xff]  }
 0x1be   :  { %7322 = vmatprep.subr.bf16.mxu0 %v7678_v54  ;;  %v7681_v59 = vld [vmem:[#allocation6 + $0x98] sm:$0xff]   ;;  %v2024_v48 = vrot.slane %v2022_v46, 1  ;;  %v3074_v7 = vrot.slane %v7824_v26, 1  ;;  %v7827_v27 = vld [vmem:[#allocation2 + $0x5c] ss:$0 sps:$4 sm:$0x11]  }
 0x1bf   :  { %4351 = vmatmul.mubr.bf16.gmra.mrb[148].mxu1 %v8848_v50  ;;  %v7825_v50 = vld [vmem:[#allocation2 + $0x50] ss:$0 sps:$4 sm:$0x11]   ;;  %v3078_v46 = vrot.slane %v7827_v27, 1  ;;  %v2031_v26 = vrot.slane %v2029_v52, 1  ;;  %v7686_v27 = vld [vmem:[#allocation6 + $0xa8] sm:$0xff]  }
 0x1c0   :  { %4358 = vmatprep.mubr.bf16.mxu1 %v2013_v60  ;;  %7259 = vmatmul.mubr.bf16.gmra.mrb[132].mxu0 %v3070_v32  ;;  %v3075_v44 = vrot.slane %v7825_v50, 1  ;;  %v3077_v60 = vrot.slane %v7826_v39, 1  ;;  %v2034_v50 = vshll.u32 %v7688_v40, 16  ;;  %v7828_v40 = vld [vmem:[#allocation2 + $0x60] sm:$0xff]  }
 0x1c1   :  { %7323 = vmatpush3.bf16.msra.mxu0 %v7678_v54  ;;  %7262 = vmatprep.mubr.bf16.mxu0 %v3073_v0  ;;  %v2025_v54 = vsel %vm1665_vm9, %v2020_v20, %v2024_v48  ;;  %v2027_v0 = vshrl.u32 %v8893_v33, 16  ;;  %v7692_v20 = vld [vmem:[#allocation2 + $0x194] ss:$0 sps:$4 sm:$0x11]  }
 0x1c2   :  { %v8899_v8 = vpop.f32.mrb[28].mxu0  ;;  %v8901_v23 = vpop.f32.mrb[44].mxu1  ;;  %7324 = vmatprep.subr.bf16.mxu0 %v7681_v59  ;;  %v3079_v39 = vsel %vm2082_vm8, %v3077_v60, %v3078_v46  ;;  %v7830_v60 = vld [vmem:[#allocation2 + $0x6c] sm:$0xff]  }
 0x1c3   :  { %10272 = vst [vmem:[#allocation34_spill] sm:$0xff] %v8899_v8  ;;  %10273 = vst [vmem:[#allocation35_spill] sm:$0xff] %v8901_v23  ;;  %v3472_v3 = vpop.f32.mrb[29].mxu0  ;;  %v4146_v49 = vpop.f32.mrb[45].mxu1  ;;  %v3083_v46 = vrot.slane %v7830_v60, 1 }
 0x1c4   :  { %v8903_v32 = vpop.f32.mrb[30].mxu0  ;;  %v8905_v53 = vpop.f32.mrb[46].mxu1  ;;  %v8909_v3 = vld [vmem:[#allocation2 + $0x18c] sm:$0xff]   ;;  %v3076_v49 = vsel %vm2082_vm8, %v3074_v7, %v3075_v44  ;;  %v7829_v7 = vld [vmem:[#allocation2 + $0x68] ss:$0 sps:$4 sm:$0x11]  }
 0x1c5   :  { %10274 = vst [vmem:[#allocation36_spill] sm:$0xff] %v8903_v32  ;;  %10275 = vst [vmem:[#allocation37_spill] sm:$0xff] %v8905_v53  ;;  %v3475_v8 = vpop.f32.mrb[31].mxu0  ;;  %v4149_v23 = vpop.f32.mrb[47].mxu1  ;;  %7325 = vmatpush3.bf16.msra.mxu0 %v7681_v59  ;;  %v2041_v48 = vshll.u32 %v8909_v3, 16  ;;  %v3080_v32 = vrot.slane %v7828_v40, 1 }
 0x1c6   :  { %7326 = vmatprep.subr.bf16.mxu0 %v7685_v55  ;;  %v2032_v8 = vor.u32 %v2031_v26, %v2027_v0  ;;  %v2036_v23 = vrot.slane %v2034_v50, 1  ;;  %v3081_v59 = vrot.slane %v7829_v7, 1  ;;  %v7690_v26 = vld [vmem:[#allocation6 + $0xb0] sm:$0xff]   ;;  %v2039_v7 = vshrl.u32 %v8909_v3, 16 }
 0x1c7   :  { %4359 = vmatmul.mubr.bf16.gmra.mrb[152].mxu1 %v8856_v11 }
 0x1c8   :  { %4366 = vmatprep.mubr.bf16.mxu1 %v2025_v54  ;;  %7263 = vmatmul.mubr.bf16.gmra.mrb[136].mxu0 %v3076_v49  ;;  %v7831_v54 = vld [vmem:[#allocation2 + $0x74] ss:$0 sps:$4 sm:$0x11]   ;;  %v2037_v40 = vsel %vm1665_vm9, %v2032_v8, %v2036_v23  ;;  %v3082_v60 = vsel %vm2082_vm8, %v3080_v32, %v3081_v59  ;;  %v7695_v23 = vld [vmem:[#allocation2 + $0x20] ss:$0 sps:$4 sm:$0x11]  }
 0x1c9   :  { %7266 = vmatprep.mubr.bf16.mxu0 %v3079_v39  ;;  %7327 = vmatpush3.bf16.msra.mxu0 %v7685_v55  ;;  %v3084_v0 = vrot.slane %v7831_v54, 1  ;;  %v2043_v55 = vrot.slane %v2041_v48, 1  ;;  %v7833_v32 = vld [vmem:[#allocation2 + $0x80] ss:$0 sps:$4 sm:$0x11]   ;;  %v7834_v59 = vld [vmem:[#allocation2 + $0x84] sm:$0xff]  }
 0x1ca   :  { %v8915_v52 = vpop.f32.mrb[48].mxu1  ;;  %v8917_v11 = vpop.f32.mrb[32].mxu0  ;;  %7328 = vmatprep.subr.bf16.mxu0 %v7686_v27 }
 0x1cb   :  { %10276 = vst [vmem:[#allocation38_spill] sm:$0xff] %v8915_v52  ;;  %10277 = vst [vmem:[#allocation39_spill] sm:$0xff] %v8917_v11  ;;  %v4154_v44 = vpop.f32.mrb[49].mxu1  ;;  %v3480_v50 = vpop.f32.mrb[33].mxu0  ;;  %v2046_v52 = vshll.u32 %v7692_v20, 16  ;;  %v8925_v11 = vld [vmem:[#allocation2 + $0x18] sm:$0xff]   ;;  %v3085_v54 = vsel %vm2082_vm8, %v3083_v46, %v3084_v0 }
 0x1cc   :  { %v8919_v49 = vpop.f32.mrb[50].mxu1  ;;  %v8921_v53 = vpop.f32.mrb[34].mxu0  ;;  %v7693_v50 = vld [vmem:[#allocation6 + $0xb8] sm:$0xff]   ;;  %v5068_v48 = vshll.u32 %v8925_v11, 16  ;;  %v3089_v46 = vrot.slane %v7834_v59, 1 }
 0x1cd   :  { %10278 = vst [vmem:[#allocation40_spill] sm:$0xff] %v8919_v49  ;;  %10279 = vst [vmem:[#allocation41_spill] sm:$0xff] %v8921_v53  ;;  %v4157_v39 = vpop.f32.mrb[51].mxu1  ;;  %v3483_v44 = vpop.f32.mrb[35].mxu0  ;;  %7329 = vmatpush3.bf16.msra.mxu0 %v7686_v27  ;;  %v2048_v8 = vrot.slane %v2046_v52, 1  ;;  %v3087_v27 = vrot.slane %v7833_v32, 1 }
 0x1ce   :  { %7330 = vmatprep.subr.bf16.mxu0 %v7690_v26  ;;  %v2044_v39 = vor.u32 %v2043_v55, %v2039_v7  ;;  %v7832_v44 = vld [vmem:[#allocation2 + $0x78] sm:$0xff]   ;;  %v7835_v0 = vld [vmem:[#allocation2 + $0x8c] ss:$0 sps:$4 sm:$0x11]   ;;  %v5070_v32 = vrot.slane %v5068_v48, 1 }
 0x1cf   :  { %4367 = vmatmul.mubr.bf16.gmra.mrb[156].mxu1 %v8876_v61  ;;  %v3086_v53 = vrot.slane %v7832_v44, 1  ;;  %v3090_v49 = vrot.slane %v7835_v0, 1  ;;  %v5066_v44 = vshrl.u32 %v8925_v11, 16  ;;  %v7698_v48 = vld [vmem:[#allocation2 + $0x2c] ss:$0 sps:$4 sm:$0x11]  }
 0x1d0   :  { %4374 = vmatprep.mubr.bf16.mxu1 %v2037_v40  ;;  %7267 = vmatmul.mubr.bf16.gmra.mrb[140].mxu0 %v3082_v60  ;;  %v8933_v40 = vld [vmem:[#allocation6 + $0x200] sm:$0xff]  }
 0x1d1   :  { %7270 = vmatprep.mubr.bf16.mxu0 %v3085_v54  ;;  %7331 = vmatpush3.bf16.msra.mxu0 %v7690_v26  ;;  %v2049_v54 = vsel %vm1665_vm9, %v2044_v39, %v2048_v8  ;;  %v5073_v26 = vshll.u32 %v7695_v23, 16  ;;  %v3088_v0 = vsel %vm2082_vm8, %v3086_v53, %v3087_v27  ;;  %v5071_v39 = vor.u32 %v5070_v32, %v5066_v44  ;;  %v8956_v44 = vld [vmem:[#allocation2 + $0x30] sm:$0xff]  }
 0x1d2   :  { %v8931_v20 = vpop.f32.mrb[52].mxu1  ;;  %7332 = vmatprep.subr.bf16.mxu0 %v7693_v50 }
 0x1d3   :  { %10280 = vst [vmem:[#allocation42_spill] sm:$0xff] %v8931_v20  ;;  %v4162_v61 = vpop.f32.mrb[53].mxu1  ;;  %v8935_v52 = vpop.f32.mrb[36].mxu0  ;;  %v5075_v8 = vrot.slane %v5073_v26, 1 }
 0x1d4   :  { %10281 = vst [vmem:[#allocation43_spill] sm:$0xff] %v8935_v52  ;;  %v8937_v7 = vpop.f32.mrb[54].mxu1  ;;  %v3488_v55 = vpop.f32.mrb[37].mxu0  ;;  %v8941_v61 = vld [vmem:[#allocation2 + $0x24] sm:$0xff]   ;;  %v3091_v52 = vsel %vm2082_vm8, %v3089_v46, %v3090_v49 }
 0x1d5   :  { %10282 = vst [vmem:[#allocation44_spill] sm:$0xff] %v8937_v7  ;;  %v4165_v60 = vpop.f32.mrb[55].mxu1  ;;  %v8943_v59 = vpop.f32.mrb[38].mxu0  ;;  %7333 = vmatpush3.bf16.msra.mxu0 %v7693_v50  ;;  %v5080_v23 = vshll.u32 %v8941_v61, 16 }
 0x1d6   :  { %10283 = vst [vmem:[#allocation45_spill] sm:$0xff] %v8943_v59  ;;  %v3491_v20 = vpop.f32.mrb[39].mxu0  ;;  %7398 = vmatprep.subr.bf16.mxu0 %v8933_v40  ;;  %v7836_v60 = vld [vmem:[#allocation2 + $0x90] sm:$0xff]   ;;  %v7837_v50 = vld [vmem:[#allocation2 + $0x98] ss:$0 sps:$4 sm:$0x11]  }
 0x1d7   :  { %4375 = vmatmul.mubr.bf16.gmra.mrb[160].mxu1 %v8893_v33  ;;  %v3092_v53 = vrot.slane %v7836_v60, 1  ;;  %v3093_v20 = vrot.slane %v7837_v50, 1  ;;  %v7838_v33 = vld [vmem:[#allocation2] sm:$0xff]   ;;  %v7839_v49 = vld [vmem:[#allocation2 + $0x8] ss:$0 sps:$4 sm:$0x11]  }
 0x1d8   :  { %4382 = vmatprep.mubr.bf16.mxu1 %v2049_v54  ;;  %7271 = vmatmul.mubr.bf16.gmra.mrb[144].mxu0 %v3088_v0  ;;  %v2083_v59 = vrot.slane %v7838_v33, 1  ;;  %v2084_v46 = vrot.slane %v7839_v49, 1  ;;  %v5076_v0 = vsel %vm1665_vm9, %v5071_v39, %v5075_v8  ;;  %v5082_v60 = vrot.slane %v5080_v23, 1 }
 0x1d9   :  { %7274 = vmatprep.mubr.bf16.mxu0 %v3091_v52  ;;  %v5078_v52 = vshrl.u32 %v8941_v61, 16 }
 0x1da   :  { %v8950_v55 = vpop.f32.mrb[56].mxu1  ;;  %v2085_v49 = vsel %vm2082_vm8, %v2083_v59, %v2084_v46 }
 0x1db   :  { %10284 = vst [vmem:[#allocation46_spill] sm:$0xff] %v8950_v55  ;;  %v4170_v27 = vpop.f32.mrb[57].mxu1  ;;  %v8952_v7 = vpop.f32.mrb[40].mxu0  ;;  %v5085_v55 = vshll.u32 %v7698_v48, 16  ;;  %v7840_v48 = vld [vmem:[#allocation2 + $0xc] sm:$0xff]  }
 0x1dc   :  { %10285 = vst [vmem:[#allocation47_spill] sm:$0xff] %v8952_v7  ;;  %v8954_v54 = vpop.f32.mrb[58].mxu1  ;;  %v3496_v32 = vpop.f32.mrb[41].mxu0  ;;  %v3094_v27 = vsel %vm2082_vm8, %v3092_v53, %v3093_v20  ;;  %v7700_v7 = vld [vmem:[#allocation2 + $0x38] ss:$0 sps:$4 sm:$0x11]  }
 0x1dd   :  { %10286 = vst [vmem:[#allocation48_spill] sm:$0xff] %v8954_v54  ;;  %v4173_v26 = vpop.f32.mrb[59].mxu1  ;;  %v8960_v50 = vpop.f32.mrb[42].mxu0  ;;  %v5092_v32 = vshll.u32 %v8956_v44, 16  ;;  %v5087_v39 = vrot.slane %v5085_v55, 1  ;;  %v2086_v23 = vrot.slane %v7840_v48, 1 }
 0x1de   :  { %10287 = vst [vmem:[#allocation49_spill] sm:$0xff] %v8960_v50  ;;  %v3499_v33 = vpop.f32.mrb[43].mxu0  ;;  %v5083_v26 = vor.u32 %v5082_v60, %v5078_v52  ;;  %v7841_v50 = vld [vmem:[#allocation2 + $0x14] ss:$0 sps:$4 sm:$0x11]   ;;  %v7842_v20 = vld [vmem:[#allocation2 + $0x18] sm:$0xff]  }
 0x1df   :  { %4383 = vmatmul.mubr.bf16.gmra.mrb[164].mxu1 %v8909_v3  ;;  %v2087_v54 = vrot.slane %v7841_v50, 1  ;;  %v2089_v33 = vrot.slane %v7842_v20, 1  ;;  %v7843_v3 = vld [vmem:[#allocation2 + $0x20] ss:$0 sps:$4 sm:$0x11]   ;;  %v5094_v52 = vrot.slane %v5092_v32, 1 }
 0x1e0   :  { %5834 = vmatprep.mubr.bf16.mxu1 %v5076_v0  ;;  %7275 = vmatmul.mubr.bf16.gmra.mrb[148].mxu0 %v3094_v27  ;;  %v2090_v36 = vrot.slane %v7843_v3, 1  ;;  %v5090_v0 = vshrl.u32 %v8956_v44, 16  ;;  %v5097_v55 = vshll.u32 %v7700_v7, 16  ;;  %v8974_v48 = vld [vmem:[#allocation2 + $0x3c] sm:$0xff]  }
 0x1e1   :  { %7334 = vmatprep.mubr.bf16.mxu0 %v2085_v49  ;;  %v5088_v49 = vsel %vm1665_vm9, %v5083_v26, %v5087_v39  ;;  %v8981_v7 = vld [vmem:[#allocation2 + $0x44] ss:$0 sps:$4 sm:$0x11]   ;;  %v5104_v26 = vshll.u32 %v8974_v48, 16 }
 0x1e2   :  { %v8966_v8 = vpop.f32.mrb[60].mxu1  ;;  %v2091_v3 = vsel %vm2082_vm8, %v2089_v33, %v2090_v36  ;;  %v5099_v32 = vrot.slane %v5097_v55, 1  ;;  %v7846_v36 = vld [vmem:[#allocation2 + $0x30] sm:$0xff]  }
 0x1e3   :  { %10288 = vst [vmem:[#allocation50_spill] sm:$0xff] %v8966_v8  ;;  %v4178_v53 = vpop.f32.mrb[61].mxu1  ;;  %v8968_v59 = vpop.f32.mrb[44].mxu0  ;;  %v2095_v33 = vrot.slane %v7846_v36, 1  ;;  %v5109_v36 = vshll.u32 %v8981_v7, 16  ;;  %v7716_v8 = vld [vmem:[#allocation6 + $0x220] sm:$0xff]  }
 0x1e4   :  { %10289 = vst [vmem:[#allocation51_spill] sm:$0xff] %v8968_v59  ;;  %v8970_v46 = vpop.f32.mrb[62].mxu1  ;;  %v3504_v60 = vpop.f32.mrb[45].mxu0  ;;  %v2088_v53 = vsel %vm2082_vm8, %v2086_v23, %v2087_v54  ;;  %v7701_v59 = vld [vmem:[#allocation6 + $0x208] sm:$0xff]   ;;  %v7844_v54 = vld [vmem:[#allocation2 + $0x24] sm:$0xff]  }
 0x1e5   :  { %10290 = vst [vmem:[#allocation52_spill] sm:$0xff] %v8970_v46  ;;  %v4181_v27 = vpop.f32.mrb[63].mxu1  ;;  %v8976_v50 = vpop.f32.mrb[46].mxu0  ;;  %v5095_v46 = vor.u32 %v5094_v52, %v5090_v0  ;;  %v2092_v23 = vrot.slane %v7844_v54, 1  ;;  %v7706_v52 = vld [vmem:[#allocation6 + $0x210] sm:$0xff]  }
 0x1e6   :  { %10291 = vst [vmem:[#allocation53_spill] sm:$0xff] %v8976_v50  ;;  %v3507_v20 = vpop.f32.mrb[47].mxu0  ;;  %v7845_v60 = vld [vmem:[#allocation2 + $0x2c] ss:$0 sps:$4 sm:$0x11]  }
 0x1e7   :  { %5835 = vmatmul.mubr.bf16.vlgmr.msra.gmra.mrb[168].mxu1 %v8925_v11  ;;  %v2093_v11 = vrot.slane %v7845_v60, 1  ;;  %v5100_v20 = vsel %vm1665_vm9, %v5095_v46, %v5099_v32  ;;  %v5102_v60 = vshrl.u32 %v8974_v48, 16  ;;  %v7711_v32 = vld [vmem:[#allocation6 + $0x218] sm:$0xff]  }
 0x1e8   :  { %5842 = vmatprep.mubr.bf16.mxu1 %v5088_v49  ;;  %7335 = vmatmul.mubr.bf16.vlgmr.msra.gmra.mrb[152].mxu0 %v2088_v53  ;;  %v7847_v49 = vld [vmem:[#allocation2 + $0x38] ss:$0 sps:$4 sm:$0x11]  }
 0x1e9   :  { %7399 = vmatpush3.bf16.msra.mxu0 %v8933_v40  ;;  %7338 = vmatprep.mubr.bf16.mxu0 %v2091_v3  ;;  %v2096_v0 = vrot.slane %v7847_v49, 1  ;;  %v8990_v40 = vld [vmem:[#allocation2 + $0x48] sm:$0xff]  }
 0x1ea   :  { %v8985_v39 = vpop.f32.mrb[64].mxu1  ;;  %7400 = vmatprep.subr.bf16.mxu0 %v7701_v59 }
 0x1eb   :  { %10292 = vst [vmem:[#allocation54_spill] sm:$0xff] %v8985_v39  ;;  %v4186_v27 = vpop.f32.mrb[65].mxu1  ;;  %v3510_v55 = vpop.f32.mrb[48].mxu0  ;;  %v2094_v39 = vsel %vm2082_vm8, %v2092_v23, %v2093_v11  ;;  %v7849_v11 = vld [vmem:[#allocation2 + $0x44] ss:$0 sps:$4 sm:$0x11]  }
 0x1ec   :  { %v8987_v53 = vpop.f32.mrb[66].mxu1  ;;  %v8993_v3 = vadd.f32 %v8587_v30, %v3510_v55  ;;  %v3512_v54 = vpop.f32.mrb[49].mxu0  ;;  %v5106_v27 = vrot.slane %v5104_v26, 1  ;;  %v2097_v30 = vsel %vm2082_vm8, %v2095_v33, %v2096_v0  ;;  %v5116_v26 = vshll.u32 %v8990_v40, 16  ;;  %v7850_v33 = vld [vmem:[#allocation2 + $0x48] sm:$0xff]  }
 0x1ed   :  { %10293 = vst [vmem:[#allocation55_spill] sm:$0xff] %v8987_v53  ;;  %v4189_v50 = vpop.f32.mrb[67].mxu1  ;;  %v3513_v49 = vpop.f32.mrb[50].mxu0  ;;  %7401 = vmatpush3.bf16.msra.mxu0 %v7701_v59  ;;  %v5111_v54 = vrot.slane %v5109_v36, 1  ;;  %v2101_v0 = vrot.slane %v7850_v33, 1 }
 0x1ee   :  { %v8999_v53 = vadd.f32 %v8595_v38, %v3513_v49  ;;  %v3515_v46 = vpop.f32.mrb[51].mxu0  ;;  %7402 = vmatprep.subr.bf16.mxu0 %v7706_v52  ;;  %v9003_v50 = vld [vmem:[#allocation2 + $0x50] ss:$0 sps:$4 sm:$0x11]   ;;  %v5107_v55 = vor.u32 %v5106_v27, %v5102_v60  ;;  %v7848_v38 = vld [vmem:[#allocation2 + $0x3c] sm:$0xff]   ;;  %v2099_v49 = vrot.slane %v7849_v11, 1 }
 0x1ef   :  { %5843 = vmatmul.mubr.bf16.gmra.mrb[172].mxu1 %v8941_v61  ;;  %v2098_v59 = vrot.slane %v7848_v38, 1  ;;  %v7851_v46 = vld [vmem:[#allocation2 + $0x50] ss:$0 sps:$4 sm:$0x11]   ;;  %v5118_v60 = vrot.slane %v5116_v26, 1  ;;  %v5121_v27 = vshll.u32 %v9003_v50, 16 }
 0x1f0   :  { %5850 = vmatprep.mubr.bf16.mxu1 %v5100_v20  ;;  %7339 = vmatmul.mubr.bf16.gmra.mrb[156].mxu0 %v2094_v39  ;;  %v2102_v20 = vrot.slane %v7851_v46, 1  ;;  %v5114_v39 = vshrl.u32 %v8990_v40, 16  ;;  %v5112_v38 = vsel %vm1665_vm9, %v5107_v55, %v5111_v54  ;;  %v9016_v11 = vld [vmem:[#allocation2 + $0x54] sm:$0xff]   ;;  %v9024_v55 = vld [vmem:[#allocation2 + $0x5c] ss:$0 sps:$4 sm:$0x11]  }
 0x1f1   :  { %7342 = vmatprep.mubr.bf16.mxu0 %v2097_v30  ;;  %7403 = vmatpush3.bf16.msra.mxu0 %v7706_v52  ;;  %v2100_v33 = vsel %vm2082_vm8, %v2098_v59, %v2099_v49  ;;  %v5128_v54 = vshll.u32 %v9016_v11, 16 }
 0x1f2   :  { %v9006_v23 = vpop.f32.mrb[68].mxu1  ;;  %7404 = vmatprep.subr.bf16.mxu0 %v7711_v32  ;;  %v2103_v26 = vsel %vm2082_vm8, %v2101_v0, %v2102_v20  ;;  %v7854_v0 = vld [vmem:[#allocation2 + $0x60] sm:$0xff]  }
 0x1f3   :  { %10294 = vst [vmem:[#allocation56_spill] sm:$0xff] %v9006_v23  ;;  %v4194_v61 = vpop.f32.mrb[69].mxu1  ;;  %v3518_v47 = vpop.f32.mrb[52].mxu0  ;;  %v2107_v20 = vrot.slane %v7854_v0, 1  ;;  %v5133_v0 = vshll.u32 %v9024_v55, 16 }
 0x1f4   :  { %v9008_v51 = vpop.f32.mrb[70].mxu1  ;;  %v9013_v36 = vadd.f32 %v8585_v28, %v3518_v47  ;;  %v3520_v30 = vpop.f32.mrb[53].mxu0  ;;  %v7721_v28 = vld [vmem:[#allocation6 + $0x228] sm:$0xff]   ;;  %v5119_v47 = vor.u32 %v5118_v60, %v5114_v39  ;;  %v7726_v39 = vld [vmem:[#allocation6 + $0x230] sm:$0xff]  }
 0x1f5   :  { %10295 = vst [vmem:[#allocation57_spill] sm:$0xff] %v9008_v51  ;;  %v4197_v52 = vpop.f32.mrb[71].mxu1  ;;  %v3521_v61 = vpop.f32.mrb[54].mxu0  ;;  %7405 = vmatpush3.bf16.msra.mxu0 %v7711_v32  ;;  %v5123_v30 = vrot.slane %v5121_v27, 1 }
 0x1f6   :  { %v9020_v46 = vadd.f32 %v8592_v43, %v3521_v61  ;;  %v3523_v51 = vpop.f32.mrb[55].mxu0  ;;  %7406 = vmatprep.subr.bf16.mxu0 %v7716_v8  ;;  %v7852_v43 = vld [vmem:[#allocation2 + $0x54] sm:$0xff]   ;;  %v7855_v52 = vld [vmem:[#allocation2 + $0x68] ss:$0 sps:$4 sm:$0x11]  }
 0x1f7   :  { %5851 = vmatmul.mubr.bf16.gmra.mrb[176].mxu1 %v8956_v44  ;;  %v2104_v32 = vrot.slane %v7852_v43, 1  ;;  %v7853_v51 = vld [vmem:[#allocation2 + $0x5c] ss:$0 sps:$4 sm:$0x11]   ;;  %v5124_v61 = vsel %vm1665_vm9, %v5119_v47, %v5123_v30  ;;  %v7731_v30 = vld [vmem:[#allocation6 + $0x238] sm:$0xff]  }
 0x1f8   :  { %5858 = vmatprep.mubr.bf16.mxu1 %v5112_v38  ;;  %7343 = vmatmul.mubr.bf16.gmra.mrb[160].mxu0 %v2100_v33  ;;  %v2105_v49 = vrot.slane %v7853_v51, 1  ;;  %v2108_v38 = vrot.slane %v7855_v52, 1  ;;  %v9032_v33 = vld [vmem:[#allocation2 + $0x60] sm:$0xff]  }
 0x1f9   :  { %7346 = vmatprep.mubr.bf16.mxu0 %v2103_v26  ;;  %7407 = vmatpush3.bf16.msra.mxu0 %v7716_v8  ;;  %v5126_v8 = vshrl.u32 %v9016_v11, 16 }
 0x1fa   :  { %v9027_v59 = vpop.f32.mrb[72].mxu1  ;;  %7408 = vmatprep.subr.bf16.mxu0 %v7721_v28 }
 0x1fb   :  { %10296 = vst [vmem:[#allocation58_spill] sm:$0xff] %v9027_v59  ;;  %v4202_v44 = vpop.f32.mrb[73].mxu1  ;;  %v3526_v60 = vpop.f32.mrb[56].mxu0  ;;  %v2106_v59 = vsel %vm2082_vm8, %v2104_v32, %v2105_v49  ;;  %v7857_v49 = vld [vmem:[#allocation2 + $0x74] ss:$0 sps:$4 sm:$0x11]  }
 0x1fc   :  { %v9029_v27 = vpop.f32.mrb[74].mxu1  ;;  %v9035_v26 = vadd.f32 %v8611_v57, %v3526_v60  ;;  %v3528_v43 = vpop.f32.mrb[57].mxu0  ;;  %v5130_v44 = vrot.slane %v5128_v54, 1  ;;  %v2109_v57 = vsel %vm2082_vm8, %v2107_v20, %v2108_v38  ;;  %v9045_v60 = vld [vmem:[#allocation2 + $0x68] ss:$0 sps:$4 sm:$0x11]  }
 0x1fd   :  { %10297 = vst [vmem:[#allocation59_spill] sm:$0xff] %v9029_v27  ;;  %v4205_v51 = vpop.f32.mrb[75].mxu1  ;;  %v3529_v52 = vpop.f32.mrb[58].mxu0  ;;  %7409 = vmatpush3.bf16.msra.mxu0 %v7721_v28  ;;  %10298 = vst [vmem:[#allocation60_spill] sm:$0xff] %v9045_v60  ;;  %v5140_v54 = vshll.u32 %v9032_v33, 16  ;;  %v7858_v20 = vld [vmem:[#allocation2 + $0x78] sm:$0xff]  }
 0x1fe   :  { %v9041_v27 = vadd.f32 %v8617_v58, %v3529_v52  ;;  %v3531_v47 = vpop.f32.mrb[59].mxu0  ;;  %7410 = vmatprep.subr.bf16.mxu0 %v7726_v39  ;;  %v5131_v43 = vor.u32 %v5130_v44, %v5126_v8  ;;  %v5135_v51 = vrot.slane %v5133_v0, 1  ;;  %v7856_v58 = vld [vmem:[#allocation2 + $0x6c] sm:$0xff]   ;;  %v2111_v52 = vrot.slane %v7857_v49, 1 }
 0x1ff   :  { %5859 = vmatmul.mubr.bf16.gmra.mrb[180].mxu1 %v8974_v48  ;;  %v2110_v28 = vrot.slane %v7856_v58, 1  ;;  %v2113_v38 = vrot.slane %v7858_v20, 1  ;;  %v7859_v47 = vld [vmem:[#allocation2 + $0x80] ss:$0 sps:$4 sm:$0x11]   ;;  %v5142_v8 = vrot.slane %v5140_v54, 1 }
 0x200   :  { %5866 = vmatprep.mubr.bf16.mxu1 %v5124_v61  ;;  %7347 = vmatmul.mubr.bf16.gmra.mrb[164].mxu0 %v2106_v59  ;;  %v2114_v61 = vrot.slane %v7859_v47, 1  ;;  %v5138_v59 = vshrl.u32 %v9032_v33, 16  ;;  %v5145_v44 = vshll.u32 %v9045_v60, 16  ;;  %v9058_v49 = vld [vmem:[#allocation2 + $0x6c] sm:$0xff]  }
 0x201   :  { %7350 = vmatprep.mubr.bf16.mxu0 %v2109_v57  ;;  %7411 = vmatpush3.bf16.msra.mxu0 %v7726_v39  ;;  %v5136_v39 = vsel %vm1665_vm9, %v5131_v43, %v5135_v51  ;;  %v2112_v20 = vsel %vm2082_vm8, %v2110_v28, %v2111_v52  ;;  %v5152_v43 = vshll.u32 %v9058_v49, 16 }
 0x202   :  { %v9048_v32 = vpop.f32.mrb[76].mxu1  ;;  %7412 = vmatprep.subr.bf16.mxu0 %v7731_v30  ;;  %v2115_v54 = vsel %vm2082_vm8, %v2113_v38, %v2114_v61 }
 0x203   :  { %10299 = vst [vmem:[#allocation61_spill] sm:$0xff] %v9048_v32  ;;  %v4210_v48 = vpop.f32.mrb[77].mxu1  ;;  %v3534_v23 = vpop.f32.mrb[60].mxu0  ;;  %v7863_v32 = vld [vmem:[#allocation2 + $0x98] ss:$0 sps:$4 sm:$0x11]  }
 0x204   :  { %v9050_v25 = vpop.f32.mrb[78].mxu1  ;;  %v9055_v0 = vadd.f32 %v8607_v56, %v3534_v23  ;;  %v3536_v57 = vpop.f32.mrb[61].mxu0  ;;  %v5143_v56 = vor.u32 %v5142_v8, %v5138_v59  ;;  %v5147_v23 = vrot.slane %v5145_v44, 1  ;;  %v2120_v38 = vrot.slane %v7863_v32, 1  ;;  %v9074_v44 = vld [vmem:[#allocation2 + $0x78] sm:$0xff]  }
 0x205   :  { %10300 = vst [vmem:[#allocation62_spill] sm:$0xff] %v9050_v25  ;;  %v4213_v58 = vpop.f32.mrb[79].mxu1  ;;  %v3537_v48 = vpop.f32.mrb[62].mxu0  ;;  %7413 = vmatpush3.bf16.msra.mxu0 %v7731_v30  ;;  %v9066_v57 = vld [vmem:[#allocation2 + $0x74] ss:$0 sps:$4 sm:$0x11]  }
 0x206   :  { %v9062_v47 = vadd.f32 %v8614_v62, %v3537_v48  ;;  %v3539_v25 = vpop.f32.mrb[63].mxu0  ;;  %10301 = vst [vmem:[#allocation63_spill] sm:$0xff] %v9066_v57  ;;  %v7860_v30 = vld [vmem:[#allocation2 + $0x84] sm:$0xff]   ;;  %v7861_v62 = vld [vmem:[#allocation2 + $0x8c] ss:$0 sps:$4 sm:$0x11]   ;;  %v5148_v8 = vsel %vm1665_vm9, %v5143_v56, %v5147_v23 }
 0x207   :  { %5867 = vmatmul.mubr.bf16.gmra.mrb[184].mxu1 %v8990_v40  ;;  %v2116_v28 = vrot.slane %v7860_v30, 1  ;;  %v2117_v52 = vrot.slane %v7861_v62, 1  ;;  %v7862_v58 = vld [vmem:[#allocation2 + $0x90] sm:$0xff]   ;;  %v5150_v30 = vshrl.u32 %v9058_v49, 16  ;;  %v5154_v62 = vrot.slane %v5152_v43, 1 }
 0x208   :  { %5874 = vmatprep.mubr.bf16.mxu1 %v5136_v39  ;;  %7351 = vmatmul.mubr.bf16.gmra.mrb[168].mxu0 %v2112_v20  ;;  %v2119_v48 = vrot.slane %v7862_v58, 1  ;;  %v5164_v23 = vshll.u32 %v9074_v44, 16  ;;  %v5162_v60 = vshrl.u32 %v9074_v44, 16 }
 0x209   :  { %7354 = vmatprep.mubr.bf16.mxu0 %v2115_v54  ;;  %v2118_v32 = vsel %vm2082_vm8, %v2116_v28, %v2117_v52  ;;  %v5155_v43 = vor.u32 %v5154_v62, %v5150_v30  ;;  %v7864_v28 = vld [vmem:[#allocation2 + $0x9c] sm:$0xff]  }
 0x20a   :  { %v9069_v51 = vpop.f32.mrb[80].mxu1  ;;  %v2121_v56 = vsel %vm2082_vm8, %v2119_v48, %v2120_v38  ;;  %v2122_v52 = vrot.slane %v7864_v28, 1  ;;  %v2126_v48 = vrot.slane %v7867_v24, 1 }
 0x20b   :  { %10302 = vst [vmem:[#allocation64_spill] sm:$0xff] %v9069_v51  ;;  %v4218_v25 = vpop.f32.mrb[81].mxu1  ;;  %v3542_v61 = vpop.f32.mrb[64].mxu0 }
 0x20c   :  { %v9071_v59 = vpop.f32.mrb[82].mxu1  ;;  %v9077_v39 = vadd.f32 %v8634_v31, %v3542_v61  ;;  %v3544_v20 = vpop.f32.mrb[65].mxu0  ;;  %v5157_v25 = vshll.u32 %v9066_v57, 16  ;;  %v9087_v31 = vld [vmem:[#allocation2 + $0x80] ss:$0 sps:$4 sm:$0x11]  }
 0x20d   :  { %10303 = vst [vmem:[#allocation65_spill] sm:$0xff] %v9071_v59  ;;  %v4221_v54 = vpop.f32.mrb[83].mxu1  ;;  %v3545_v58 = vpop.f32.mrb[66].mxu0  ;;  %10304 = vst [vmem:[#allocation66_spill] sm:$0xff] %v9087_v31  ;;  %v5169_v30 = vshll.u32 %v9087_v31, 16  ;;  %v9116_v31 = vld [vmem:[#allocation2 + $0x90] sm:$0xff]  }
 0x20e   :  { %v9083_v51 = vadd.f32 %v8641_v21, %v3545_v58  ;;  %v3547_v59 = vpop.f32.mrb[67].mxu0  ;;  %v5159_v61 = vrot.slane %v5157_v25, 1  ;;  %v7865_v21 = vld [vmem:[#allocation2 + $0xa4] ss:$0 sps:$4 sm:$0x11]   ;;  %v7866_v58 = vld [vmem:[#allocation2 + $0xa8] sm:$0xff]  }
 0x20f   :  { %5875 = vmatmul.mubr.bf16.gmra.mrb[188].mxu1 %v9016_v11  ;;  %v2123_v54 = vrot.slane %v7865_v21, 1  ;;  %v2125_v57 = vrot.slane %v7866_v58, 1  ;;  %v9100_v21 = vld [vmem:[#allocation2 + $0x84] sm:$0xff]  }
 0x210   :  { %5882 = vmatprep.mubr.bf16.mxu1 %v5148_v8  ;;  %7355 = vmatmul.mubr.bf16.gmra.mrb[172].mxu0 %v2118_v32  ;;  %v5166_v32 = vrot.slane %v5164_v23, 1  ;;  %v5160_v28 = vsel %vm1665_vm9, %v5155_v43, %v5159_v61  ;;  %v5176_v43 = vshll.u32 %v9100_v21, 16 }
 0x211   :  { %7358 = vmatprep.mubr.bf16.mxu0 %v2121_v56  ;;  %v2124_v24 = vsel %vm2082_vm8, %v2122_v52, %v2123_v54  ;;  %v2127_v23 = vsel %vm2082_vm8, %v2125_v57, %v2126_v48  ;;  %v7869_v54 = vld [vmem:[#allocation2 + $0xbc] ss:$0 sps:$4 sm:$0x11]   ;;  %v7871_v48 = vld [vmem:[#allocation2 + $0xe0] ss:$0 sps:$4 sm:$0x11]  }
 0x212   :  { %v9090_v20 = vpop.f32.mrb[84].mxu1 }
 0x213   :  { %10305 = vst [vmem:[#allocation67_spill] sm:$0xff] %v9090_v20  ;;  %v4226_v59 = vpop.f32.mrb[85].mxu1  ;;  %v3550_v38 = vpop.f32.mrb[68].mxu0  ;;  %v7870_v20 = vld [vmem:[#allocation2 + $0xd8] sm:$0xff]  }
 0x214   :  { %v9092_v8 = vpop.f32.mrb[86].mxu1  ;;  %v9097_v62 = vadd.f32 %v8630_v17, %v3550_v38  ;;  %v3552_v25 = vpop.f32.mrb[69].mxu0  ;;  %v5167_v17 = vor.u32 %v5166_v32, %v5162_v60  ;;  %v5171_v38 = vrot.slane %v5169_v30, 1  ;;  %v2131_v57 = vrot.slane %v7870_v20, 1 }
 0x215   :  { %10306 = vst [vmem:[#allocation68_spill] sm:$0xff] %v9092_v8  ;;  %v4229_v56 = vpop.f32.mrb[87].mxu1  ;;  %v3553_v59 = vpop.f32.mrb[70].mxu0  ;;  %v9108_v25 = vld [vmem:[#allocation2 + $0x8c] ss:$0 sps:$4 sm:$0x11]  }
 0x216   :  { %v9104_v58 = vadd.f32 %v8636_v41, %v3553_v59  ;;  %v3555_v8 = vpop.f32.mrb[71].mxu0  ;;  %10307 = vst [vmem:[#allocation69_spill] sm:$0xff] %v9108_v25  ;;  %v7868_v56 = vld [vmem:[#allocation2 + $0xb4] sm:$0xff]   ;;  %v2129_v41 = vrot.slane %v7869_v54, 1  ;;  %v2132_v60 = vrot.slane %v7871_v48, 1  ;;  %v5178_v54 = vrot.slane %v5176_v43, 1 }
 0x217   :  { %5883 = vmatmul.mubr.bf16.gmra.mrb[192].mxu1 %v9032_v33  ;;  %v2128_v52 = vrot.slane %v7868_v56, 1  ;;  %v5181_v20 = vshll.u32 %v9108_v25, 16 }
 0x218   :  { %5890 = vmatprep.mubr.bf16.mxu1 %v5160_v28  ;;  %7359 = vmatmul.mubr.bf16.gmra.mrb[176].mxu0 %v2124_v24  ;;  %v5172_v28 = vsel %vm1665_vm9, %v5167_v17, %v5171_v38  ;;  %v5174_v24 = vshrl.u32 %v9100_v21, 16 }
 0x219   :  { %7362 = vmatprep.mubr.bf16.mxu0 %v2127_v23  ;;  %v2130_v48 = vsel %vm2082_vm8, %v2128_v52, %v2129_v41  ;;  %v7873_v41 = vld [vmem:[#allocation2 + $0xec] ss:$0 sps:$4 sm:$0x11]  }
 0x21a   :  { %v4232_v61 = vpop.f32.mrb[88].mxu1  ;;  %v5179_v43 = vor.u32 %v5178_v54, %v5174_v24 }
 0x21b   :  { %v9112_v8 = vadd.f32 %v4232_v61, %v8993_v3  ;;  %v4234_v59 = vpop.f32.mrb[89].mxu1  ;;  %v3558_v32 = vpop.f32.mrb[72].mxu0 }
 0x21c   :  { %v4235_v30 = vpop.f32.mrb[90].mxu1  ;;  %v9119_v23 = vadd.f32 %v8669_v9, %v3558_v32  ;;  %v3560_v56 = vpop.f32.mrb[73].mxu0  ;;  %v2133_v9 = vsel %vm2082_vm8, %v2131_v57, %v2132_v60  ;;  %v9131_v32 = vld [vmem:[#allocation2 + $0x98] ss:$0 sps:$4 sm:$0x11]  }
 0x21d   :  { %10308 = vst [vmem:[#allocation70_spill] sm:$0xff] %v9112_v8  ;;  %v9122_v3 = vadd.f32 %v4235_v30, %v8999_v53  ;;  %v4237_v61 = vpop.f32.mrb[91].mxu1  ;;  %v3561_v59 = vpop.f32.mrb[74].mxu0  ;;  %v5188_v53 = vshll.u32 %v9116_v31, 16  ;;  %v5183_v30 = vrot.slane %v5181_v20, 1  ;;  %v5193_v54 = vshll.u32 %v9131_v32, 16 }
 0x21e   :  { %v9127_v17 = vadd.f32 %v8675_v15, %v3561_v59  ;;  %v3563_v38 = vpop.f32.mrb[75].mxu0  ;;  %v7872_v61 = vld [vmem:[#allocation2 + $0xe4] sm:$0xff]   ;;  %v2135_v15 = vrot.slane %v7873_v41, 1  ;;  %v7875_v60 = vld [vmem:[#allocation2 + $0xf8] ss:$0 sps:$4 sm:$0x11]  }
 0x21f   :  { %10309 = vst [vmem:[#allocation71_spill] sm:$0xff] %v9122_v3  ;;  %5891 = vmatmul.mubr.bf16.gmra.mrb[196].mxu1 %v9058_v49  ;;  %v2134_v52 = vrot.slane %v7872_v61, 1  ;;  %v7874_v3 = vld [vmem:[#allocation2 + $0xf0] sm:$0xff]   ;;  %v5190_v24 = vrot.slane %v5188_v53, 1 }
 0x220   :  { %5898 = vmatprep.mubr.bf16.mxu1 %v5172_v28  ;;  %7363 = vmatmul.mubr.bf16.gmra.mrb[180].mxu0 %v2130_v48  ;;  %v2137_v57 = vrot.slane %v7874_v3, 1  ;;  %v2138_v28 = vrot.slane %v7875_v60, 1  ;;  %v5186_v48 = vshrl.u32 %v9116_v31, 16  ;;  %v9146_v3 = vld [vmem:[#allocation2 + $0x9c] sm:$0xff]  }
 0x221   :  { %7366 = vmatprep.mubr.bf16.mxu0 %v2133_v9 }
 0x222   :  { %v4240_v56 = vpop.f32.mrb[92].mxu1 }
 0x223   :  { %v9135_v59 = vadd.f32 %v4240_v56, %v9013_v36  ;;  %v4242_v38 = vpop.f32.mrb[93].mxu1  ;;  %v3566_v8 = vpop.f32.mrb[76].mxu0  ;;  %v5184_v56 = vsel %vm1665_vm9, %v5179_v43, %v5183_v30  ;;  %v5200_v43 = vshll.u32 %v9146_v3, 16 }
 0x224   :  { %v4243_v25 = vpop.f32.mrb[94].mxu1  ;;  %v9140_v20 = vadd.f32 %v8667_v2, %v3566_v8  ;;  %v3568_v9 = vpop.f32.mrb[77].mxu0  ;;  %v2136_v38 = vsel %vm2082_vm8, %v2134_v52, %v2135_v15  ;;  %v2139_v2 = vsel %vm2082_vm8, %v2137_v57, %v2138_v28  ;;  %v5191_v8 = vor.u32 %v5190_v24, %v5186_v48  ;;  %v7877_v15 = vld [vmem:[#allocation2 + $0x104] ss:$0 sps:$4 sm:$0x11]  }
 0x225   :  { %10310 = vst [vmem:[#allocation72_spill] sm:$0xff] %v9135_v59  ;;  %v9143_v61 = vadd.f32 %v4243_v25, %v9020_v46  ;;  %v4245_v36 = vpop.f32.mrb[95].mxu1  ;;  %v3569_v41 = vpop.f32.mrb[78].mxu0  ;;  %v5195_v46 = vrot.slane %v5193_v54, 1  ;;  %v7876_v9 = vld [vmem:[#allocation2 + $0xfc] sm:$0xff]  }
 0x226   :  { %v9150_v60 = vadd.f32 %v8673_v14, %v3569_v41  ;;  %v3571_v53 = vpop.f32.mrb[79].mxu0  ;;  %v9154_v25 = vld [vmem:[#allocation2 + $0xa4] ss:$0 sps:$4 sm:$0x11]   ;;  %v2140_v52 = vrot.slane %v7876_v9, 1  ;;  %v2141_v14 = vrot.slane %v7877_v15, 1 }
 0x227   :  { %10311 = vst [vmem:[#allocation73_spill] sm:$0xff] %v9143_v61  ;;  %5899 = vmatmul.mubr.bf16.gmra.mrb[200].mxu1 %v9074_v44  ;;  %v7878_v53 = vld [vmem:[#allocation2 + $0x108] sm:$0xff]   ;;  %v7879_v28 = vld [vmem:[#allocation2 + $0x110] ss:$0 sps:$4 sm:$0x11]   ;;  %v5202_v15 = vrot.slane %v5200_v43, 1 }
 0x228   :  { %5906 = vmatprep.mubr.bf16.mxu1 %v5184_v56  ;;  %7367 = vmatmul.mubr.bf16.gmra.mrb[184].mxu0 %v2136_v38  ;;  %v2143_v57 = vrot.slane %v7878_v53, 1  ;;  %v2144_v48 = vrot.slane %v7879_v28, 1  ;;  %v5196_v56 = vsel %vm1665_vm9, %v5191_v8, %v5195_v46  ;;  %v5198_v38 = vshrl.u32 %v9146_v3, 16  ;;  %v9162_v61 = vld [vmem:[#allocation2 + $0xa8] sm:$0xff]  }
 0x229   :  { %7370 = vmatprep.mubr.bf16.mxu0 %v2139_v2  ;;  %v2142_v28 = vsel %vm2082_vm8, %v2140_v52, %v2141_v14  ;;  %v7881_v14 = vld [vmem:[#allocation2 + $0x11c] ss:$0 sps:$4 sm:$0x11]  }
 0x22a   :  { %v4248_v30 = vpop.f32.mrb[96].mxu1  ;;  %v5203_v43 = vor.u32 %v5202_v15, %v5198_v38 }
 0x22b   :  { %v9158_v36 = vadd.f32 %v4248_v30, %v9035_v26  ;;  %v4250_v41 = vpop.f32.mrb[97].mxu1  ;;  %v3574_v24 = vpop.f32.mrb[80].mxu0 }
 0x22c   :  { %v4251_v54 = vpop.f32.mrb[98].mxu1  ;;  %v9165_v2 = vadd.f32 %v8704_v5, %v3574_v24  ;;  %v3576_v9 = vpop.f32.mrb[81].mxu0  ;;  %v5205_v41 = vshll.u32 %v9154_v25, 16  ;;  %v2145_v5 = vsel %vm2082_vm8, %v2143_v57, %v2144_v48  ;;  %v9177_v24 = vld [vmem:[#allocation2 + $0xb0] ss:$0 sps:$4 sm:$0x11]  }
 0x22d   :  { %10312 = vst [vmem:[#allocation74_spill] sm:$0xff] %v9158_v36  ;;  %v9168_v26 = vadd.f32 %v4251_v54, %v9041_v27  ;;  %v4253_v30 = vpop.f32.mrb[99].mxu1  ;;  %v3577_v53 = vpop.f32.mrb[82].mxu0  ;;  %v5212_v27 = vshll.u32 %v9162_v61, 16  ;;  %v5217_v15 = vshll.u32 %v9177_v24, 16 }
 0x22e   :  { %v9173_v8 = vadd.f32 %v8710_v13, %v3577_v53  ;;  %v3579_v46 = vpop.f32.mrb[83].mxu0  ;;  %v5207_v54 = vrot.slane %v5205_v41, 1  ;;  %v7880_v30 = vld [vmem:[#allocation2 + $0x114] sm:$0xff]   ;;  %v2147_v13 = vrot.slane %v7881_v14, 1 }
 0x22f   :  { %10313 = vst [vmem:[#allocation75_spill] sm:$0xff] %v9168_v26  ;;  %5907 = vmatmul.mubr.bf16.gmra.mrb[204].mxu1 %v9100_v21  ;;  %v2146_v52 = vrot.slane %v7880_v30, 1  ;;  %v7882_v26 = vld [vmem:[#allocation2 + $0x120] sm:$0xff]   ;;  %v7883_v48 = vld [vmem:[#allocation2 + $0x128] ss:$0 sps:$4 sm:$0x11]  }
 0x230   :  { %5914 = vmatprep.mubr.bf16.mxu1 %v5196_v56  ;;  %7371 = vmatmul.mubr.bf16.gmra.mrb[188].mxu0 %v2142_v28  ;;  %v2149_v57 = vrot.slane %v7882_v26, 1  ;;  %v2150_v56 = vrot.slane %v7883_v48, 1  ;;  %v5210_v28 = vshrl.u32 %v9162_v61, 16  ;;  %v5214_v38 = vrot.slane %v5212_v27, 1  ;;  %v9192_v26 = vld [vmem:[#allocation2 + $0xb4] sm:$0xff]  }
 0x231   :  { %7374 = vmatprep.mubr.bf16.mxu0 %v2145_v5 }
 0x232   :  { %v4256_v9 = vpop.f32.mrb[100].mxu1 }
 0x233   :  { %v9181_v53 = vadd.f32 %v4256_v9, %v9055_v0  ;;  %v4258_v46 = vpop.f32.mrb[101].mxu1  ;;  %v3582_v36 = vpop.f32.mrb[84].mxu0  ;;  %v5208_v9 = vsel %vm1665_vm9, %v5203_v43, %v5207_v54  ;;  %v5224_v43 = vshll.u32 %v9192_v26, 16 }
 0x234   :  { %v4259_v59 = vpop.f32.mrb[102].mxu1  ;;  %v9186_v41 = vadd.f32 %v8701_v42, %v3582_v36  ;;  %v3584_v5 = vpop.f32.mrb[85].mxu0  ;;  %v2148_v46 = vsel %vm2082_vm8, %v2146_v52, %v2147_v13  ;;  %v2151_v42 = vsel %vm2082_vm8, %v2149_v57, %v2150_v56  ;;  %v5215_v36 = vor.u32 %v5214_v38, %v5210_v28  ;;  %v7885_v13 = vld [vmem:[#allocation2 + $0x134] ss:$0 sps:$4 sm:$0x11]  }
 0x235   :  { %10314 = vst [vmem:[#allocation76_spill] sm:$0xff] %v9181_v53  ;;  %v9189_v30 = vadd.f32 %v4259_v59, %v9062_v47  ;;  %v4261_v0 = vpop.f32.mrb[103].mxu1  ;;  %v3585_v14 = vpop.f32.mrb[86].mxu0  ;;  %v5219_v47 = vrot.slane %v5217_v15, 1  ;;  %v7884_v5 = vld [vmem:[#allocation2 + $0x12c] sm:$0xff]  }
 0x236   :  { %v9196_v48 = vadd.f32 %v8708_v4, %v3585_v14  ;;  %v3587_v27 = vpop.f32.mrb[87].mxu0  ;;  %v9200_v59 = vld [vmem:[#allocation2 + $0xbc] ss:$0 sps:$4 sm:$0x11]   ;;  %v2152_v52 = vrot.slane %v7884_v5, 1  ;;  %v2153_v4 = vrot.slane %v7885_v13, 1 }
 0x237   :  { %10315 = vst [vmem:[#allocation77_spill] sm:$0xff] %v9189_v30  ;;  %5915 = vmatmul.mubr.bf16.gmra.mrb[208].mxu1 %v9116_v31  ;;  %v7886_v27 = vld [vmem:[#allocation2 + $0x138] sm:$0xff]   ;;  %v7887_v56 = vld [vmem:[#allocation2 + $0x140] ss:$0 sps:$4 sm:$0x11]   ;;  %v5226_v13 = vrot.slane %v5224_v43, 1 }
 0x238   :  { %5922 = vmatprep.mubr.bf16.mxu1 %v5208_v9  ;;  %7375 = vmatmul.mubr.bf16.gmra.mrb[192].mxu0 %v2148_v46  ;;  %v2155_v57 = vrot.slane %v7886_v27, 1  ;;  %v2156_v28 = vrot.slane %v7887_v56, 1  ;;  %v5220_v9 = vsel %vm1665_vm9, %v5215_v36, %v5219_v47  ;;  %v5222_v46 = vshrl.u32 %v9192_v26, 16  ;;  %v9208_v30 = vld [vmem:[#allocation2 + $0xc0] sm:$0xff]  }
 0x239   :  { %7378 = vmatprep.mubr.bf16.mxu0 %v2151_v42  ;;  %v2154_v56 = vsel %vm2082_vm8, %v2152_v52, %v2153_v4  ;;  %v7889_v4 = vld [vmem:[#allocation2 + $0x14c] ss:$0 sps:$4 sm:$0x11]  }
 0x23a   :  { %v4264_v54 = vpop.f32.mrb[104].mxu1  ;;  %v5227_v43 = vor.u32 %v5226_v13, %v5222_v46 }
 0x23b   :  { %v9204_v0 = vadd.f32 %v4264_v54, %v9077_v39  ;;  %v4266_v14 = vpop.f32.mrb[105].mxu1  ;;  %v3590_v38 = vpop.f32.mrb[88].mxu0 }
 0x23c   :  { %v4267_v15 = vpop.f32.mrb[106].mxu1  ;;  %v9211_v42 = vadd.f32 %v8740_v22, %v3590_v38  ;;  %v3592_v5 = vpop.f32.mrb[89].mxu0  ;;  %v5229_v14 = vshll.u32 %v9200_v59, 16  ;;  %v2157_v22 = vsel %vm2082_vm8, %v2155_v57, %v2156_v28  ;;  %v9223_v38 = vld [vmem:[#allocation2 + $0xc8] ss:$0 sps:$4 sm:$0x11]  }
 0x23d   :  { %10316 = vst [vmem:[#allocation78_spill] sm:$0xff] %v9204_v0  ;;  %v9214_v39 = vadd.f32 %v4267_v15, %v9083_v51  ;;  %v4269_v54 = vpop.f32.mrb[107].mxu1  ;;  %v3593_v27 = vpop.f32.mrb[90].mxu0  ;;  %v5236_v51 = vshll.u32 %v9208_v30, 16  ;;  %v5241_v13 = vshll.u32 %v9223_v38, 16 }
 0x23e   :  { %v9219_v36 = vadd.f32 %v8746_v34, %v3593_v27  ;;  %v3595_v47 = vpop.f32.mrb[91].mxu0  ;;  %v5231_v15 = vrot.slane %v5229_v14, 1  ;;  %v7888_v54 = vld [vmem:[#allocation2 + $0x144] sm:$0xff]   ;;  %v2159_v34 = vrot.slane %v7889_v4, 1 }
 0x23f   :  { %10317 = vst [vmem:[#allocation79_spill] sm:$0xff] %v9214_v39  ;;  %5923 = vmatmul.mubr.bf16.gmra.mrb[212].mxu1 %v9146_v3  ;;  %v2158_v52 = vrot.slane %v7888_v54, 1  ;;  %v7890_v39 = vld [vmem:[#allocation2 + $0x150] sm:$0xff]   ;;  %v7891_v28 = vld [vmem:[#allocation2 + $0x158] ss:$0 sps:$4 sm:$0x11]  }
 0x240   :  { %5930 = vmatprep.mubr.bf16.mxu1 %v5220_v9  ;;  %7379 = vmatmul.mubr.bf16.gmra.mrb[196].mxu0 %v2154_v56  ;;  %v2161_v57 = vrot.slane %v7890_v39, 1  ;;  %v2162_v9 = vrot.slane %v7891_v28, 1  ;;  %v5234_v56 = vshrl.u32 %v9208_v30, 16  ;;  %v5238_v46 = vrot.slane %v5236_v51, 1  ;;  %v9238_v39 = vld [vmem:[#allocation2 + $0xcc] sm:$0xff]  }
 0x241   :  { %7382 = vmatprep.mubr.bf16.mxu0 %v2157_v22 }
 0x242   :  { %v4272_v5 = vpop.f32.mrb[108].mxu1 }
 0x243   :  { %v9227_v27 = vadd.f32 %v4272_v5, %v9097_v62  ;;  %v4274_v47 = vpop.f32.mrb[109].mxu1  ;;  %v3598_v0 = vpop.f32.mrb[92].mxu0  ;;  %v5232_v5 = vsel %vm1665_vm9, %v5227_v43, %v5231_v15  ;;  %v5248_v43 = vshll.u32 %v9238_v39, 16 }
 0x244   :  { %v4275_v53 = vpop.f32.mrb[110].mxu1  ;;  %v9232_v14 = vadd.f32 %v8737_v18, %v3598_v0  ;;  %v3600_v22 = vpop.f32.mrb[93].mxu0  ;;  %v2160_v47 = vsel %vm2082_vm8, %v2158_v52, %v2159_v34  ;;  %v2163_v18 = vsel %vm2082_vm8, %v2161_v57, %v2162_v9  ;;  %v5239_v0 = vor.u32 %v5238_v46, %v5234_v56  ;;  %v7893_v34 = vld [vmem:[#allocation2 + $0x164] ss:$0 sps:$4 sm:$0x11]  }
 0x245   :  { %10318 = vst [vmem:[#allocation80_spill] sm:$0xff] %v9227_v27  ;;  %v9235_v54 = vadd.f32 %v4275_v53, %v9104_v58  ;;  %v4277_v62 = vpop.f32.mrb[111].mxu1  ;;  %v3601_v4 = vpop.f32.mrb[94].mxu0  ;;  %v5243_v58 = vrot.slane %v5241_v13, 1  ;;  %v7892_v22 = vld [vmem:[#allocation2 + $0x15c] sm:$0xff]  }
 0x246   :  { %v9242_v28 = vadd.f32 %v8744_v12, %v3601_v4  ;;  %v3603_v51 = vpop.f32.mrb[95].mxu0  ;;  %v9246_v53 = vld [vmem:[#allocation2 + $0xd4] ss:$0 sps:$4 sm:$0x11]   ;;  %v2164_v52 = vrot.slane %v7892_v22, 1  ;;  %v2165_v12 = vrot.slane %v7893_v34, 1 }
 0x247   :  { %10319 = vst [vmem:[#allocation81_spill] sm:$0xff] %v9235_v54  ;;  %5931 = vmatmul.mubr.bf16.gmra.mrb[216].mxu1 %v9162_v61  ;;  %v7894_v51 = vld [vmem:[#allocation2 + $0x168] sm:$0xff]   ;;  %v7895_v9 = vld [vmem:[#allocation2 + $0x170] ss:$0 sps:$4 sm:$0x11]   ;;  %v5250_v34 = vrot.slane %v5248_v43, 1 }
 0x248   :  { %5938 = vmatprep.mubr.bf16.mxu1 %v5232_v5  ;;  %7383 = vmatmul.mubr.bf16.gmra.mrb[200].mxu0 %v2160_v47  ;;  %v2167_v57 = vrot.slane %v7894_v51, 1  ;;  %v2168_v56 = vrot.slane %v7895_v9, 1  ;;  %v5244_v5 = vsel %vm1665_vm9, %v5239_v0, %v5243_v58  ;;  %v5246_v47 = vshrl.u32 %v9238_v39, 16  ;;  %v9254_v54 = vld [vmem:[#allocation2 + $0xf0] sm:$0xff]  }
 0x249   :  { %7386 = vmatprep.mubr.bf16.mxu0 %v2163_v18  ;;  %v2166_v9 = vsel %vm2082_vm8, %v2164_v52, %v2165_v12  ;;  %v7897_v12 = vld [vmem:[#allocation2 + $0x17c] ss:$0 sps:$4 sm:$0x11]  }
 0x24a   :  { %v4280_v15 = vpop.f32.mrb[112].mxu1  ;;  %v5251_v43 = vor.u32 %v5250_v34, %v5246_v47 }
 0x24b   :  { %v9250_v62 = vadd.f32 %v4280_v15, %v9119_v23  ;;  %v4282_v4 = vpop.f32.mrb[113].mxu1  ;;  %v3606_v46 = vpop.f32.mrb[96].mxu0 }
 0x24c   :  { %v4283_v13 = vpop.f32.mrb[114].mxu1  ;;  %v9257_v18 = vadd.f32 %v8773_v6, %v3606_v46  ;;  %v3608_v22 = vpop.f32.mrb[97].mxu0  ;;  %v5253_v4 = vshll.u32 %v9246_v53, 16  ;;  %v2169_v6 = vsel %vm2082_vm8, %v2167_v57, %v2168_v56  ;;  %v9269_v46 = vld [vmem:[#allocation2 + $0xf8] ss:$0 sps:$4 sm:$0x11]  }
 0x24d   :  { %10320 = vst [vmem:[#allocation82_spill] sm:$0xff] %v9250_v62  ;;  %v9260_v23 = vadd.f32 %v4283_v13, %v9127_v17  ;;  %v4285_v15 = vpop.f32.mrb[115].mxu1  ;;  %v3609_v51 = vpop.f32.mrb[98].mxu0  ;;  %v5260_v17 = vshll.u32 %v9254_v54, 16  ;;  %v5265_v34 = vshll.u32 %v9269_v46, 16 }
 0x24e   :  { %v9265_v0 = vadd.f32 %v8780_v45, %v3609_v51  ;;  %v3611_v58 = vpop.f32.mrb[99].mxu0  ;;  %v5255_v13 = vrot.slane %v5253_v4, 1  ;;  %v7896_v15 = vld [vmem:[#allocation2 + $0x174] sm:$0xff]   ;;  %v2171_v45 = vrot.slane %v7897_v12, 1 }
 0x24f   :  { %10321 = vst [vmem:[#allocation83_spill] sm:$0xff] %v9260_v23  ;;  %5939 = vmatmul.mubr.bf16.gmra.mrb[220].mxu1 %v9192_v26  ;;  %v2170_v52 = vrot.slane %v7896_v15, 1  ;;  %v7898_v23 = vld [vmem:[#allocation2 + $0x180] sm:$0xff]   ;;  %v7899_v56 = vld [vmem:[#allocation2 + $0x188] ss:$0 sps:$4 sm:$0x11]  }
 0x250   :  { %5946 = vmatprep.mubr.bf16.mxu1 %v5244_v5  ;;  %7387 = vmatmul.mubr.bf16.gmra.mrb[204].mxu0 %v2166_v9  ;;  %v2173_v57 = vrot.slane %v7898_v23, 1  ;;  %v2174_v5 = vrot.slane %v7899_v56, 1  ;;  %v5258_v9 = vshrl.u32 %v9254_v54, 16  ;;  %v5262_v47 = vrot.slane %v5260_v17, 1  ;;  %v9284_v23 = vld [vmem:[#allocation2 + $0xfc] sm:$0xff]  }
 0x251   :  { %7390 = vmatprep.mubr.bf16.mxu0 %v2169_v6 }
 0x252   :  { %v4288_v22 = vpop.f32.mrb[116].mxu1 }
 0x253   :  { %v9273_v51 = vadd.f32 %v4288_v22, %v9140_v20  ;;  %v4290_v58 = vpop.f32.mrb[117].mxu1  ;;  %v3614_v62 = vpop.f32.mrb[100].mxu0  ;;  %v5256_v22 = vsel %vm1665_vm9, %v5251_v43, %v5255_v13  ;;  %v5272_v43 = vshll.u32 %v9284_v23, 16 }
 0x254   :  { %v4291_v27 = vpop.f32.mrb[118].mxu1  ;;  %v9278_v4 = vadd.f32 %v8770_v19, %v3614_v62  ;;  %v3616_v6 = vpop.f32.mrb[101].mxu0  ;;  %v2172_v58 = vsel %vm2082_vm8, %v2170_v52, %v2171_v45  ;;  %v2175_v19 = vsel %vm2082_vm8, %v2173_v57, %v2174_v5  ;;  %v5263_v62 = vor.u32 %v5262_v47, %v5258_v9  ;;  %v7901_v45 = vld [vmem:[#allocation2 + $0x194] ss:$0 sps:$4 sm:$0x11]  }
 0x255   :  { %10322 = vst [vmem:[#allocation84_spill] sm:$0xff] %v9273_v51  ;;  %v9281_v15 = vadd.f32 %v4291_v27, %v9150_v60  ;;  %v4293_v20 = vpop.f32.mrb[119].mxu1  ;;  %v3617_v12 = vpop.f32.mrb[102].mxu0  ;;  %v5267_v60 = vrot.slane %v5265_v34, 1  ;;  %v7900_v6 = vld [vmem:[#allocation2 + $0x18c] sm:$0xff]  }
 0x256   :  { %v9288_v56 = vadd.f32 %v8776_v10, %v3617_v12  ;;  %v3619_v17 = vpop.f32.mrb[103].mxu0  ;;  %v9292_v27 = vld [vmem:[#allocation2 + $0x104] ss:$0 sps:$4 sm:$0x11]   ;;  %v2176_v52 = vrot.slane %v7900_v6, 1  ;;  %v2177_v10 = vrot.slane %v7901_v45, 1 }
 0x257   :  { %10323 = vst [vmem:[#allocation85_spill] sm:$0xff] %v9281_v15  ;;  %5947 = vmatmul.mubr.bf16.gmra.mrb[224].mxu1 %v9208_v30  ;;  %v7902_v17 = vld [vmem:[#allocation2 + $0x18] sm:$0xff]   ;;  %v7903_v5 = vld [vmem:[#allocation2 + $0x20] ss:$0 sps:$4 sm:$0x11]   ;;  %v9300_v15 = vld [vmem:[#allocation2 + $0x108] sm:$0xff]  }
 0x258   :  { %5954 = vmatprep.mubr.bf16.mxu1 %v5256_v22  ;;  %7391 = vmatmul.mubr.bf16.gmra.mrb[208].mxu0 %v2172_v58  ;;  %v5481_v57 = vrot.slane %v7902_v17, 1  ;;  %v5482_v9 = vrot.slane %v7903_v5, 1  ;;  %v5268_v22 = vsel %vm1665_vm9, %v5263_v62, %v5267_v60  ;;  %v5270_v58 = vshrl.u32 %v9284_v23, 16 }
 0x259   :  { %7394 = vmatprep.mubr.bf16.mxu0 %v2175_v19  ;;  %v5274_v45 = vrot.slane %v5272_v43, 1  ;;  %v2178_v5 = vsel %vm2082_vm8, %v2176_v52, %v2177_v10  ;;  %v7905_v10 = vld [vmem:[#allocation2 + $0x2c] ss:$0 sps:$4 sm:$0x11]  }
 0x25a   :  { %v4296_v13 = vpop.f32.mrb[120].mxu1 }
 0x25b   :  { %v9296_v20 = vadd.f32 %v4296_v13, %v9165_v2  ;;  %v4298_v12 = vpop.f32.mrb[121].mxu1  ;;  %v3622_v47 = vpop.f32.mrb[104].mxu0  ;;  %v5275_v43 = vor.u32 %v5274_v45, %v5270_v58 }
 0x25c   :  { %v4299_v34 = vpop.f32.mrb[122].mxu1  ;;  %v9303_v19 = vadd.f32 %v8812_v16, %v3622_v47  ;;  %v3624_v6 = vpop.f32.mrb[105].mxu0  ;;  %v5277_v12 = vshll.u32 %v9292_v27, 16  ;;  %v5483_v16 = vsel %vm2082_vm8, %v5481_v57, %v5482_v9  ;;  %v9315_v47 = vld [vmem:[#allocation2 + $0x110] ss:$0 sps:$4 sm:$0x11]  }
 0x25d   :  { %10324 = vst [vmem:[#allocation86_spill] sm:$0xff] %v9296_v20  ;;  %v9306_v2 = vadd.f32 %v4299_v34, %v9173_v8  ;;  %v4301_v13 = vpop.f32.mrb[123].mxu1  ;;  %v3625_v17 = vpop.f32.mrb[106].mxu0  ;;  %v5284_v8 = vshll.u32 %v9300_v15, 16  ;;  %v5289_v45 = vshll.u32 %v9315_v47, 16 }
 0x25e   :  { %v9311_v62 = vadd.f32 %v8818_v1, %v3625_v17  ;;  %v3627_v60 = vpop.f32.mrb[107].mxu0  ;;  %v5279_v34 = vrot.slane %v5277_v12, 1  ;;  %v7904_v13 = vld [vmem:[#allocation2 + $0x24] sm:$0xff]   ;;  %v5485_v1 = vrot.slane %v7905_v10, 1 }
 0x25f   :  { %10325 = vst [vmem:[#allocation87_spill] sm:$0xff] %v9306_v2  ;;  %5955 = vmatmul.mubr.bf16.gmra.mrb[228].mxu1 %v9238_v39  ;;  %v5484_v52 = vrot.slane %v7904_v13, 1  ;;  %v7906_v2 = vld [vmem:[#allocation2 + $0x30] sm:$0xff]   ;;  %v7907_v9 = vld [vmem:[#allocation2 + $0x38] ss:$0 sps:$4 sm:$0x11]  }
 0x260   :  { %5962 = vmatprep.mubr.bf16.mxu1 %v5268_v22  ;;  %7395 = vmatmul.mubr.bf16.gmra.mrb[212].mxu0 %v2178_v5  ;;  %v5487_v57 = vrot.slane %v7906_v2, 1  ;;  %v5488_v22 = vrot.slane %v7907_v9, 1  ;;  %v5282_v5 = vshrl.u32 %v9300_v15, 16  ;;  %v5286_v58 = vrot.slane %v5284_v8, 1  ;;  %v9330_v2 = vld [vmem:[#allocation2 + $0x114] sm:$0xff]  }
 0x261   :  { %7414 = vmatprep.mubr.bf16.mxu0 %v5483_v16 }
 0x262   :  { %v4304_v6 = vpop.f32.mrb[124].mxu1 }
 0x263   :  { %v9319_v17 = vadd.f32 %v4304_v6, %v9186_v41  ;;  %v4306_v60 = vpop.f32.mrb[125].mxu1  ;;  %v3630_v20 = vpop.f32.mrb[108].mxu0  ;;  %v5280_v6 = vsel %vm1665_vm9, %v5275_v43, %v5279_v34  ;;  %v5296_v43 = vshll.u32 %v9330_v2, 16 }
 0x264   :  { %v4307_v51 = vpop.f32.mrb[126].mxu1  ;;  %v9324_v12 = vadd.f32 %v8808_v29, %v3630_v20  ;;  %v3632_v16 = vpop.f32.mrb[109].mxu0  ;;  %v5486_v60 = vsel %vm2082_vm8, %v5484_v52, %v5485_v1  ;;  %v5489_v29 = vsel %vm2082_vm8, %v5487_v57, %v5488_v22  ;;  %v5287_v20 = vor.u32 %v5286_v58, %v5282_v5 }
 0x265   :  { %v9327_v13 = vadd.f32 %v4307_v51, %v9196_v48  ;;  %v4309_v41 = vpop.f32.mrb[127].mxu1  ;;  %v3633_v10 = vpop.f32.mrb[110].mxu0  ;;  %v5291_v48 = vrot.slane %v5289_v45, 1  ;;  %v9338_v51 = vld [vmem:[#allocation2 + $0x11c] ss:$0 sps:$4 sm:$0x11]  }
 0x266   :  { %v9334_v9 = vadd.f32 %v8816_v35, %v3633_v10  ;;  %v3635_v8 = vpop.f32.mrb[111].mxu0  ;;  %v7908_v16 = vld [vmem:[#allocation2 + $0x3c] sm:$0xff]   ;;  %v5491_v35 = vrot.slane %v8981_v7, 1  ;;  %v5493_v57 = vrot.slane %v8990_v40, 1  ;;  %v5494_v22 = vrot.slane %v9003_v50, 1 }
 0x267   :  { %5963 = vmatmul.mubr.bf16.gmra.mrb[232].mxu1 %v9254_v54  ;;  %v5490_v52 = vrot.slane %v7908_v16, 1  ;;  %v5292_v45 = vsel %vm1665_vm9, %v5287_v20, %v5291_v48  ;;  %v9349_v10 = vld [vmem:[#allocation2 + $0x120] sm:$0xff]   ;;  %v5301_v40 = vshll.u32 %v9338_v51, 16  ;;  %v9364_v16 = vld [vmem:[#allocation2 + $0x128] ss:$0 sps:$4 sm:$0x11]  }
 0x268   :  { %5970 = vmatprep.mubr.bf16.mxu1 %v5280_v6  ;;  %7415 = vmatmul.mubr.bf16.vlgmr.msra.gmra.mrb[216].mxu0 %v5486_v60  ;;  %v5294_v6 = vshrl.u32 %v9330_v2, 16 }
 0x269   :  { %7418 = vmatprep.mubr.bf16.mxu0 %v5489_v29  ;;  %v5298_v29 = vrot.slane %v5296_v43, 1 }
 0x26a   :  { %v4312_v34 = vpop.f32.mrb[128].mxu1 }
 0x26b   :  { %v9343_v1 = vadd.f32 %v4312_v34, %v9211_v42  ;;  %v4314_v41 = vpop.f32.mrb[129].mxu1  ;;  %v3638_v5 = vpop.f32.mrb[112].mxu0  ;;  %v5492_v34 = vsel %vm2082_vm8, %v5490_v52, %v5491_v35  ;;  %v5299_v43 = vor.u32 %v5298_v29, %v5294_v6  ;;  %v5496_v52 = vrot.slane %v9016_v11, 1 }
 0x26c   :  { %v4315_v58 = vpop.f32.mrb[130].mxu1  ;;  %v9352_v60 = vadd.f32 %v8840_v37, %v3638_v5  ;;  %v3640_v7 = vpop.f32.mrb[113].mxu0  ;;  %v5495_v37 = vsel %vm2082_vm8, %v5493_v57, %v5494_v22  ;;  %v5303_v41 = vrot.slane %v5301_v40, 1  ;;  %v5499_v57 = vrot.slane %v9032_v33, 1  ;;  %v10326_v22 = vld [vmem:[#allocation60_spill] sm:$0xff]  ;;  %v10327_v40 = vld [vmem:[#allocation22_spill] sm:$0xff] }
 0x26d   :  { %v9355_v42 = vadd.f32 %v4315_v58, %v9219_v36  ;;  %v4317_v8 = vpop.f32.mrb[131].mxu1  ;;  %v3641_v50 = vpop.f32.mrb[114].mxu0  ;;  %v5308_v36 = vshll.u32 %v9349_v10, 16  ;;  %v5313_v29 = vshll.u32 %v9364_v16, 16  ;;  %v9383_v33 = vld [vmem:[#allocation2 + $0x12c] sm:$0xff]  }
 0x26e   :  { %v9360_v20 = vadd.f32 %v8845_v63, %v3641_v50  ;;  %v3643_v48 = vpop.f32.mrb[115].mxu0  ;;  %v5497_v63 = vrot.slane %v9024_v55, 1  ;;  %v5306_v50 = vshrl.u32 %v9349_v10, 16 }
 0x26f   :  { %5971 = vmatmul.mubr.bf16.gmra.mrb[236].mxu1 %v9284_v23  ;;  %v5310_v6 = vrot.slane %v5308_v36, 1  ;;  %v5304_v48 = vsel %vm1665_vm9, %v5299_v43, %v5303_v41  ;;  %v5320_v43 = vshll.u32 %v9383_v33, 16 }
 0x270   :  { %5978 = vmatprep.mubr.bf16.mxu1 %v5292_v45  ;;  %7419 = vmatmul.mubr.bf16.gmra.mrb[220].mxu0 %v5492_v34  ;;  %v5500_v45 = vrot.slane %v10326_v22, 1 }
 0x271   :  { %7422 = vmatprep.mubr.bf16.mxu0 %v5495_v37 }
 0x272   :  { %v4320_v5 = vpop.f32.mrb[132].mxu1 }
 0x273   :  { %v9370_v35 = vadd.f32 %v4320_v5, %v9232_v14  ;;  %v4322_v58 = vpop.f32.mrb[133].mxu1  ;;  %v3646_v7 = vpop.f32.mrb[116].mxu0  ;;  %v5498_v5 = vsel %vm2082_vm8, %v5496_v52, %v5497_v63  ;;  %v5502_v52 = vrot.slane %v9058_v49, 1  ;;  %v10329_v63 = vld [vmem:[#allocation63_spill] sm:$0xff] }
 0x274   :  { %v4323_v8 = vpop.f32.mrb[134].mxu1  ;;  %v9377_v34 = vadd.f32 %v10327_v40, %v3646_v7  ;;  %v3648_v11 = vpop.f32.mrb[117].mxu0  ;;  %v10328_v58 = vld [vmem:[#allocation23_spill] sm:$0xff]  ;;  %v5501_v7 = vsel %vm2082_vm8, %v5499_v57, %v5500_v45  ;;  %v5311_v40 = vor.u32 %v5310_v6, %v5306_v50  ;;  %v5505_v57 = vrot.slane %v9074_v44, 1  ;;  %v10331_v45 = vld [vmem:[#allocation66_spill] sm:$0xff] }
 0x275   :  { %v9380_v55 = vadd.f32 %v4323_v8, %v9242_v28  ;;  %v4325_v14 = vpop.f32.mrb[135].mxu1  ;;  %v3649_v37 = vpop.f32.mrb[118].mxu0  ;;  %v5315_v28 = vrot.slane %v5313_v29, 1  ;;  %v9391_v8 = vld [vmem:[#allocation2 + $0x134] ss:$0 sps:$4 sm:$0x11]  }
 0x276   :  { %v9387_v22 = vadd.f32 %v10328_v58, %v3649_v37  ;;  %v3651_v36 = vpop.f32.mrb[119].mxu0  ;;  %v5503_v11 = vrot.slane %v10329_v63, 1  ;;  %v5506_v50 = vrot.slane %v10331_v45, 1  ;;  %v9403_v58 = vld [vmem:[#allocation2 + $0x138] sm:$0xff]   ;;  %v5322_v63 = vrot.slane %v5320_v43, 1 }
 0x277   :  { %5979 = vmatmul.mubr.bf16.gmra.mrb[240].mxu1 %v9300_v15  ;;  %v10332_v36 = vld [vmem:[#allocation27_spill] sm:$0xff]  ;;  %v5325_v44 = vshll.u32 %v9391_v8, 16 }
 0x278   :  { %5986 = vmatprep.mubr.bf16.mxu1 %v5304_v48  ;;  %7423 = vmatmul.mubr.bf16.gmra.mrb[224].mxu0 %v5498_v5  ;;  %v5316_v48 = vsel %vm1665_vm9, %v5311_v40, %v5315_v28  ;;  %v5318_v5 = vshrl.u32 %v9383_v33, 16  ;;  %v5504_v45 = vsel %vm2082_vm8, %v5502_v52, %v5503_v11  ;;  %v5508_v52 = vrot.slane %v9100_v21, 1  ;;  %v10335_v11 = vld [vmem:[#allocation69_spill] sm:$0xff] }
 0x279   :  { %7426 = vmatprep.mubr.bf16.mxu0 %v5501_v7 }
 0x27a   :  { %v4328_v41 = vpop.f32.mrb[136].mxu1  ;;  %v5323_v43 = vor.u32 %v5322_v63, %v5318_v5 }
 0x27b   :  { %v9397_v14 = vadd.f32 %v4328_v41, %v9257_v18  ;;  %v4330_v37 = vpop.f32.mrb[137].mxu1  ;;  %v3654_v6 = vpop.f32.mrb[120].mxu0 }
 0x27c   :  { %v4331_v29 = vpop.f32.mrb[138].mxu1  ;;  %v9406_v49 = vadd.f32 %v10332_v36, %v3654_v6  ;;  %v3656_v7 = vpop.f32.mrb[121].mxu0  ;;  %v5507_v6 = vsel %vm2082_vm8, %v5505_v57, %v5506_v50  ;;  %v9418_v36 = vld [vmem:[#allocation2 + $0x140] ss:$0 sps:$4 sm:$0x11]   ;;  %v5511_v57 = vrot.slane %v9116_v31, 1 }
 0x27d   :  { %10330 = vst [vmem:[#allocation60_spill] sm:$0xff] %v9397_v14  ;;  %v9409_v18 = vadd.f32 %v4331_v29, %v9265_v0  ;;  %v4333_v41 = vpop.f32.mrb[139].mxu1  ;;  %v3657_v37 = vpop.f32.mrb[122].mxu0  ;;  %v10334_v14 = vld [vmem:[#allocation29_spill] sm:$0xff]  ;;  %v5332_v0 = vshll.u32 %v9403_v58, 16  ;;  %v5327_v29 = vrot.slane %v5325_v44, 1 }
 0x27e   :  { %v9414_v40 = vadd.f32 %v10334_v14, %v3657_v37  ;;  %v3659_v28 = vpop.f32.mrb[123].mxu0  ;;  %v5509_v14 = vrot.slane %v10335_v11, 1  ;;  %v5512_v50 = vrot.slane %v9131_v32, 1  ;;  %v5337_v63 = vshll.u32 %v9418_v36, 16  ;;  %v10337_v44 = vld [vmem:[#allocation26_spill] sm:$0xff] }
 0x27f   :  { %10333 = vst [vmem:[#allocation22_spill] sm:$0xff] %v9409_v18  ;;  %5987 = vmatmul.mubr.bf16.gmra.mrb[244].mxu1 %v9330_v2  ;;  %v5334_v5 = vrot.slane %v5332_v0, 1  ;;  %v9437_v31 = vld [vmem:[#allocation2 + $0x144] sm:$0xff]   ;;  %v10339_v18 = vld [vmem:[#allocation28_spill] sm:$0xff] }
 0x280   :  { %5994 = vmatprep.mubr.bf16.mxu1 %v5316_v48  ;;  %7427 = vmatmul.mubr.bf16.gmra.mrb[228].mxu0 %v5504_v45  ;;  %v5330_v45 = vshrl.u32 %v9403_v58, 16 }
 0x281   :  { %7430 = vmatprep.mubr.bf16.mxu0 %v5507_v6 }
 0x282   :  { %v4336_v7 = vpop.f32.mrb[140].mxu1 }
 0x283   :  { %v9424_v41 = vadd.f32 %v4336_v7, %v9278_v4  ;;  %v4338_v37 = vpop.f32.mrb[141].mxu1  ;;  %v3662_v48 = vpop.f32.mrb[124].mxu0  ;;  %v5328_v7 = vsel %vm1665_vm9, %v5323_v43, %v5327_v29  ;;  %v5344_v43 = vshll.u32 %v9437_v31, 16 }
 0x284   :  { %v4339_v28 = vpop.f32.mrb[142].mxu1  ;;  %v9431_v6 = vadd.f32 %v10337_v44, %v3662_v48  ;;  %v3664_v21 = vpop.f32.mrb[125].mxu0  ;;  %v5510_v37 = vsel %vm2082_vm8, %v5508_v52, %v5509_v14  ;;  %v5513_v48 = vsel %vm2082_vm8, %v5511_v57, %v5512_v50  ;;  %v5335_v44 = vor.u32 %v5334_v5, %v5330_v45 }
 0x285   :  { %10336 = vst [vmem:[#allocation23_spill] sm:$0xff] %v9424_v41  ;;  %v9434_v11 = vadd.f32 %v4339_v28, %v9288_v56  ;;  %v4341_v4 = vpop.f32.mrb[143].mxu1  ;;  %v3665_v32 = vpop.f32.mrb[126].mxu0  ;;  %v5339_v56 = vrot.slane %v5337_v63, 1  ;;  %v5514_v52 = vrot.slane %v9146_v3, 1  ;;  %v5517_v57 = vrot.slane %v9162_v61, 1 }
 0x286   :  { %v9441_v41 = vadd.f32 %v10339_v18, %v3665_v32  ;;  %v3667_v0 = vpop.f32.mrb[127].mxu0  ;;  %v9445_v28 = vld [vmem:[#allocation2 + $0x14c] ss:$0 sps:$4 sm:$0x11]   ;;  %v5515_v18 = vrot.slane %v9154_v25, 1  ;;  %v5518_v50 = vrot.slane %v9177_v24, 1 }
 0x287   :  { %10338 = vst [vmem:[#allocation63_spill] sm:$0xff] %v9434_v11  ;;  %5995 = vmatmul.mubr.bf16.gmra.mrb[248].mxu1 %v9349_v10  ;;  %v5340_v63 = vsel %vm1665_vm9, %v5335_v44, %v5339_v56  ;;  %v5342_v4 = vshrl.u32 %v9437_v31, 16  ;;  %v10341_v32 = vld [vmem:[#allocation14_spill] sm:$0xff]  ;;  %v5346_v0 = vrot.slane %v5344_v43, 1  ;;  %v5349_v61 = vshll.u32 %v9445_v28, 16  ;;  %v10344_v44 = vld [vmem:[#allocation15_spill] sm:$0xff] }
 0x288   :  { %6002 = vmatprep.mubr.bf16.mxu1 %v5328_v7  ;;  %7431 = vmatmul.mubr.bf16.gmra.mrb[232].mxu0 %v5510_v37  ;;  %v9457_v7 = vld [vmem:[#allocation2 + $0x150] sm:$0xff]   ;;  %v9473_v43 = vld [vmem:[#allocation2 + $0x158] ss:$0 sps:$4 sm:$0x11]  }
 0x289   :  { %7434 = vmatprep.mubr.bf16.mxu0 %v5513_v48  ;;  %v10343_v48 = vld [vmem:[#allocation12_spill] sm:$0xff] }
 0x28a   :  { %v4344_v29 = vpop.f32.mrb[144].mxu1 }
 0x28b   :  { %v9451_v14 = vadd.f32 %v4344_v29, %v9303_v19  ;;  %v4346_v21 = vpop.f32.mrb[145].mxu1  ;;  %v7256_v45 = vpop.f32.mrb[128].mxu0 }
 0x28c   :  { %v4347_v5 = vpop.f32.mrb[146].mxu1  ;;  %v3712_v3 = vadd.f32 %v7256_v45, %v10341_v32  ;;  %v3703_v37 = vpop.f32.mrb[129].mxu0  ;;  %v5516_v21 = vsel %vm2082_vm8, %v5514_v52, %v5515_v18  ;;  %v5519_v45 = vsel %vm2082_vm8, %v5517_v57, %v5518_v50  ;;  %v10345_v32 = vld [vmem:[#allocation35_spill] sm:$0xff]  ;;  %v5347_v52 = vor.u32 %v5346_v0, %v5342_v4 }
 0x28d   :  { %10340 = vst [vmem:[#allocation66_spill] sm:$0xff] %v9451_v14  ;;  %v9461_v25 = vadd.f32 %v4347_v5, %v9311_v62  ;;  %v4349_v19 = vpop.f32.mrb[147].mxu1  ;;  %v3704_v24 = vadd.f32 %v3703_v37, %v10343_v48  ;;  %v7257_v29 = vpop.f32.mrb[130].mxu0  ;;  %v10346_v62 = vld [vmem:[#allocation13_spill] sm:$0xff]  ;;  %v5356_v37 = vshll.u32 %v9457_v7, 16  ;;  %v5351_v18 = vrot.slane %v5349_v61, 1 }
 0x28e   :  { %v3715_v56 = vadd.f32 %v7257_v29, %v10344_v44  ;;  %v3706_v14 = vpop.f32.mrb[131].mxu0  ;;  %v9470_v11 = vadd.f32 %v10345_v32, %v3712_v3  ;;  %v10347_v19 = vld [vmem:[#allocation31_spill] sm:$0xff]  ;;  %v10348_v29 = vld [vmem:[#allocation37_spill] sm:$0xff]  ;;  %v5520_v50 = vrot.slane %v9192_v26, 1  ;;  %v5524_v4 = vrot.slane %v9223_v38, 1 }
 0x28f   :  { %10342 = vst [vmem:[#allocation27_spill] sm:$0xff] %v9461_v25  ;;  %6003 = vmatmul.mubr.bf16.gmra.mrb[252].mxu1 %v9383_v33  ;;  %v3707_v5 = vadd.f32 %v3706_v14, %v10346_v62  ;;  %v9477_v48 = vadd.f32 %v10347_v19, %v3704_v24  ;;  %v5521_v14 = vrot.slane %v9200_v59, 1  ;;  %v5361_v26 = vshll.u32 %v9473_v43, 16  ;;  %v10351_v62 = vld [vmem:[#allocation18_spill] sm:$0xff]  ;;  %v10354_v25 = vld [vmem:[#allocation19_spill] sm:$0xff] }
 0x290   :  { %6010 = vmatprep.mubr.bf16.mxu1 %v5340_v63  ;;  %7435 = vmatmul.mubr.bf16.gmra.mrb[236].mxu0 %v5516_v21  ;;  %v9480_v44 = vadd.f32 %v10348_v29, %v3715_v56  ;;  %v10349_v63 = vld [vmem:[#allocation33_spill] sm:$0xff]  ;;  %v5523_v21 = vrot.slane %v9208_v30, 1  ;;  %v5354_v56 = vshrl.u32 %v9457_v7, 16  ;;  %v5352_v29 = vsel %vm1665_vm9, %v5347_v52, %v5351_v18  ;;  %v10353_v30 = vld [vmem:[#allocation16_spill] sm:$0xff] }
 0x291   :  { %7438 = vmatprep.mubr.bf16.mxu0 %v5519_v45  ;;  %v9485_v3 = vadd.f32 %v10349_v63, %v3707_v5  ;;  %v5358_v45 = vrot.slane %v5356_v37, 1  ;;  %v5363_v18 = vrot.slane %v5361_v26, 1 }
 0x292   :  { %v4352_v57 = vpop.f32.mrb[148].mxu1 }
 0x293   :  { %v9488_v32 = vadd.f32 %v4352_v57, %v9324_v12  ;;  %v4354_v24 = vpop.f32.mrb[149].mxu1  ;;  %v7260_v0 = vpop.f32.mrb[132].mxu0  ;;  %v9499_v57 = vld [vmem:[#allocation2 + $0x15c] sm:$0xff]   ;;  %v5359_v52 = vor.u32 %v5358_v45, %v5354_v56 }
 0x294   :  { %v4355_v61 = vpop.f32.mrb[150].mxu1  ;;  %v3728_v59 = vadd.f32 %v7260_v0, %v10351_v62  ;;  %v3719_v19 = vpop.f32.mrb[133].mxu0  ;;  %v5522_v24 = vsel %vm2082_vm8, %v5520_v50, %v5521_v14  ;;  %v5525_v0 = vsel %vm2082_vm8, %v5523_v21, %v5524_v4  ;;  %v10355_v62 = vld [vmem:[#allocation42_spill] sm:$0xff]  ;;  %v10358_v14 = vld [vmem:[#allocation44_spill] sm:$0xff]  ;;  %v5526_v4 = vrot.slane %v9238_v39, 1  ;;  %v9531_v39 = vld [vmem:[#allocation2 + $0x168] sm:$0xff]  }
 0x295   :  { %10350 = vst [vmem:[#allocation29_spill] sm:$0xff] %v9488_v32  ;;  %v9496_v5 = vadd.f32 %v4355_v61, %v9334_v9  ;;  %v4357_v12 = vpop.f32.mrb[151].mxu1  ;;  %v3720_v38 = vadd.f32 %v3719_v19, %v10353_v30  ;;  %v7261_v63 = vpop.f32.mrb[134].mxu0  ;;  %v10356_v61 = vld [vmem:[#allocation17_spill] sm:$0xff] }
 0x296   :  { %v3731_v37 = vadd.f32 %v7261_v63, %v10354_v25  ;;  %v3722_v32 = vpop.f32.mrb[135].mxu0  ;;  %v9507_v9 = vadd.f32 %v10355_v62, %v3728_v59  ;;  %v9513_v50 = vld [vmem:[#allocation2 + $0x164] ss:$0 sps:$4 sm:$0x11]   ;;  %v5368_v25 = vshll.u32 %v9499_v57, 16  ;;  %v10359_v59 = vld [vmem:[#allocation40_spill] sm:$0xff] }
 0x297   :  { %10352 = vst [vmem:[#allocation69_spill] sm:$0xff] %v9496_v5  ;;  %6011 = vmatmul.mubr.bf16.gmra.mrb[0].mxu1 %v9403_v58  ;;  %v3723_v12 = vadd.f32 %v3722_v32, %v10356_v61  ;;  %v10357_v5 = vld [vmem:[#allocation38_spill] sm:$0xff]  ;;  %v5527_v32 = vrot.slane %v9246_v53, 1  ;;  %v10361_v53 = vld [vmem:[#allocation24_spill] sm:$0xff] }
 0x298   :  { %6018 = vmatprep.mubr.bf16.mxu1 %v5352_v29  ;;  %v9511_v19 = vadd.f32 %v10357_v5, %v3720_v38  ;;  %7439 = vmatmul.mubr.bf16.gmra.mrb[240].mxu0 %v5522_v24  ;;  %v9517_v30 = vadd.f32 %v10358_v14, %v3731_v37  ;;  %v5529_v5 = vrot.slane %v9254_v54, 1  ;;  %v5530_v29 = vrot.slane %v9269_v46, 1  ;;  %v10363_v14 = vld [vmem:[#allocation20_spill] sm:$0xff] }
 0x299   :  { %7442 = vmatprep.mubr.bf16.mxu0 %v5525_v0  ;;  %v9522_v56 = vadd.f32 %v10359_v59, %v3723_v12  ;;  %v5364_v24 = vsel %vm1665_vm9, %v5359_v52, %v5363_v18  ;;  %v5366_v37 = vshrl.u32 %v9499_v57, 16  ;;  %v5370_v12 = vrot.slane %v5368_v25, 1  ;;  %v10364_v52 = vld [vmem:[#allocation25_spill] sm:$0xff]  ;;  %v9547_v25 = vld [vmem:[#allocation2 + $0x170] ss:$0 sps:$4 sm:$0x11]  }
 0x29a   :  { %v4360_v21 = vpop.f32.mrb[152].mxu1  ;;  %v5373_v54 = vshll.u32 %v9513_v50, 16  ;;  %v5528_v59 = vsel %vm2082_vm8, %v5526_v4, %v5527_v32 }
 0x29b   :  { %v9525_v45 = vadd.f32 %v4360_v21, %v9352_v60  ;;  %v4362_v26 = vpop.f32.mrb[153].mxu1  ;;  %v7264_v38 = vpop.f32.mrb[136].mxu0  ;;  %v5371_v4 = vor.u32 %v5370_v12, %v5366_v37  ;;  %v5536_v37 = vrot.slane %v9315_v47, 1 }
 0x29c   :  { %v4363_v63 = vpop.f32.mrb[154].mxu1  ;;  %v3744_v0 = vadd.f32 %v7264_v38, %v10361_v53  ;;  %v3735_v62 = vpop.f32.mrb[137].mxu0  ;;  %v5531_v38 = vsel %vm2082_vm8, %v5529_v5, %v5530_v29  ;;  %v10365_v53 = vld [vmem:[#allocation50_spill] sm:$0xff]  ;;  %v5375_v32 = vrot.slane %v5373_v54, 1  ;;  %v5532_v29 = vrot.slane %v9284_v23, 1 }
 0x29d   :  { %10360 = vst [vmem:[#allocation26_spill] sm:$0xff] %v9525_v45  ;;  %v9535_v61 = vadd.f32 %v4363_v63, %v9360_v20  ;;  %v4365_v60 = vpop.f32.mrb[155].mxu1  ;;  %v3736_v46 = vadd.f32 %v3735_v62, %v10363_v14  ;;  %v7265_v21 = vpop.f32.mrb[138].mxu0  ;;  %v10366_v20 = vld [vmem:[#allocation21_spill] sm:$0xff]  ;;  %v5380_v62 = vshll.u32 %v9531_v39, 16  ;;  %v5385_v23 = vshll.u32 %v9547_v25, 16 }
 0x29e   :  { %v3747_v18 = vadd.f32 %v7265_v21, %v10364_v52  ;;  %v3738_v26 = vpop.f32.mrb[139].mxu0  ;;  %v9544_v45 = vadd.f32 %v10365_v53, %v3744_v0  ;;  %v10367_v60 = vld [vmem:[#allocation46_spill] sm:$0xff]  ;;  %v10368_v21 = vld [vmem:[#allocation52_spill] sm:$0xff]  ;;  %v5533_v0 = vrot.slane %v9292_v27, 1 }
 0x29f   :  { %10362 = vst [vmem:[#allocation28_spill] sm:$0xff] %v9535_v61  ;;  %6019 = vmatmul.mubr.bf16.gmra.mrb[4].mxu1 %v9437_v31  ;;  %v3739_v63 = vadd.f32 %v3738_v26, %v10366_v20  ;;  %v9551_v14 = vadd.f32 %v10367_v60, %v3736_v46  ;;  %v10371_v20 = vld [vmem:[#allocation34_spill] sm:$0xff]  ;;  %v10374_v61 = vld [vmem:[#allocation36_spill] sm:$0xff] }
 0x2a0   :  { %6026 = vmatprep.mubr.bf16.mxu1 %v5364_v24  ;;  %7443 = vmatmul.mubr.bf16.gmra.mrb[244].mxu0 %v5528_v59  ;;  %v9554_v52 = vadd.f32 %v10368_v21, %v3747_v18  ;;  %v10369_v24 = vld [vmem:[#allocation48_spill] sm:$0xff]  ;;  %v5535_v59 = vrot.slane %v9300_v15, 1  ;;  %v5378_v18 = vshrl.u32 %v9531_v39, 16  ;;  %v5376_v21 = vsel %vm1665_vm9, %v5371_v4, %v5375_v32  ;;  %v10373_v15 = vld [vmem:[#allocation30_spill] sm:$0xff] }
 0x2a1   :  { %7446 = vmatprep.mubr.bf16.mxu0 %v5531_v38  ;;  %v9559_v26 = vadd.f32 %v10369_v24, %v3739_v63  ;;  %v5382_v38 = vrot.slane %v5380_v62, 1  ;;  %v5387_v32 = vrot.slane %v5385_v23, 1 }
 0x2a2   :  { %v4368_v5 = vpop.f32.mrb[156].mxu1 }
 0x2a3   :  { %v9562_v53 = vadd.f32 %v4368_v5, %v9377_v34  ;;  %v4370_v46 = vpop.f32.mrb[157].mxu1  ;;  %v7268_v12 = vpop.f32.mrb[140].mxu0  ;;  %v9573_v5 = vld [vmem:[#allocation2 + $0x174] sm:$0xff]   ;;  %v5383_v4 = vor.u32 %v5382_v38, %v5378_v18 }
 0x2a4   :  { %v4371_v54 = vpop.f32.mrb[158].mxu1  ;;  %v3760_v27 = vadd.f32 %v7268_v12, %v10371_v20  ;;  %v3751_v60 = vpop.f32.mrb[141].mxu0  ;;  %v5534_v46 = vsel %vm2082_vm8, %v5532_v29, %v5533_v0  ;;  %v5537_v12 = vsel %vm2082_vm8, %v5535_v59, %v5536_v37  ;;  %v10375_v20 = vld [vmem:[#allocation56_spill] sm:$0xff]  ;;  %v9587_v29 = vld [vmem:[#allocation2 + $0x17c] ss:$0 sps:$4 sm:$0x11]  }
 0x2a5   :  { %10370 = vst [vmem:[#allocation14_spill] sm:$0xff] %v9562_v53  ;;  %v9570_v63 = vadd.f32 %v4371_v54, %v9387_v22  ;;  %v4373_v34 = vpop.f32.mrb[159].mxu1  ;;  %v3752_v47 = vadd.f32 %v3751_v60, %v10373_v15  ;;  %v7269_v24 = vpop.f32.mrb[142].mxu0  ;;  %v10376_v54 = vld [vmem:[#allocation32_spill] sm:$0xff]  ;;  %v10378_v0 = vld [vmem:[#allocation57_spill] sm:$0xff]  ;;  %v5538_v37 = vrot.slane %v9330_v2, 1 }
 0x2a6   :  { %v3763_v62 = vadd.f32 %v7269_v24, %v10374_v61  ;;  %v3754_v53 = vpop.f32.mrb[143].mxu0  ;;  %v9581_v22 = vadd.f32 %v10375_v20, %v3760_v27  ;;  %v5392_v61 = vshll.u32 %v9573_v5, 16  ;;  %v10379_v27 = vld [vmem:[#allocation55_spill] sm:$0xff]  ;;  %v9605_v2 = vld [vmem:[#allocation2 + $0x180] sm:$0xff]  }
 0x2a7   :  { %10372 = vst [vmem:[#allocation12_spill] sm:$0xff] %v9570_v63  ;;  %6027 = vmatmul.mubr.bf16.gmra.mrb[8].mxu1 %v9457_v7  ;;  %v3755_v34 = vadd.f32 %v3754_v53, %v10376_v54  ;;  %v10377_v63 = vld [vmem:[#allocation54_spill] sm:$0xff]  ;;  %v5539_v53 = vrot.slane %v9338_v51, 1  ;;  %v10381_v51 = vld [vmem:[#allocation43_spill] sm:$0xff] }
 0x2a8   :  { %6034 = vmatprep.mubr.bf16.mxu1 %v5376_v21  ;;  %v9585_v60 = vadd.f32 %v10377_v63, %v3752_v47  ;;  %7447 = vmatmul.mubr.bf16.gmra.mrb[248].mxu0 %v5534_v46  ;;  %v9591_v15 = vadd.f32 %v10378_v0, %v3763_v62  ;;  %v5541_v63 = vrot.slane %v9349_v10, 1  ;;  %v5542_v21 = vrot.slane %v9364_v16, 1  ;;  %v10383_v0 = vld [vmem:[#allocation39_spill] sm:$0xff] }
 0x2a9   :  { %7450 = vmatprep.mubr.bf16.mxu0 %v5537_v12  ;;  %v9596_v18 = vadd.f32 %v10379_v27, %v3755_v34  ;;  %v5388_v46 = vsel %vm1665_vm9, %v5383_v4, %v5387_v32  ;;  %v5390_v62 = vshrl.u32 %v9573_v5, 16  ;;  %v5394_v34 = vrot.slane %v5392_v61, 1  ;;  %v10384_v4 = vld [vmem:[#allocation45_spill] sm:$0xff]  ;;  %v9621_v61 = vld [vmem:[#allocation2 + $0x188] ss:$0 sps:$4 sm:$0x11]  }
 0x2aa   :  { %v4376_v59 = vpop.f32.mrb[160].mxu1  ;;  %v5397_v10 = vshll.u32 %v9587_v29, 16  ;;  %v5540_v27 = vsel %vm2082_vm8, %v5538_v37, %v5539_v53 }
 0x2ab   :  { %v9599_v38 = vadd.f32 %v4376_v59, %v9406_v49  ;;  %v4378_v23 = vpop.f32.mrb[161].mxu1  ;;  %v7272_v47 = vpop.f32.mrb[144].mxu0  ;;  %v5395_v37 = vor.u32 %v5394_v34, %v5390_v62  ;;  %v5548_v62 = vrot.slane %v9418_v36, 1 }
 0x2ac   :  { %v4379_v24 = vpop.f32.mrb[162].mxu1  ;;  %v3776_v12 = vadd.f32 %v7272_v47, %v10381_v51  ;;  %v3767_v20 = vpop.f32.mrb[145].mxu0  ;;  %v5543_v47 = vsel %vm2082_vm8, %v5541_v63, %v5542_v21  ;;  %v10385_v51 = vld [vmem:[#allocation61_spill] sm:$0xff]  ;;  %v5399_v53 = vrot.slane %v5397_v10, 1  ;;  %v5545_v63 = vrot.slane %v9391_v8, 1 }
 0x2ad   :  { %10380 = vst [vmem:[#allocation15_spill] sm:$0xff] %v9599_v38  ;;  %v9609_v54 = vadd.f32 %v4379_v24, %v9414_v40  ;;  %v4381_v49 = vpop.f32.mrb[163].mxu1  ;;  %v3768_v16 = vadd.f32 %v3767_v20, %v10383_v0  ;;  %v7273_v59 = vpop.f32.mrb[146].mxu0  ;;  %v10386_v40 = vld [vmem:[#allocation41_spill] sm:$0xff]  ;;  %v5404_v20 = vshll.u32 %v9605_v2, 16 }
 0x2ae   :  { %v3779_v32 = vadd.f32 %v7273_v59, %v10384_v4  ;;  %v3770_v23 = vpop.f32.mrb[147].mxu0  ;;  %v9618_v38 = vadd.f32 %v10385_v51, %v3776_v12  ;;  %v10387_v49 = vld [vmem:[#allocation58_spill] sm:$0xff]  ;;  %v5544_v12 = vrot.slane %v9383_v33, 1 }
 0x2af   :  { %10382 = vst [vmem:[#allocation35_spill] sm:$0xff] %v9609_v54  ;;  %6035 = vmatmul.mubr.bf16.gmra.mrb[12].mxu1 %v9499_v57  ;;  %v3771_v24 = vadd.f32 %v3770_v23, %v10386_v40  ;;  %v9625_v0 = vadd.f32 %v10387_v49, %v3768_v16  ;;  %v10388_v59 = vld [vmem:[#allocation62_spill] sm:$0xff]  ;;  %v5406_v8 = vrot.slane %v5404_v20, 1  ;;  %v10391_v40 = vld [vmem:[#allocation51_spill] sm:$0xff]  ;;  %v10394_v54 = vld [vmem:[#allocation53_spill] sm:$0xff] }
 0x2b0   :  { %6042 = vmatprep.mubr.bf16.mxu1 %v5388_v46  ;;  %7451 = vmatmul.mubr.bf16.gmra.mrb[252].mxu0 %v5540_v27  ;;  %v9628_v4 = vadd.f32 %v10388_v59, %v3779_v32  ;;  %v10389_v46 = vld [vmem:[#allocation59_spill] sm:$0xff]  ;;  %v5547_v27 = vrot.slane %v9403_v58, 1  ;;  %v5402_v32 = vshrl.u32 %v9605_v2, 16  ;;  %v5400_v59 = vsel %vm1665_vm9, %v5395_v37, %v5399_v53 }
 0x2b1   :  { %7454 = vmatprep.mubr.bf16.mxu0 %v5543_v47  ;;  %v9633_v23 = vadd.f32 %v10389_v46, %v3771_v24  ;;  %v5409_v47 = vshll.u32 %v9621_v61, 16  ;;  %v10393_v58 = vld [vmem:[#allocation47_spill] sm:$0xff] }
 0x2b2   :  { %v4384_v21 = vpop.f32.mrb[164].mxu1  ;;  %v5407_v37 = vor.u32 %v5406_v8, %v5402_v32  ;;  %v10399_v32 = vld [vmem:[#allocation65_spill] sm:$0xff] }
 0x2b3   :  { %v9636_v51 = vadd.f32 %v4384_v21, %v9431_v6  ;;  %v4386_v16 = vpop.f32.mrb[165].mxu1  ;;  %v7276_v34 = vpop.f32.mrb[148].mxu0  ;;  %v9647_v21 = vld [vmem:[#allocation2 + $0x18c] sm:$0xff]   ;;  %v5411_v53 = vrot.slane %v5409_v47, 1 }
 0x2b4   :  { %v4387_v10 = vpop.f32.mrb[166].mxu1  ;;  %v3792_v33 = vadd.f32 %v7276_v34, %v10391_v40  ;;  %v3783_v49 = vpop.f32.mrb[149].mxu0  ;;  %v5546_v16 = vsel %vm2082_vm8, %v5544_v12, %v5545_v63  ;;  %v5549_v34 = vsel %vm2082_vm8, %v5547_v27, %v5548_v62  ;;  %v10395_v40 = vld [vmem:[#allocation67_spill] sm:$0xff]  ;;  %v9661_v63 = vld [vmem:[#allocation2 + $0x194] ss:$0 sps:$4 sm:$0x11]  }
 0x2b5   :  { %10390 = vst [vmem:[#allocation13_spill] sm:$0xff] %v9636_v51  ;;  %v9644_v24 = vadd.f32 %v4387_v10, %v9441_v41  ;;  %v4389_v6 = vpop.f32.mrb[167].mxu1  ;;  %v3784_v36 = vadd.f32 %v3783_v49, %v10393_v58  ;;  %v7277_v46 = vpop.f32.mrb[150].mxu0  ;;  %v10396_v10 = vld [vmem:[#allocation49_spill] sm:$0xff]  ;;  %v10398_v12 = vld [vmem:[#allocation68_spill] sm:$0xff]  ;;  %v5551_v27 = vrot.slane %v9445_v28, 1 }
 0x2b6   :  { %v3795_v20 = vadd.f32 %v7277_v46, %v10394_v54  ;;  %v3786_v51 = vpop.f32.mrb[151].mxu0  ;;  %v9655_v41 = vadd.f32 %v10395_v40, %v3792_v33  ;;  %v5416_v54 = vshll.u32 %v9647_v21, 16  ;;  %v5553_v33 = vrot.slane %v9457_v7, 1 }
 0x2b7   :  { %10392 = vst [vmem:[#allocation31_spill] sm:$0xff] %v9644_v24  ;;  %6043 = vmatmul.mubr.bf16.gmra.mrb[16].mxu1 %v9531_v39  ;;  %v3787_v6 = vadd.f32 %v3786_v51, %v10396_v10  ;;  %v10397_v24 = vld [vmem:[#allocation64_spill] sm:$0xff]  ;;  %v5550_v51 = vrot.slane %v9437_v31, 1  ;;  %v5412_v46 = vsel %vm1665_vm9, %v5407_v37, %v5411_v53  ;;  %v5421_v10 = vshll.u32 %v9661_v63, 16 }
 0x2b8   :  { %6050 = vmatprep.mubr.bf16.mxu1 %v5400_v59  ;;  %v9659_v49 = vadd.f32 %v10397_v24, %v3784_v36  ;;  %7455 = vmatmul.mubr.bf16.gmra.mrb[0].mxu0 %v5546_v16  ;;  %v9665_v58 = vadd.f32 %v10398_v12, %v3795_v20  ;;  %v5554_v24 = vrot.slane %v9473_v43, 1  ;;  %v9679_v16 = vld [vmem:[#allocation2 + $0x198] sm:$0xff]   ;;  %v5418_v40 = vrot.slane %v5416_v54, 1  ;;  %v9698_v54 = vld [vmem:[#allocation2 + $0x1a0] ss:$0 sps:$4 sm:$0x11]  }
 0x2b9   :  { %7458 = vmatprep.mubr.bf16.mxu0 %v5549_v34  ;;  %v9672_v8 = vadd.f32 %v10399_v32, %v3787_v6  ;;  %v5414_v34 = vshrl.u32 %v9647_v21, 16  ;;  %v5552_v6 = vsel %vm2082_vm8, %v5550_v51, %v5551_v27  ;;  %v5557_v27 = vrot.slane %v9513_v50, 1 }
 0x2ba   :  { %v9668_v62 = vpop.f32.mrb[168].mxu1  ;;  %v5556_v51 = vrot.slane %v9499_v57, 1 }
 0x2bb   :  { %v5838_v47 = vpop.f32.mrb[169].mxu1  ;;  %v7336_v59 = vpop.f32.mrb[152].mxu0  ;;  %v5419_v32 = vor.u32 %v5418_v40, %v5414_v34  ;;  %v5433_v34 = vshll.u32 %v9698_v54, 16 }
 0x2bc   :  { %v9676_v36 = vpop.f32.mrb[170].mxu1  ;;  %v9682_v28 = vadd.f32 %v7336_v59, %v9470_v11  ;;  %v4425_v20 = vpop.f32.mrb[153].mxu0  ;;  %v5555_v11 = vsel %vm2082_vm8, %v5553_v33, %v5554_v24  ;;  %v5423_v47 = vrot.slane %v5421_v10, 1  ;;  %v5559_v33 = vrot.slane %v9531_v39, 1 }
 0x2bd   :  { %v5841_v31 = vpop.f32.mrb[171].mxu1  ;;  %v9687_v7 = vadd.f32 %v4425_v20, %v9477_v48  ;;  %v7337_v43 = vpop.f32.mrb[154].mxu0  ;;  %v5428_v48 = vshll.u32 %v9679_v16, 16  ;;  %v5426_v20 = vshrl.u32 %v9679_v16, 16 }
 0x2be   :  { %v9691_v37 = vadd.f32 %v7337_v43, %v9480_v44  ;;  %v4428_v53 = vpop.f32.mrb[155].mxu0  ;;  %v5424_v57 = vsel %vm1665_vm9, %v5419_v32, %v5423_v47  ;;  %v9715_v43 = vld [vmem:[#allocation2 + $0x1a4] sm:$0xff]   ;;  %v5435_v47 = vrot.slane %v5433_v34, 1 }
 0x2bf   :  { %6051 = vmatmul.mubr.bf16.gmra.mrb[20].mxu1 %v9573_v5  ;;  %v9696_v12 = vadd.f32 %v4428_v53, %v9485_v3  ;;  %v5560_v3 = vrot.slane %v9547_v25, 1  ;;  %v5430_v31 = vrot.slane %v5428_v48, 1 }
 0x2c0   :  { %6058 = vmatprep.mubr.bf16.mxu1 %v5412_v46  ;;  %7459 = vmatmul.mubr.bf16.gmra.mrb[4].mxu0 %v5552_v6  ;;  %v5558_v6 = vsel %vm2082_vm8, %v5556_v51, %v5557_v27  ;;  %v5563_v27 = vrot.slane %v9587_v29, 1  ;;  %v5562_v51 = vrot.slane %v9573_v5, 1 }
 0x2c1   :  { %7462 = vmatprep.mubr.bf16.mxu0 %v5555_v11  ;;  %v5431_v32 = vor.u32 %v5430_v31, %v5426_v20 }
 0x2c2   :  { %v9702_v44 = vpop.f32.mrb[172].mxu1 }
 0x2c3   :  { %v5846_v59 = vpop.f32.mrb[173].mxu1  ;;  %v7340_v24 = vpop.f32.mrb[156].mxu0  ;;  %v5436_v31 = vsel %vm1665_vm9, %v5431_v32, %v5435_v47 }
 0x2c4   :  { %v9707_v46 = vpop.f32.mrb[174].mxu1  ;;  %v9712_v50 = vadd.f32 %v7340_v24, %v9507_v9  ;;  %v4441_v40 = vpop.f32.mrb[157].mxu0  ;;  %v5561_v9 = vsel %vm2082_vm8, %v5559_v33, %v5560_v3  ;;  %v5440_v59 = vshll.u32 %v9715_v43, 16  ;;  %v5565_v33 = vrot.slane %v9605_v2, 1 }
 0x2c5   :  { %v5849_v10 = vpop.f32.mrb[175].mxu1  ;;  %v9718_v39 = vadd.f32 %v4441_v40, %v9511_v19  ;;  %v7341_v25 = vpop.f32.mrb[158].mxu0  ;;  %v9729_v19 = vld [vmem:[#allocation2 + $0x1ac] ss:$0 sps:$4 sm:$0x11]  }
 0x2c6   :  { %v9722_v53 = vadd.f32 %v7341_v25, %v9517_v30  ;;  %v4444_v11 = vpop.f32.mrb[159].mxu0  ;;  %v5438_v10 = vshrl.u32 %v9715_v43, 16  ;;  %v5445_v5 = vshll.u32 %v9729_v19, 16 }
 0x2c7   :  { %6059 = vmatmul.mubr.bf16.gmra.mrb[24].mxu1 %v9605_v2  ;;  %v9727_v48 = vadd.f32 %v4444_v11, %v9522_v56  ;;  %v5566_v56 = vrot.slane %v9621_v61, 1  ;;  %v5564_v61 = vsel %vm2082_vm8, %v5562_v51, %v5563_v27  ;;  %v5571_v51 = vrot.slane %v9679_v16, 1 }
 0x2c8   :  { %6066 = vmatprep.mubr.bf16.mxu1 %v5424_v57  ;;  %7463 = vmatmul.mubr.bf16.gmra.mrb[8].mxu0 %v5558_v6  ;;  %v5442_v57 = vrot.slane %v5440_v59, 1  ;;  %v5447_v47 = vrot.slane %v5445_v5, 1 }
 0x2c9   :  { %7466 = vmatprep.mubr.bf16.mxu0 %v5561_v9 }
 0x2ca   :  { %v9733_v30 = vpop.f32.mrb[176].mxu1  ;;  %v5443_v32 = vor.u32 %v5442_v57, %v5438_v10 }
 0x2cb   :  { %v5854_v24 = vpop.f32.mrb[177].mxu1  ;;  %v7344_v3 = vpop.f32.mrb[160].mxu0 }
 0x2cc   :  { %v9738_v20 = vpop.f32.mrb[178].mxu1  ;;  %v9742_v34 = vadd.f32 %v7344_v3, %v9544_v45  ;;  %v4457_v40 = vpop.f32.mrb[161].mxu0  ;;  %v5567_v45 = vsel %vm2082_vm8, %v5565_v33, %v5566_v56  ;;  %v5572_v24 = vrot.slane %v9698_v54, 1 }
 0x2cd   :  { %v5857_v29 = vpop.f32.mrb[179].mxu1  ;;  %v9747_v25 = vadd.f32 %v4457_v40, %v9551_v14  ;;  %v7345_v2 = vpop.f32.mrb[162].mxu0  ;;  %v5569_v14 = vrot.slane %v9661_v63, 1  ;;  %v5448_v63 = vsel %vm1665_vm9, %v5443_v32, %v5447_v47 }
 0x2ce   :  { %v9751_v6 = vadd.f32 %v7345_v2, %v9554_v52  ;;  %v4460_v11 = vpop.f32.mrb[163].mxu0  ;;  %v5568_v52 = vrot.slane %v9647_v21, 1  ;;  %v5573_v57 = vsel %vm2082_vm8, %v5571_v51, %v5572_v24  ;;  %v5574_v2 = vrot.slane %v9715_v43, 1 }
 0x2cf   :  { %6067 = vmatmul.mubr.bf16.gmra.mrb[28].mxu1 %v9647_v21  ;;  %v9756_v9 = vadd.f32 %v4460_v11, %v9559_v26 }
 0x2d0   :  { %6074 = vmatprep.mubr.bf16.mxu1 %v5436_v31  ;;  %7467 = vmatmul.mubr.bf16.gmra.mrb[12].mxu0 %v5564_v61  ;;  %v5570_v21 = vsel %vm2082_vm8, %v5568_v52, %v5569_v14 }
 0x2d1   :  { %7470 = vmatprep.mubr.bf16.mxu0 %v5567_v45 }
 0x2d2   :  { %v9759_v59 = vpop.f32.mrb[180].mxu1 }
 0x2d3   :  { %v5862_v27 = vpop.f32.mrb[181].mxu1  ;;  %v7348_v33 = vpop.f32.mrb[164].mxu0 }
 0x2d4   :  { %v9764_v56 = vpop.f32.mrb[182].mxu1  ;;  %v9767_v26 = vadd.f32 %v7348_v33, %v9581_v22  ;;  %v4473_v3 = vpop.f32.mrb[165].mxu0 }
 0x2d5   :  { %v5865_v31 = vpop.f32.mrb[183].mxu1  ;;  %v9771_v40 = vadd.f32 %v4473_v3, %v9585_v60  ;;  %v7349_v29 = vpop.f32.mrb[166].mxu0  ;;  %v5575_v60 = vrot.slane %v9729_v19, 1 }
 0x2d6   :  { %v9775_v10 = vadd.f32 %v7349_v29, %v9591_v15  ;;  %v4476_v54 = vpop.f32.mrb[167].mxu0 }
 0x2d7   :  { %6075 = vmatmul.mubr.bf16.gmra.mrb[32].mxu1 %v9679_v16  ;;  %v9780_v22 = vadd.f32 %v4476_v54, %v9596_v18  ;;  %v5576_v14 = vsel %vm2082_vm8, %v5574_v2, %v5575_v60 }
 0x2d8   :  { %6082 = vmatprep.mubr.bf16.mxu1 %v5448_v63  ;;  %7471 = vmatmul.mubr.bf16.gmra.mrb[16].mxu0 %v5570_v21 }
 0x2d9   :  { %7474 = vmatprep.mubr.bf16.mxu0 %v5573_v57 }
 0x2da   :  { %v9782_v5 = vpop.f32.mrb[184].mxu1 }
 0x2db   :  { %v5870_v61 = vpop.f32.mrb[185].mxu1  ;;  %v7352_v15 = vpop.f32.mrb[168].mxu0 }
 0x2dc   :  { %v9786_v11 = vpop.f32.mrb[186].mxu1  ;;  %v9789_v16 = vadd.f32 %v7352_v15, %v9618_v38  ;;  %v4489_v45 = vpop.f32.mrb[169].mxu0  ;;  %v10405_v15 = vld [vmem:[#allocation70_spill] sm:$0xff] }
 0x2dd   :  { %v5873_v32 = vpop.f32.mrb[187].mxu1  ;;  %v9792_v18 = vadd.f32 %v4489_v45, %v9625_v0  ;;  %v7353_v47 = vpop.f32.mrb[170].mxu0 }
 0x2de   :  { %v9796_v52 = vadd.f32 %v7353_v47, %v9628_v4  ;;  %v4492_v19 = vpop.f32.mrb[171].mxu0  ;;  %v10407_v32 = vld [vmem:[#allocation73_spill] sm:$0xff] }
 0x2df   :  { %6083 = vmatmul.mubr.bf16.gmra.mrb[36].mxu1 %v9715_v43  ;;  %v9800_v27 = vadd.f32 %v4492_v19, %v9633_v23 }
 0x2e0   :  { %7475 = vmatmul.mubr.bf16.gmra.mrb[20].mxu0 %v5576_v14  ;;  %v10409_v14 = vld [vmem:[#allocation71_spill] sm:$0xff] }
 0x2e2   :  { %v9802_v38 = vpop.f32.mrb[188].mxu1 }
 0x2e3   :  { %v5878_v51 = vpop.f32.mrb[189].mxu1  ;;  %v7356_v24 = vpop.f32.mrb[172].mxu0 }
 0x2e4   :  { %v9804_v33 = vpop.f32.mrb[190].mxu1  ;;  %v9807_v0 = vadd.f32 %v7356_v24, %v9655_v41  ;;  %v4505_v3 = vpop.f32.mrb[173].mxu0  ;;  %v10403_v41 = vld [vmem:[#allocation72_spill] sm:$0xff] }
 0x2e5   :  { %v5881_v31 = vpop.f32.mrb[191].mxu1  ;;  %v9810_v4 = vadd.f32 %v4505_v3, %v9659_v49  ;;  %v7357_v63 = vpop.f32.mrb[174].mxu0 }
 0x2e6   :  { %v9813_v43 = vadd.f32 %v7357_v63, %v9665_v58  ;;  %v4508_v23 = vpop.f32.mrb[175].mxu0  ;;  %v10411_v63 = vld [vmem:[#allocation76_spill] sm:$0xff] }
 0x2e7   :  { %10400 = vst [vmem:[#allocation37_spill] sm:$0xff] %v9810_v4  ;;  %v9816_v29 = vadd.f32 %v4508_v23, %v9672_v8 }
 0x2e8   :  { %10401 = vst [vmem:[#allocation33_spill] sm:$0xff] %v9813_v43 }
 0x2e9   :  { %10402 = vst [vmem:[#allocation18_spill] sm:$0xff] %v9816_v29 }
 0x2ea   :  { %v9818_v21 = vpop.f32.mrb[192].mxu1 }
 0x2eb   :  { %v5886_v54 = vpop.f32.mrb[193].mxu1  ;;  %v7360_v57 = vpop.f32.mrb[176].mxu0 }
 0x2ec   :  { %v9820_v60 = vpop.f32.mrb[194].mxu1  ;;  %v9823_v2 = vadd.f32 %v7360_v57, %v10403_v41  ;;  %v4521_v61 = vpop.f32.mrb[177].mxu0  ;;  %v10413_v41 = vld [vmem:[#allocation74_spill] sm:$0xff] }
 0x2ed   :  { %v5889_v49 = vpop.f32.mrb[195].mxu1  ;;  %v9826_v45 = vadd.f32 %v4521_v61, %v10405_v15  ;;  %v7361_v58 = vpop.f32.mrb[178].mxu0  ;;  %v10415_v15 = vld [vmem:[#allocation77_spill] sm:$0xff] }
 0x2ee   :  { %10404 = vst [vmem:[#allocation16_spill] sm:$0xff] %v9823_v2  ;;  %v9829_v47 = vadd.f32 %v7361_v58, %v10407_v32  ;;  %v4524_v8 = vpop.f32.mrb[179].mxu0 }
 0x2ef   :  { %10406 = vst [vmem:[#allocation19_spill] sm:$0xff] %v9826_v45  ;;  %v9832_v19 = vadd.f32 %v4524_v8, %v10409_v14  ;;  %v10417_v8 = vld [vmem:[#allocation75_spill] sm:$0xff] }
 0x2f0   :  { %10408 = vst [vmem:[#allocation42_spill] sm:$0xff] %v9829_v47 }
 0x2f1   :  { %10410 = vst [vmem:[#allocation17_spill] sm:$0xff] %v9832_v19 }
 0x2f2   :  { %v9834_v51 = vpop.f32.mrb[196].mxu1 }
 0x2f3   :  { %v5894_v24 = vpop.f32.mrb[197].mxu1  ;;  %v7364_v3 = vpop.f32.mrb[180].mxu0 }
 0x2f4   :  { %v9836_v31 = vpop.f32.mrb[198].mxu1  ;;  %v9839_v23 = vadd.f32 %v7364_v3, %v10411_v63  ;;  %v4537_v54 = vpop.f32.mrb[181].mxu0  ;;  %v10419_v3 = vld [vmem:[#allocation80_spill] sm:$0xff] }
 0x2f5   :  { %v5897_v57 = vpop.f32.mrb[199].mxu1  ;;  %v9842_v61 = vadd.f32 %v4537_v54, %v10413_v41  ;;  %v7365_v49 = vpop.f32.mrb[182].mxu0  ;;  %v10421_v41 = vld [vmem:[#allocation78_spill] sm:$0xff] }
 0x2f6   :  { %10412 = vst [vmem:[#allocation38_spill] sm:$0xff] %v9839_v23  ;;  %v9845_v58 = vadd.f32 %v7365_v49, %v10415_v15  ;;  %v4540_v32 = vpop.f32.mrb[183].mxu0  ;;  %v10423_v15 = vld [vmem:[#allocation81_spill] sm:$0xff] }
 0x2f7   :  { %10414 = vst [vmem:[#allocation44_spill] sm:$0xff] %v9842_v61  ;;  %v9848_v14 = vadd.f32 %v4540_v32, %v10417_v8  ;;  %v10425_v8 = vld [vmem:[#allocation79_spill] sm:$0xff] }
 0x2f8   :  { %10416 = vst [vmem:[#allocation40_spill] sm:$0xff] %v9845_v58 }
 0x2f9   :  { %10418 = vst [vmem:[#allocation24_spill] sm:$0xff] %v9848_v14 }
 0x2fa   :  { %v9850_v24 = vpop.f32.mrb[200].mxu1 }
 0x2fb   :  { %v5902_v19 = vpop.f32.mrb[201].mxu1  ;;  %v7368_v47 = vpop.f32.mrb[184].mxu0 }
 0x2fc   :  { %v9852_v45 = vpop.f32.mrb[202].mxu1  ;;  %v9855_v63 = vadd.f32 %v7368_v47, %v10419_v3  ;;  %v4553_v57 = vpop.f32.mrb[185].mxu0  ;;  %v10427_v47 = vld [vmem:[#allocation84_spill] sm:$0xff] }
 0x2fd   :  { %v5905_v54 = vpop.f32.mrb[203].mxu1  ;;  %v9858_v61 = vadd.f32 %v4553_v57, %v10421_v41  ;;  %v7369_v49 = vpop.f32.mrb[186].mxu0  ;;  %v10429_v41 = vld [vmem:[#allocation82_spill] sm:$0xff] }
 0x2fe   :  { %10420 = vst [vmem:[#allocation20_spill] sm:$0xff] %v9855_v63  ;;  %v9861_v58 = vadd.f32 %v7369_v49, %v10423_v15  ;;  %v4556_v32 = vpop.f32.mrb[187].mxu0  ;;  %v10431_v15 = vld [vmem:[#allocation85_spill] sm:$0xff] }
 0x2ff   :  { %10422 = vst [vmem:[#allocation25_spill] sm:$0xff] %v9858_v61  ;;  %v9864_v14 = vadd.f32 %v4556_v32, %v10425_v8  ;;  %v10433_v8 = vld [vmem:[#allocation83_spill] sm:$0xff] }
 0x300   :  { %10424 = vst [vmem:[#allocation50_spill] sm:$0xff] %v9861_v58 }
 0x301   :  { %10426 = vst [vmem:[#allocation21_spill] sm:$0xff] %v9864_v14 }
 0x302   :  { %v9866_v19 = vpop.f32.mrb[204].mxu1 }
 0x303   :  { %v5910_v23 = vpop.f32.mrb[205].mxu1  ;;  %v7372_v2 = vpop.f32.mrb[188].mxu0 }
 0x304   :  { %v9868_v29 = vpop.f32.mrb[206].mxu1  ;;  %v9871_v3 = vadd.f32 %v7372_v2, %v10427_v47  ;;  %v4569_v54 = vpop.f32.mrb[189].mxu0 }
 0x305   :  { %v5913_v57 = vpop.f32.mrb[207].mxu1  ;;  %v9874_v61 = vadd.f32 %v4569_v54, %v10429_v41  ;;  %v7373_v49 = vpop.f32.mrb[190].mxu0 }
 0x306   :  { %10428 = vst [vmem:[#allocation46_spill] sm:$0xff] %v9871_v3  ;;  %v9877_v58 = vadd.f32 %v7373_v49, %v10431_v15  ;;  %v4572_v32 = vpop.f32.mrb[191].mxu0  ;;  %v10436_v57 = vld [vmem:[#allocation86_spill] sm:$0xff] }
 0x307   :  { %10430 = vst [vmem:[#allocation52_spill] sm:$0xff] %v9874_v61  ;;  %v9880_v14 = vadd.f32 %v4572_v32, %v10433_v8  ;;  %v10439_v8 = vld [vmem:[#allocation87_spill] sm:$0xff] }
 0x308   :  { %10432 = vst [vmem:[#allocation48_spill] sm:$0xff] %v9877_v58 }
 0x309   :  { %10434 = vst [vmem:[#allocation34_spill] sm:$0xff] %v9880_v14 }
 0x30a   :  { %v9882_v23 = vpop.f32.mrb[208].mxu1 }
 0x30b   :  { %v5918_v63 = vpop.f32.mrb[209].mxu1  ;;  %v7376_v43 = vpop.f32.mrb[192].mxu0 }
 0x30c   :  { %v9884_v4 = vpop.f32.mrb[210].mxu1  ;;  %v9887_v2 = vadd.f32 %v7376_v43, %v9319_v17  ;;  %v4585_v47 = vpop.f32.mrb[193].mxu0 }
 0x30d   :  { %v5921_v54 = vpop.f32.mrb[211].mxu1  ;;  %v9890_v41 = vadd.f32 %v4585_v47, %v10436_v57  ;;  %v7377_v49 = vpop.f32.mrb[194].mxu0 }
 0x30e   :  { %10435 = vst [vmem:[#allocation30_spill] sm:$0xff] %v9887_v2  ;;  %v9893_v15 = vadd.f32 %v7377_v49, %v9327_v13  ;;  %v4588_v32 = vpop.f32.mrb[195].mxu0 }
 0x30f   :  { %10437 = vst [vmem:[#allocation36_spill] sm:$0xff] %v9890_v41  ;;  %v9896_v14 = vadd.f32 %v4588_v32, %v10439_v8 }
 0x310   :  { %10438 = vst [vmem:[#allocation56_spill] sm:$0xff] %v9893_v15 }
 0x311   :  { %10440 = vst [vmem:[#allocation32_spill] sm:$0xff] %v9896_v14 }
 0x312   :  { %v9898_v63 = vpop.f32.mrb[212].mxu1 }
 0x313   :  { %v5926_v58 = vpop.f32.mrb[213].mxu1  ;;  %v7380_v61 = vpop.f32.mrb[196].mxu0 }
 0x314   :  { %v9900_v3 = vpop.f32.mrb[214].mxu1  ;;  %v9903_v17 = vadd.f32 %v7380_v61, %v9370_v35  ;;  %v4601_v43 = vpop.f32.mrb[197].mxu0  ;;  %v10446_v35 = vld [vmem:[#allocation23_spill] sm:$0xff] }
 0x315   :  { %v5929_v47 = vpop.f32.mrb[215].mxu1  ;;  %v9906_v54 = vadd.f32 %v4601_v43, %v9343_v1  ;;  %v7381_v13 = vpop.f32.mrb[198].mxu0  ;;  %v10448_v43 = vld [vmem:[#allocation60_spill] sm:$0xff] }
 0x316   :  { %10441 = vst [vmem:[#allocation54_spill] sm:$0xff] %v9903_v17  ;;  %v9909_v57 = vadd.f32 %v7381_v13, %v9380_v55  ;;  %v4604_v49 = vpop.f32.mrb[199].mxu0  ;;  %v10450_v13 = vld [vmem:[#allocation63_spill] sm:$0xff] }
 0x317   :  { %10442 = vst [vmem:[#allocation57_spill] sm:$0xff] %v9906_v54  ;;  %v9912_v32 = vadd.f32 %v4604_v49, %v9355_v42  ;;  %v10452_v49 = vld [vmem:[#allocation22_spill] sm:$0xff] }
 0x318   :  { %10443 = vst [vmem:[#allocation55_spill] sm:$0xff] %v9909_v57 }
 0x319   :  { %10444 = vst [vmem:[#allocation43_spill] sm:$0xff] %v9912_v32 }
 0x31a   :  { %v9914_v58 = vpop.f32.mrb[216].mxu1 }
 0x31b   :  { %v5934_v8 = vpop.f32.mrb[217].mxu1  ;;  %v7384_v14 = vpop.f32.mrb[200].mxu0 }
 0x31c   :  { %v9916_v15 = vpop.f32.mrb[218].mxu1  ;;  %v9919_v61 = vadd.f32 %v7384_v14, %v10446_v35  ;;  %v4617_v47 = vpop.f32.mrb[201].mxu0  ;;  %v10455_v14 = vld [vmem:[#allocation29_spill] sm:$0xff] }
 0x31d   :  { %10445 = vst [vmem:[#allocation39_spill] sm:$0xff] %v9916_v15  ;;  %v5937_v1 = vpop.f32.mrb[219].mxu1  ;;  %v9922_v54 = vadd.f32 %v4617_v47, %v10448_v43  ;;  %v7385_v55 = vpop.f32.mrb[202].mxu0  ;;  %v10457_v43 = vld [vmem:[#allocation66_spill] sm:$0xff] }
 0x31e   :  { %10447 = vst [vmem:[#allocation45_spill] sm:$0xff] %v9919_v61  ;;  %v9925_v57 = vadd.f32 %v7385_v55, %v10450_v13  ;;  %v4620_v42 = vpop.f32.mrb[203].mxu0  ;;  %v10459_v13 = vld [vmem:[#allocation69_spill] sm:$0xff] }
 0x31f   :  { %10449 = vst [vmem:[#allocation61_spill] sm:$0xff] %v9922_v54  ;;  %v9928_v32 = vadd.f32 %v4620_v42, %v10452_v49  ;;  %v10461_v49 = vld [vmem:[#allocation27_spill] sm:$0xff] }
 0x320   :  { %10451 = vst [vmem:[#allocation41_spill] sm:$0xff] %v9925_v57 }
 0x321   :  { %10453 = vst [vmem:[#allocation58_spill] sm:$0xff] %v9928_v32 }
 0x322   :  { %v9930_v8 = vpop.f32.mrb[220].mxu1 }
 0x323   :  { %v5942_v17 = vpop.f32.mrb[221].mxu1  ;;  %v7388_v41 = vpop.f32.mrb[204].mxu0 }
 0x324   :  { %v9932_v2 = vpop.f32.mrb[222].mxu1  ;;  %v9935_v35 = vadd.f32 %v7388_v41, %v10455_v14  ;;  %v4633_v1 = vpop.f32.mrb[205].mxu0  ;;  %v10465_v41 = vld [vmem:[#allocation14_spill] sm:$0xff] }
 0x325   :  { %10454 = vst [vmem:[#allocation62_spill] sm:$0xff] %v9932_v2  ;;  %v5945_v47 = vpop.f32.mrb[223].mxu1  ;;  %v9938_v54 = vadd.f32 %v4633_v1, %v10457_v43  ;;  %v7389_v55 = vpop.f32.mrb[206].mxu0  ;;  %v10467_v43 = vld [vmem:[#allocation26_spill] sm:$0xff] }
 0x326   :  { %10456 = vst [vmem:[#allocation59_spill] sm:$0xff] %v9935_v35  ;;  %v9941_v57 = vadd.f32 %v7389_v55, %v10459_v13  ;;  %v4636_v42 = vpop.f32.mrb[207].mxu0  ;;  %v10469_v13 = vld [vmem:[#allocation12_spill] sm:$0xff] }
 0x327   :  { %10458 = vst [vmem:[#allocation51_spill] sm:$0xff] %v9938_v54  ;;  %v9944_v32 = vadd.f32 %v4636_v42, %v10461_v49  ;;  %v10471_v49 = vld [vmem:[#allocation28_spill] sm:$0xff] }
 0x328   :  { %10460 = vst [vmem:[#allocation47_spill] sm:$0xff] %v9941_v57 }
 0x329   :  { %10462 = vst [vmem:[#allocation53_spill] sm:$0xff] %v9944_v32 }
 0x32a   :  { %v9946_v17 = vpop.f32.mrb[224].mxu1 }
 0x32b   :  { %10463 = vst [vmem:[#allocation67_spill] sm:$0xff] %v9946_v17  ;;  %v5950_v61 = vpop.f32.mrb[225].mxu1  ;;  %v7392_v15 = vpop.f32.mrb[208].mxu0 }
 0x32c   :  { %v9948_v2 = vpop.f32.mrb[226].mxu1  ;;  %v9951_v14 = vadd.f32 %v7392_v15, %v10465_v41  ;;  %v4649_v47 = vpop.f32.mrb[209].mxu0  ;;  %v10475_v15 = vld [vmem:[#allocation13_spill] sm:$0xff] }
 0x32d   :  { %10464 = vst [vmem:[#allocation49_spill] sm:$0xff] %v9948_v2  ;;  %v5953_v1 = vpop.f32.mrb[227].mxu1  ;;  %v9954_v54 = vadd.f32 %v4649_v47, %v10467_v43  ;;  %v7393_v55 = vpop.f32.mrb[210].mxu0  ;;  %v10477_v43 = vld [vmem:[#allocation15_spill] sm:$0xff] }
 0x32e   :  { %10466 = vst [vmem:[#allocation64_spill] sm:$0xff] %v9951_v14  ;;  %v9957_v57 = vadd.f32 %v7393_v55, %v10469_v13  ;;  %v4652_v42 = vpop.f32.mrb[211].mxu0  ;;  %v10479_v13 = vld [vmem:[#allocation31_spill] sm:$0xff] }
 0x32f   :  { %10468 = vst [vmem:[#allocation68_spill] sm:$0xff] %v9954_v54  ;;  %v9960_v32 = vadd.f32 %v4652_v42, %v10471_v49  ;;  %v10481_v49 = vld [vmem:[#allocation35_spill] sm:$0xff] }
 0x330   :  { %10470 = vst [vmem:[#allocation65_spill] sm:$0xff] %v9957_v57 }
 0x331   :  { %10472 = vst [vmem:[#allocation72_spill] sm:$0xff] %v9960_v32 }
 0x332   :  { %v9962_v61 = vpop.f32.mrb[228].mxu1 }
 0x333   :  { %10473 = vst [vmem:[#allocation70_spill] sm:$0xff] %v9962_v61  ;;  %v5958_v35 = vpop.f32.mrb[229].mxu1  ;;  %v7396_v2 = vpop.f32.mrb[212].mxu0 }
 0x334   :  { %v9964_v17 = vpop.f32.mrb[230].mxu1  ;;  %v9967_v41 = vadd.f32 %v7396_v2, %v10475_v15  ;;  %v4665_v1 = vpop.f32.mrb[213].mxu0 }
 0x335   :  { %10474 = vst [vmem:[#allocation73_spill] sm:$0xff] %v9964_v17  ;;  %v5961_v47 = vpop.f32.mrb[231].mxu1  ;;  %v9970_v54 = vadd.f32 %v4665_v1, %v10477_v43  ;;  %v7397_v55 = vpop.f32.mrb[214].mxu0  ;;  %v9986_v1 = vld [vmem:[%s10238_s2] ss:$0 sm:$0xff]  ;;  %s7988_s2 = smov [#allocation8]  }
 0x336   :  { %10476 = vst [vmem:[#allocation71_spill] sm:$0xff] %v9967_v41  ;;  %v9973_v57 = vadd.f32 %v7397_v55, %v10479_v13  ;;  %v4668_v42 = vpop.f32.mrb[215].mxu0  ;;  %v6518_v41 = vld [vmem:[#allocation3 + $0x18] sm:$0xff]  ;;  %s6712_s13 = sshll.u32 %s7988_s2, 4  ;;  %s6713_s13 = int_to_ptr.vmem [resolvable:$true] %s6712_s13 }
 0x337   :  { %10478 = vst [vmem:[#allocation76_spill] sm:$0xff] %v9970_v54  ;;  %v9976_v32 = vadd.f32 %v4668_v42, %v10481_v49  ;;  %v6517_v49 = vld [vmem:[#allocation3 + $0x10] sm:$0xff]  ;;  %s7953_s14 = scalar_lea.vmem %s6713_s13, 8192  ;;  %p7958_p3 = scmp.lt.s32.totalorder %s6713_s13, %s6713_s13 }
 0x338   :  { %10480 = vst [vmem:[#allocation74_spill] sm:$0xff] %v9973_v57  ;;  %p7954_p2 = scmp.ne.s32.totalorder %s6713_s13, %s7953_s14  ;;  %p7959_p4 = scmp.lt.s32.totalorder %s7953_s14, %s7953_s14 }
 0x339   :  { %10482 = vst [vmem:[#allocation77_spill] sm:$0xff] %v9976_v32 }
 0x33a   :  { %v9978_v35 = vpop.f32.mrb[232].mxu1  ;;  %p7960_p5 = por %p7959_p4, %p7958_p3 }
 0x33b   :  { %v5966_v14 = vpop.f32.mrb[233].mxu1  ;;  %v7416_v17 = vpop.f32.mrb[216].mxu0 }
 0x33c   :  { %v9980_v61 = vpop.f32.mrb[234].mxu1  ;;  %v6134_v2 = vadd.f32 %v7416_v17, %v9702_v44  ;;  %v6125_v15 = vpop.f32.mrb[217].mxu0  ;;  %p7961_p6 = pnand %p7960_p5, %p7954_p2 }
 0x33d   :  { %v5969_v47 = vpop.f32.mrb[235].mxu1  ;;  %v6126_v43 = vadd.f32 %v6125_v15, %v9668_v62  ;;  %v7417_v55 = vpop.f32.mrb[218].mxu0 }
 0x33e   :  { %v6382_v13 = vadd.f32 %v6134_v2, %v9682_v28  ;;  %v6137_v42 = vadd.f32 %v7417_v55, %v9707_v46  ;;  %v6128_v14 = vpop.f32.mrb[219].mxu0  ;;  %v6515_v47 = vld [vmem:[#allocation3] sm:$0xff]  ;;  %v6516_v2 = vld [vmem:[#allocation3 + $0x8] sm:$0xff] }
 0x33f   :  { %v6380_v32 = vadd.f32 %v6126_v43, %v9687_v7  ;;  %v6129_v44 = vadd.f32 %v6128_v14, %v9676_v36 }
 0x340   :  { %v6453_v17 = vadd.f32 %v9986_v1, %v6382_v13  ;;  %v6383_v57 = vadd.f32 %v6137_v42, %v9691_v37 }
 0x341   :  { %v6451_v54 = vadd.f32 %v9986_v1, %v6380_v32  ;;  %v6381_v62 = vadd.f32 %v6129_v44, %v9696_v12 }
 0x342   :  { %v9997_v15 = vpop.f32.mrb[236].mxu1  ;;  %v6581_v28 = vadd.f32 %v6517_v49, %v6453_v17  ;;  %v6454_v46 = vadd.f32 %v9986_v1, %v6383_v57 }
 0x343   :  { %v5974_v55 = vpop.f32.mrb[237].mxu1  ;;  %v6579_v7 = vadd.f32 %v6515_v47, %v6451_v54  ;;  %v6452_v36 = vadd.f32 %v9986_v1, %v6381_v62  ;;  %v7420_v43 = vpop.f32.mrb[220].mxu0  ;;  %v6521_v47 = vld [vmem:[#allocation3 + $0x30] sm:$0xff] }
 0x344   :  { %v10001_v13 = vpop.f32.mrb[238].mxu1  ;;  %6645 = vst [vmem:[#allocation8 + $0x10] sm:$0xff] %v6581_v28  ;;  %v6582_v37 = vadd.f32 %v6518_v41, %v6454_v46  ;;  %v6150_v32 = vadd.f32 %v7420_v43, %v9759_v59  ;;  %v6141_v42 = vpop.f32.mrb[221].mxu0  ;;  %v6519_v28 = vld [vmem:[#allocation3 + $0x20] sm:$0xff] }
 0x345   :  { %v5977_v14 = vpop.f32.mrb[239].mxu1  ;;  %6643 = vst [vmem:[#allocation8] sm:$0xff] %v6579_v7  ;;  %v6580_v12 = vadd.f32 %v6516_v2, %v6452_v36  ;;  %v6142_v49 = vadd.f32 %v6141_v42, %v9733_v30  ;;  %v7421_v44 = vpop.f32.mrb[222].mxu0  ;;  %v6522_v2 = vld [vmem:[#allocation3 + $0x38] sm:$0xff]  ;;  %v6520_v36 = vld [vmem:[#allocation3 + $0x28] sm:$0xff] }
 0x346   :  { %6646 = vst [vmem:[#allocation8 + $0x18] sm:$0xff] %v6582_v37  ;;  %v6386_v57 = vadd.f32 %v6150_v32, %v9712_v50  ;;  %v6153_v54 = vadd.f32 %v7421_v44, %v9764_v56  ;;  %v6144_v17 = vpop.f32.mrb[223].mxu0 }
 0x347   :  { %6644 = vst [vmem:[#allocation8 + $0x8] sm:$0xff] %v6580_v12  ;;  %v6384_v62 = vadd.f32 %v6142_v49, %v9718_v39  ;;  %v6145_v41 = vadd.f32 %v6144_v17, %v9738_v20 }
 0x348   :  { %v6457_v59 = vadd.f32 %v9986_v1, %v6386_v57  ;;  %v6387_v46 = vadd.f32 %v6153_v54, %v9722_v53 }
 0x349   :  { %v6455_v30 = vadd.f32 %v9986_v1, %v6384_v62  ;;  %v6385_v55 = vadd.f32 %v6145_v41, %v9727_v48 }
 0x34a   :  { %v10013_v50 = vpop.f32.mrb[240].mxu1  ;;  %v6585_v56 = vadd.f32 %v6521_v47, %v6457_v59  ;;  %v6458_v7 = vadd.f32 %v9986_v1, %v6387_v46  ;;  %v6525_v47 = vld [vmem:[#allocation3 + $0x50] sm:$0xff]  ;;  %v6523_v59 = vld [vmem:[#allocation3 + $0x40] sm:$0xff]  ;;  %v6526_v46 = vld [vmem:[#allocation3 + $0x58] sm:$0xff] }
 0x34b   :  { %v5982_v43 = vpop.f32.mrb[241].mxu1  ;;  %v6583_v39 = vadd.f32 %v6519_v28, %v6455_v30  ;;  %v6456_v20 = vadd.f32 %v9986_v1, %v6385_v55  ;;  %v7424_v37 = vpop.f32.mrb[224].mxu0  ;;  %v6524_v55 = vld [vmem:[#allocation3 + $0x48] sm:$0xff] }
 0x34c   :  { %v10017_v32 = vpop.f32.mrb[242].mxu1  ;;  %6649 = vst [vmem:[#allocation8 + $0x30] sm:$0xff] %v6585_v56  ;;  %v6586_v53 = vadd.f32 %v6522_v2, %v6458_v7  ;;  %v6166_v42 = vadd.f32 %v7424_v37, %v9802_v38  ;;  %v6157_v14 = vpop.f32.mrb[225].mxu0 }
 0x34d   :  { %v5985_v12 = vpop.f32.mrb[243].mxu1  ;;  %6647 = vst [vmem:[#allocation8 + $0x20] sm:$0xff] %v6583_v39  ;;  %v6584_v48 = vadd.f32 %v6520_v36, %v6456_v20  ;;  %v6158_v49 = vadd.f32 %v6157_v14, %v9782_v5  ;;  %v7425_v44 = vpop.f32.mrb[226].mxu0 }
 0x34e   :  { %6650 = vst [vmem:[#allocation8 + $0x38] sm:$0xff] %v6586_v53  ;;  %v6390_v57 = vadd.f32 %v6166_v42, %v9742_v34  ;;  %v6169_v54 = vadd.f32 %v7425_v44, %v9804_v33  ;;  %v6160_v17 = vpop.f32.mrb[227].mxu0 }
 0x34f   :  { %6648 = vst [vmem:[#allocation8 + $0x28] sm:$0xff] %v6584_v48  ;;  %v6388_v62 = vadd.f32 %v6158_v49, %v9747_v25  ;;  %v6161_v41 = vadd.f32 %v6160_v17, %v9786_v11  ;;  %v6529_v48 = vld [vmem:[#allocation3 + $0x70] sm:$0xff]  ;;  %v6530_v17 = vld [vmem:[#allocation3 + $0x78] sm:$0xff] }
 0x350   :  { %v6461_v38 = vadd.f32 %v9986_v1, %v6390_v57  ;;  %v6391_v28 = vadd.f32 %v6169_v54, %v9751_v6  ;;  %v6527_v57 = vld [vmem:[#allocation3 + $0x60] sm:$0xff] }
 0x351   :  { %v6459_v5 = vadd.f32 %v9986_v1, %v6388_v62  ;;  %v6389_v30 = vadd.f32 %v6161_v41, %v9756_v9  ;;  %v6528_v41 = vld [vmem:[#allocation3 + $0x68] sm:$0xff] }
 0x352   :  { %v10029_v34 = vpop.f32.mrb[244].mxu1  ;;  %v6589_v33 = vadd.f32 %v6525_v47, %v6461_v38  ;;  %v6462_v2 = vadd.f32 %v9986_v1, %v6391_v28 }
 0x353   :  { %v5990_v56 = vpop.f32.mrb[245].mxu1  ;;  %v6587_v25 = vadd.f32 %v6523_v59, %v6459_v5  ;;  %v6460_v11 = vadd.f32 %v9986_v1, %v6389_v30  ;;  %v7428_v7 = vpop.f32.mrb[228].mxu0 }
 0x354   :  { %v10033_v36 = vpop.f32.mrb[246].mxu1  ;;  %6653 = vst [vmem:[#allocation8 + $0x50] sm:$0xff] %v6589_v33  ;;  %v6590_v6 = vadd.f32 %v6526_v46, %v6462_v2  ;;  %v6182_v43 = vadd.f32 %v7428_v7, %v9834_v51  ;;  %v6173_v39 = vpop.f32.mrb[229].mxu0 }
 0x355   :  { %v5993_v20 = vpop.f32.mrb[247].mxu1  ;;  %6651 = vst [vmem:[#allocation8 + $0x40] sm:$0xff] %v6587_v25  ;;  %v6588_v9 = vadd.f32 %v6524_v55, %v6460_v11  ;;  %v6174_v37 = vadd.f32 %v6173_v39, %v9818_v21  ;;  %v7429_v53 = vpop.f32.mrb[230].mxu0  ;;  %v6533_v11 = vld [vmem:[#allocation3 + $0x90] sm:$0xff] }
 0x356   :  { %6654 = vst [vmem:[#allocation8 + $0x58] sm:$0xff] %v6590_v6  ;;  %v6394_v42 = vadd.f32 %v6182_v43, %v9767_v26  ;;  %v6185_v14 = vadd.f32 %v7429_v53, %v9836_v31  ;;  %v6176_v12 = vpop.f32.mrb[231].mxu0  ;;  %v6531_v43 = vld [vmem:[#allocation3 + $0x80] sm:$0xff]  ;;  %v6534_v20 = vld [vmem:[#allocation3 + $0x98] sm:$0xff]  ;;  %v6532_v53 = vld [vmem:[#allocation3 + $0x88] sm:$0xff] }
 0x357   :  { %6652 = vst [vmem:[#allocation8 + $0x48] sm:$0xff] %v6588_v9  ;;  %v6392_v49 = vadd.f32 %v6174_v37, %v9771_v40  ;;  %v6177_v44 = vadd.f32 %v6176_v12, %v9820_v60 }
 0x358   :  { %v6465_v51 = vadd.f32 %v9986_v1, %v6394_v42  ;;  %v6395_v54 = vadd.f32 %v6185_v14, %v9775_v10 }
 0x359   :  { %v6463_v21 = vadd.f32 %v9986_v1, %v6392_v49  ;;  %v6393_v47 = vadd.f32 %v6177_v44, %v9780_v22 }
 0x35a   :  { %v10045_v26 = vpop.f32.mrb[248].mxu1  ;;  %v6593_v31 = vadd.f32 %v6529_v48, %v6465_v51  ;;  %v6466_v62 = vadd.f32 %v9986_v1, %v6395_v54 }
 0x35b   :  { %v5998_v38 = vpop.f32.mrb[249].mxu1  ;;  %v6591_v40 = vadd.f32 %v6527_v57, %v6463_v21  ;;  %v6464_v60 = vadd.f32 %v9986_v1, %v6393_v47  ;;  %v7432_v59 = vpop.f32.mrb[232].mxu0  ;;  %v6537_v47 = vld [vmem:[#allocation3 + $0xb0] sm:$0xff] }
 0x35c   :  { %v10049_v28 = vpop.f32.mrb[250].mxu1  ;;  %6657 = vst [vmem:[#allocation8 + $0x70] sm:$0xff] %v6593_v31  ;;  %v6594_v10 = vadd.f32 %v6530_v17, %v6466_v62  ;;  %v6198_v5 = vadd.f32 %v7432_v59, %v9866_v19  ;;  %v6189_v46 = vpop.f32.mrb[233].mxu0  ;;  %v10483_v31 = vld [vmem:[#allocation37_spill] sm:$0xff]  ;;  %v6535_v38 = vld [vmem:[#allocation3 + $0xa0] sm:$0xff]  ;;  %v6538_v59 = vld [vmem:[#allocation3 + $0xb8] sm:$0xff] }
 0x35d   :  { %v6001_v30 = vpop.f32.mrb[251].mxu1  ;;  %6655 = vst [vmem:[#allocation8 + $0x60] sm:$0xff] %v6591_v40  ;;  %v6592_v22 = vadd.f32 %v6528_v41, %v6464_v60  ;;  %v6190_v33 = vadd.f32 %v6189_v46, %v9850_v24  ;;  %v7433_v2 = vpop.f32.mrb[234].mxu0  ;;  %v10484_v40 = vld [vmem:[#allocation33_spill] sm:$0xff] }
 0x35e   :  { %6658 = vst [vmem:[#allocation8 + $0x78] sm:$0xff] %v6594_v10  ;;  %v6398_v55 = vadd.f32 %v6198_v5, %v9789_v16  ;;  %v6201_v56 = vadd.f32 %v7433_v2, %v9868_v29  ;;  %v6192_v25 = vpop.f32.mrb[235].mxu0  ;;  %v10485_v10 = vld [vmem:[#allocation18_spill] sm:$0xff]  ;;  %v6536_v30 = vld [vmem:[#allocation3 + $0xa8] sm:$0xff] }
 0x35f   :  { %6656 = vst [vmem:[#allocation8 + $0x68] sm:$0xff] %v6592_v22  ;;  %v6396_v7 = vadd.f32 %v6190_v33, %v9792_v18  ;;  %v6193_v6 = vadd.f32 %v6192_v25, %v9852_v45 }
 0x360   :  { %v6469_v19 = vadd.f32 %v9986_v1, %v6398_v55  ;;  %v6399_v39 = vadd.f32 %v6201_v56, %v9796_v52 }
 0x361   :  { %v6467_v24 = vadd.f32 %v9986_v1, %v6396_v7  ;;  %v6397_v9 = vadd.f32 %v6193_v6, %v9800_v27 }
 0x362   :  { %v10061_v16 = vpop.f32.mrb[252].mxu1  ;;  %v6597_v29 = vadd.f32 %v6533_v11, %v6469_v19  ;;  %v6470_v37 = vadd.f32 %v9986_v1, %v6399_v39  ;;  %v10486_v39 = vld [vmem:[#allocation16_spill] sm:$0xff] }
 0x363   :  { %v6006_v42 = vpop.f32.mrb[253].mxu1  ;;  %v6595_v18 = vadd.f32 %v6531_v43, %v6467_v24  ;;  %v6468_v45 = vadd.f32 %v9986_v1, %v6397_v9  ;;  %v7436_v14 = vpop.f32.mrb[236].mxu0 }
 0x364   :  { %v10065_v12 = vpop.f32.mrb[254].mxu1  ;;  %6661 = vst [vmem:[#allocation8 + $0x90] sm:$0xff] %v6597_v29  ;;  %v6598_v52 = vadd.f32 %v6534_v20, %v6470_v37  ;;  %v6214_v48 = vadd.f32 %v7436_v14, %v9898_v63  ;;  %v6205_v49 = vpop.f32.mrb[237].mxu0  ;;  %v10487_v20 = vld [vmem:[#allocation62_spill] sm:$0xff]  ;;  %v6539_v14 = vld [vmem:[#allocation3 + $0xc0] sm:$0xff] }
 0x365   :  { %v6009_v44 = vpop.f32.mrb[255].mxu1  ;;  %6659 = vst [vmem:[#allocation8 + $0x80] sm:$0xff] %v6595_v18  ;;  %v6596_v27 = vadd.f32 %v6532_v53, %v6468_v45  ;;  %v6206_v51 = vadd.f32 %v6205_v49, %v9882_v23  ;;  %v7437_v57 = vpop.f32.mrb[238].mxu0  ;;  %v6541_v37 = vld [vmem:[#allocation3 + $0xd0] sm:$0xff]  ;;  %v10488_v53 = vld [vmem:[#allocation19_spill] sm:$0xff] }
 0x366   :  { %6662 = vst [vmem:[#allocation8 + $0x98] sm:$0xff] %v6598_v52  ;;  %v6402_v54 = vadd.f32 %v6214_v48, %v9807_v0  ;;  %v6217_v21 = vadd.f32 %v7437_v57, %v9900_v3  ;;  %v6208_v17 = vpop.f32.mrb[239].mxu0  ;;  %v10489_v18 = vld [vmem:[#allocation39_spill] sm:$0xff]  ;;  %v10490_v52 = vld [vmem:[#allocation42_spill] sm:$0xff]  ;;  %v10491_v44 = vld [vmem:[#allocation17_spill] sm:$0xff] }
 0x367   :  { %6660 = vst [vmem:[#allocation8 + $0x88] sm:$0xff] %v6596_v27  ;;  %v6400_v62 = vadd.f32 %v6206_v51, %v10483_v31  ;;  %v6209_v41 = vadd.f32 %v6208_v17, %v9884_v4  ;;  %v6542_v49 = vld [vmem:[#allocation3 + $0xd8] sm:$0xff] }
 0x368   :  { %v6473_v63 = vadd.f32 %v9986_v1, %v6402_v54  ;;  %v6403_v60 = vadd.f32 %v6217_v21, %v10484_v40  ;;  %v6540_v21 = vld [vmem:[#allocation3 + $0xc8] sm:$0xff] }
 0x369   :  { %v6471_v23 = vadd.f32 %v9986_v1, %v6400_v62  ;;  %v6401_v5 = vadd.f32 %v6209_v41, %v10485_v10  ;;  %v10493_v10 = vld [vmem:[#allocation67_spill] sm:$0xff] }
 0x36a   :  { %v10077_v0 = vpop.f32.mrb[0].mxu1  ;;  %v6601_v3 = vadd.f32 %v6537_v47, %v6473_v63  ;;  %v6474_v46 = vadd.f32 %v9986_v1, %v6403_v60 }
 0x36b   :  { %v6014_v22 = vpop.f32.mrb[1].mxu1  ;;  %v6599_v33 = vadd.f32 %v6535_v38, %v6471_v23  ;;  %v6472_v4 = vadd.f32 %v9986_v1, %v6401_v5  ;;  %v7440_v2 = vpop.f32.mrb[240].mxu0  ;;  %v10492_v38 = vld [vmem:[#allocation70_spill] sm:$0xff] }
 0x36c   :  { %v10081_v55 = vpop.f32.mrb[2].mxu1  ;;  %6665 = vst [vmem:[#allocation8 + $0xb0] sm:$0xff] %v6601_v3  ;;  %v6602_v56 = vadd.f32 %v6538_v59, %v6474_v46  ;;  %v6230_v25 = vadd.f32 %v7440_v2, %v9930_v8  ;;  %v6221_v11 = vpop.f32.mrb[241].mxu0  ;;  %v10494_v46 = vld [vmem:[#allocation38_spill] sm:$0xff]  ;;  %v10495_v22 = vld [vmem:[#allocation73_spill] sm:$0xff] }
 0x36d   :  { %v6017_v7 = vpop.f32.mrb[3].mxu1  ;;  %6663 = vst [vmem:[#allocation8 + $0xa0] sm:$0xff] %v6599_v33  ;;  %v6600_v6 = vadd.f32 %v6536_v30, %v6472_v4  ;;  %v6222_v19 = vadd.f32 %v6221_v11, %v9914_v58  ;;  %v7441_v43 = vpop.f32.mrb[242].mxu0  ;;  %v6545_v2 = vld [vmem:[#allocation3 + $0xf0] sm:$0xff]  ;;  %v10497_v11 = vld [vmem:[#allocation49_spill] sm:$0xff] }
 0x36e   :  { %6666 = vst [vmem:[#allocation8 + $0xb8] sm:$0xff] %v6602_v56  ;;  %v6406_v24 = vadd.f32 %v6230_v25, %v10486_v39  ;;  %v6233_v9 = vadd.f32 %v7441_v43, %v10487_v20  ;;  %v6224_v29 = vpop.f32.mrb[243].mxu0  ;;  %v10496_v56 = vld [vmem:[#allocation44_spill] sm:$0xff]  ;;  %v6546_v20 = vld [vmem:[#allocation3 + $0xf8] sm:$0xff] }
 0x36f   :  { %6664 = vst [vmem:[#allocation8 + $0xa8] sm:$0xff] %v6600_v6  ;;  %v6404_v42 = vadd.f32 %v6222_v19, %v10488_v53  ;;  %v6225_v45 = vadd.f32 %v6224_v29, %v10489_v18  ;;  %v6543_v19 = vld [vmem:[#allocation3 + $0xe0] sm:$0xff]  ;;  %v6544_v18 = vld [vmem:[#allocation3 + $0xe8] sm:$0xff] }
 0x370   :  { %v6477_v8 = vadd.f32 %v9986_v1, %v6406_v24  ;;  %v6407_v48 = vadd.f32 %v6233_v9, %v10490_v52  ;;  %v10498_v43 = vld [vmem:[#allocation40_spill] sm:$0xff] }
 0x371   :  { %v6475_v58 = vadd.f32 %v9986_v1, %v6404_v42  ;;  %v6405_v27 = vadd.f32 %v6225_v45, %v10491_v44  ;;  %v10499_v9 = vld [vmem:[#allocation24_spill] sm:$0xff] }
 0x372   :  { %v10093_v51 = vpop.f32.mrb[4].mxu1  ;;  %v6605_v57 = vadd.f32 %v6541_v37, %v6477_v8  ;;  %v6478_v54 = vadd.f32 %v9986_v1, %v6407_v48 }
 0x373   :  { %v6022_v17 = vpop.f32.mrb[5].mxu1  ;;  %v6603_v47 = vadd.f32 %v6539_v14, %v6475_v58  ;;  %v6476_v31 = vadd.f32 %v9986_v1, %v6405_v27  ;;  %v7444_v62 = vpop.f32.mrb[244].mxu0 }
 0x374   :  { %v10097_v41 = vpop.f32.mrb[6].mxu1  ;;  %6669 = vst [vmem:[#allocation8 + $0xd0] sm:$0xff] %v6605_v57  ;;  %v6606_v63 = vadd.f32 %v6542_v49, %v6478_v54  ;;  %v6246_v40 = vadd.f32 %v7444_v62, %v10492_v38  ;;  %v6237_v60 = vpop.f32.mrb[245].mxu0  ;;  %v10500_v17 = vld [vmem:[#allocation20_spill] sm:$0xff]  ;;  %v10501_v38 = vld [vmem:[#allocation25_spill] sm:$0xff] }
 0x375   :  { %v6025_v23 = vpop.f32.mrb[7].mxu1  ;;  %6667 = vst [vmem:[#allocation8 + $0xc0] sm:$0xff] %v6603_v47  ;;  %v6604_v59 = vadd.f32 %v6540_v21, %v6476_v31  ;;  %v6238_v5 = vadd.f32 %v6237_v60, %v10493_v10  ;;  %v7445_v3 = vpop.f32.mrb[246].mxu0 }
 0x376   :  { %6670 = vst [vmem:[#allocation8 + $0xd8] sm:$0xff] %v6606_v63  ;;  %v6410_v30 = vadd.f32 %v6246_v40, %v10494_v46  ;;  %v6249_v33 = vadd.f32 %v7445_v3, %v10495_v22  ;;  %v6240_v4 = vpop.f32.mrb[247].mxu0  ;;  %v6549_v63 = vld [vmem:[#allocation3 + $0x110] sm:$0xff]  ;;  %v6547_v23 = vld [vmem:[#allocation3 + $0x100] sm:$0xff]  ;;  %v10503_v3 = vld [vmem:[#allocation21_spill] sm:$0xff] }
 0x377   :  { %6668 = vst [vmem:[#allocation8 + $0xc8] sm:$0xff] %v6604_v59  ;;  %v6408_v25 = vadd.f32 %v6238_v5, %v10496_v56  ;;  %v6241_v7 = vadd.f32 %v6240_v4, %v10497_v11  ;;  %v10502_v59 = vld [vmem:[#allocation50_spill] sm:$0xff]  ;;  %v6550_v5 = vld [vmem:[#allocation3 + $0x118] sm:$0xff] }
 0x378   :  { %v6481_v6 = vadd.f32 %v9986_v1, %v6410_v30  ;;  %v6411_v39 = vadd.f32 %v6249_v33, %v10498_v43  ;;  %v6548_v33 = vld [vmem:[#allocation3 + $0x108] sm:$0xff] }
 0x379   :  { %v6479_v24 = vadd.f32 %v9986_v1, %v6408_v25  ;;  %v6409_v29 = vadd.f32 %v6241_v7, %v10499_v9 }
 0x37a   :  { %v10109_v37 = vpop.f32.mrb[8].mxu1  ;;  %v6609_v53 = vadd.f32 %v6545_v2, %v6481_v6  ;;  %v6482_v42 = vadd.f32 %v9986_v1, %v6411_v39 }
 0x37b   :  { %v6030_v45 = vpop.f32.mrb[9].mxu1  ;;  %v6607_v8 = vadd.f32 %v6543_v19, %v6479_v24  ;;  %v6480_v14 = vadd.f32 %v9986_v1, %v6409_v29  ;;  %v7448_v52 = vpop.f32.mrb[248].mxu0 }
 0x37c   :  { %v10113_v48 = vpop.f32.mrb[10].mxu1  ;;  %6673 = vst [vmem:[#allocation8 + $0xf0] sm:$0xff] %v6609_v53  ;;  %v6610_v58 = vadd.f32 %v6546_v20, %v6482_v42  ;;  %v6262_v49 = vadd.f32 %v7448_v52, %v9997_v15  ;;  %v6253_v44 = vpop.f32.mrb[249].mxu0  ;;  %v10504_v20 = vld [vmem:[#allocation46_spill] sm:$0xff]  ;;  %v10506_v52 = vld [vmem:[#allocation48_spill] sm:$0xff] }
 0x37d   :  { %v6033_v27 = vpop.f32.mrb[11].mxu1  ;;  %6671 = vst [vmem:[#allocation8 + $0xe0] sm:$0xff] %v6607_v8  ;;  %v6608_v57 = vadd.f32 %v6544_v18, %v6480_v14  ;;  %v6254_v54 = vadd.f32 %v6253_v44, %v9978_v35  ;;  %v7449_v21 = vpop.f32.mrb[250].mxu0  ;;  %v6553_v42 = vld [vmem:[#allocation3 + $0x130] sm:$0xff]  ;;  %v10505_v18 = vld [vmem:[#allocation52_spill] sm:$0xff] }
 0x37e   :  { %6674 = vst [vmem:[#allocation8 + $0xf8] sm:$0xff] %v6610_v58  ;;  %v6414_v47 = vadd.f32 %v6262_v49, %v10500_v17  ;;  %v6265_v31 = vadd.f32 %v7449_v21, %v10001_v13  ;;  %v6256_v62 = vpop.f32.mrb[251].mxu0  ;;  %v6551_v14 = vld [vmem:[#allocation3 + $0x120] sm:$0xff]  ;;  %v6554_v49 = vld [vmem:[#allocation3 + $0x138] sm:$0xff]  ;;  %v10507_v44 = vld [vmem:[#allocation34_spill] sm:$0xff] }
 0x37f   :  { %6672 = vst [vmem:[#allocation8 + $0xe8] sm:$0xff] %v6608_v57  ;;  %v6412_v40 = vadd.f32 %v6254_v54, %v10501_v38  ;;  %v6257_v60 = vadd.f32 %v6256_v62, %v9980_v61  ;;  %v6552_v21 = vld [vmem:[#allocation3 + $0x128] sm:$0xff] }
 0x380   :  { %v6485_v15 = vadd.f32 %v9986_v1, %v6414_v47  ;;  %v6415_v10 = vadd.f32 %v6265_v31, %v10502_v59 }
 0x381   :  { %v6483_v35 = vadd.f32 %v9986_v1, %v6412_v40  ;;  %v6413_v46 = vadd.f32 %v6257_v60, %v10503_v3 }
 0x382   :  { %v10125_v30 = vpop.f32.mrb[12].mxu1  ;;  %v6613_v13 = vadd.f32 %v6549_v63, %v6485_v15  ;;  %v6486_v22 = vadd.f32 %v9986_v1, %v6415_v10  ;;  %v10508_v10 = vld [vmem:[#allocation30_spill] sm:$0xff] }
 0x383   :  { %v6038_v4 = vpop.f32.mrb[13].mxu1  ;;  %v6611_v2 = vadd.f32 %v6547_v23, %v6483_v35  ;;  %v6484_v61 = vadd.f32 %v9986_v1, %v6413_v46  ;;  %v7452_v56 = vpop.f32.mrb[252].mxu0  ;;  %v6557_v46 = vld [vmem:[#allocation3 + $0x150] sm:$0xff] }
 0x384   :  { %v10129_v25 = vpop.f32.mrb[14].mxu1  ;;  %6677 = vst [vmem:[#allocation8 + $0x110] sm:$0xff] %v6613_v13  ;;  %v6614_v11 = vadd.f32 %v6550_v5, %v6486_v22  ;;  %v6278_v7 = vadd.f32 %v7452_v56, %v10029_v34  ;;  %v6269_v6 = vpop.f32.mrb[253].mxu0  ;;  %v10509_v13 = vld [vmem:[#allocation36_spill] sm:$0xff]  ;;  %v6558_v56 = vld [vmem:[#allocation3 + $0x158] sm:$0xff] }
 0x385   :  { %v6041_v19 = vpop.f32.mrb[15].mxu1  ;;  %6675 = vst [vmem:[#allocation8 + $0x100] sm:$0xff] %v6611_v2  ;;  %v6612_v43 = vadd.f32 %v6548_v33, %v6484_v61  ;;  %v6270_v39 = vadd.f32 %v6269_v6, %v10013_v50  ;;  %v7453_v24 = vpop.f32.mrb[254].mxu0  ;;  %v6555_v4 = vld [vmem:[#allocation3 + $0x140] sm:$0xff] }
 0x386   :  { %6678 = vst [vmem:[#allocation8 + $0x118] sm:$0xff] %v6614_v11  ;;  %v6418_v9 = vadd.f32 %v6278_v7, %v10504_v20  ;;  %v6281_v29 = vadd.f32 %v7453_v24, %v10033_v36  ;;  %v6272_v53 = vpop.f32.mrb[255].mxu0  ;;  %v10510_v2 = vld [vmem:[#allocation56_spill] sm:$0xff] }
 0x387   :  { %6676 = vst [vmem:[#allocation8 + $0x108] sm:$0xff] %v6612_v43  ;;  %v6416_v45 = vadd.f32 %v6270_v39, %v10505_v18  ;;  %v6273_v8 = vadd.f32 %v6272_v53, %v10017_v32  ;;  %v10511_v11 = vld [vmem:[#allocation32_spill] sm:$0xff]  ;;  %v6556_v43 = vld [vmem:[#allocation3 + $0x148] sm:$0xff] }
 0x388   :  { %v6489_v34 = vadd.f32 %v9986_v1, %v6418_v9  ;;  %v6419_v58 = vadd.f32 %v6281_v29, %v10506_v52 }
 0x389   :  { %v6487_v50 = vadd.f32 %v9986_v1, %v6416_v45  ;;  %v6417_v27 = vadd.f32 %v6273_v8, %v10507_v44  ;;  %v10513_v44 = vld [vmem:[#allocation57_spill] sm:$0xff] }
 0x38a   :  { %v10141_v57 = vpop.f32.mrb[16].mxu1  ;;  %v6617_v36 = vadd.f32 %v6553_v42, %v6489_v34  ;;  %v6490_v54 = vadd.f32 %v9986_v1, %v6419_v58 }
 0x38b   :  { %v6046_v17 = vpop.f32.mrb[17].mxu1  ;;  %v6615_v47 = vadd.f32 %v6551_v14, %v6487_v50  ;;  %v6488_v32 = vadd.f32 %v9986_v1, %v6417_v27  ;;  %v7456_v31 = vpop.f32.mrb[0].mxu0  ;;  %v10512_v14 = vld [vmem:[#allocation54_spill] sm:$0xff] }
 0x38c   :  { %v10145_v62 = vpop.f32.mrb[18].mxu1  ;;  %6681 = vst [vmem:[#allocation8 + $0x130] sm:$0xff] %v6617_v36  ;;  %v6618_v63 = vadd.f32 %v6554_v49, %v6490_v54  ;;  %v6294_v38 = vadd.f32 %v7456_v31, %v10061_v16  ;;  %v6285_v40 = vpop.f32.mrb[1].mxu0  ;;  %v6561_v49 = vld [vmem:[#allocation3 + $0x170] sm:$0xff]  ;;  %v6559_v54 = vld [vmem:[#allocation3 + $0x160] sm:$0xff] }
 0x38d   :  { %v6049_v60 = vpop.f32.mrb[19].mxu1  ;;  %6679 = vst [vmem:[#allocation8 + $0x120] sm:$0xff] %v6615_v47  ;;  %v6616_v15 = vadd.f32 %v6552_v21, %v6488_v32  ;;  %v6286_v23 = vadd.f32 %v6285_v40, %v10045_v26  ;;  %v7457_v59 = vpop.f32.mrb[2].mxu0  ;;  %v10514_v21 = vld [vmem:[#allocation55_spill] sm:$0xff]  ;;  %v6560_v40 = vld [vmem:[#allocation3 + $0x168] sm:$0xff] }
 0x38e   :  { %6682 = vst [vmem:[#allocation8 + $0x138] sm:$0xff] %v6618_v63  ;;  %v6422_v35 = vadd.f32 %v6294_v38, %v10508_v10  ;;  %v6297_v5 = vadd.f32 %v7457_v59, %v10065_v12  ;;  %v6288_v3 = vpop.f32.mrb[3].mxu0  ;;  %v6562_v47 = vld [vmem:[#allocation3 + $0x178] sm:$0xff] }
 0x38f   :  { %6680 = vst [vmem:[#allocation8 + $0x128] sm:$0xff] %v6616_v15  ;;  %v6420_v22 = vadd.f32 %v6286_v23, %v10509_v13  ;;  %v6289_v33 = vadd.f32 %v6288_v3, %v10049_v28  ;;  %v10515_v32 = vld [vmem:[#allocation43_spill] sm:$0xff] }
 0x390   :  { %v6493_v16 = vadd.f32 %v9986_v1, %v6422_v35  ;;  %v6423_v61 = vadd.f32 %v6297_v5, %v10510_v2 }
 0x391   :  { %v6491_v26 = vadd.f32 %v9986_v1, %v6420_v22  ;;  %v6421_v7 = vadd.f32 %v6289_v33, %v10511_v11  ;;  %v10516_v33 = vld [vmem:[#allocation45_spill] sm:$0xff] }
 0x392   :  { %v10157_v6 = vpop.f32.mrb[20].mxu1  ;;  %v6621_v12 = vadd.f32 %v6557_v46, %v6493_v16  ;;  %v6494_v19 = vadd.f32 %v9986_v1, %v6423_v61  ;;  %v6565_v61 = vld [vmem:[#allocation3 + $0x190] sm:$0xff] }
 0x393   :  { %v6054_v39 = vpop.f32.mrb[21].mxu1  ;;  %v6619_v24 = vadd.f32 %v6555_v4, %v6491_v26  ;;  %v6492_v28 = vadd.f32 %v9986_v1, %v6421_v7  ;;  %v7460_v20 = vpop.f32.mrb[4].mxu0  ;;  %v10517_v26 = vld [vmem:[#allocation61_spill] sm:$0xff]  ;;  %v6563_v7 = vld [vmem:[#allocation3 + $0x180] sm:$0xff] }
 0x394   :  { %v10161_v9 = vpop.f32.mrb[22].mxu1  ;;  %6685 = vst [vmem:[#allocation8 + $0x150] sm:$0xff] %v6621_v12  ;;  %v6622_v29 = vadd.f32 %v6558_v56, %v6494_v19  ;;  %v6310_v53 = vadd.f32 %v7460_v20, %v10093_v51  ;;  %v6301_v42 = vpop.f32.mrb[5].mxu0  ;;  %v10518_v12 = vld [vmem:[#allocation41_spill] sm:$0xff]  ;;  %v10519_v39 = vld [vmem:[#allocation58_spill] sm:$0xff] }
 0x395   :  { %v6057_v18 = vpop.f32.mrb[23].mxu1  ;;  %6683 = vst [vmem:[#allocation8 + $0x140] sm:$0xff] %v6619_v24  ;;  %v6620_v45 = vadd.f32 %v6556_v43, %v6492_v28  ;;  %v6302_v8 = vadd.f32 %v6301_v42, %v10077_v0  ;;  %v7461_v34 = vpop.f32.mrb[6].mxu0  ;;  %v6566_v43 = vld [vmem:[#allocation3 + $0x198] sm:$0xff] }
 0x396   :  { %6686 = vst [vmem:[#allocation8 + $0x158] sm:$0xff] %v6622_v29  ;;  %v6426_v52 = vadd.f32 %v6310_v53, %v10512_v14  ;;  %v6313_v58 = vadd.f32 %v7461_v34, %v10097_v41  ;;  %v6304_v50 = vpop.f32.mrb[7].mxu0  ;;  %v6564_v29 = vld [vmem:[#allocation3 + $0x188] sm:$0xff] }
 0x397   :  { %6684 = vst [vmem:[#allocation8 + $0x148] sm:$0xff] %v6620_v45  ;;  %v6424_v27 = vadd.f32 %v6302_v8, %v10513_v44  ;;  %v6305_v36 = vadd.f32 %v6304_v50, %v10081_v55  ;;  %v10520_v44 = vld [vmem:[#allocation59_spill] sm:$0xff] }
 0x398   :  { %v6497_v51 = vadd.f32 %v9986_v1, %v6426_v52  ;;  %v6427_v17 = vadd.f32 %v6313_v58, %v10514_v21  ;;  %v10521_v21 = vld [vmem:[#allocation51_spill] sm:$0xff] }
 0x399   :  { %v6495_v0 = vadd.f32 %v9986_v1, %v6424_v27  ;;  %v6425_v31 = vadd.f32 %v6305_v36, %v10515_v32  ;;  %v10522_v32 = vld [vmem:[#allocation47_spill] sm:$0xff] }
 0x39a   :  { %v10173_v63 = vpop.f32.mrb[24].mxu1  ;;  %v6625_v41 = vadd.f32 %v6561_v49, %v6497_v51  ;;  %v6498_v38 = vadd.f32 %v9986_v1, %v6427_v17 }
 0x39b   :  { %v6062_v60 = vpop.f32.mrb[25].mxu1  ;;  %v6623_v15 = vadd.f32 %v6559_v54, %v6495_v0  ;;  %v6496_v55 = vadd.f32 %v9986_v1, %v6425_v31  ;;  %v7464_v23 = vpop.f32.mrb[8].mxu0  ;;  %v6569_v54 = vld [vmem:[#allocation3 + $0x1b0] sm:$0xff] }
 0x39c   :  { %v10177_v59 = vpop.f32.mrb[26].mxu1  ;;  %6689 = vst [vmem:[#allocation8 + $0x170] sm:$0xff] %v6625_v41  ;;  %v6626_v10 = vadd.f32 %v6562_v47, %v6498_v38  ;;  %v6326_v35 = vadd.f32 %v7464_v23, %v10125_v30  ;;  %v6317_v5 = vpop.f32.mrb[9].mxu0  ;;  %v6567_v47 = vld [vmem:[#allocation3 + $0x1a0] sm:$0xff]  ;;  %v6570_v41 = vld [vmem:[#allocation3 + $0x1b8] sm:$0xff]  ;;  %v10523_v38 = vld [vmem:[#allocation53_spill] sm:$0xff] }
 0x39d   :  { %v6065_v3 = vpop.f32.mrb[27].mxu1  ;;  %6687 = vst [vmem:[#allocation8 + $0x160] sm:$0xff] %v6623_v15  ;;  %v6624_v46 = vadd.f32 %v6560_v40, %v6496_v55  ;;  %v6318_v13 = vadd.f32 %v6317_v5, %v10109_v37  ;;  %v7465_v22 = vpop.f32.mrb[10].mxu0  ;;  %v6568_v55 = vld [vmem:[#allocation3 + $0x1a8] sm:$0xff] }
 0x39e   :  { %6690 = vst [vmem:[#allocation8 + $0x178] sm:$0xff] %v6626_v10  ;;  %v6430_v16 = vadd.f32 %v6326_v35, %v10516_v33  ;;  %v6329_v4 = vadd.f32 %v7465_v22, %v10129_v25  ;;  %v6320_v2 = vpop.f32.mrb[11].mxu0 }
 0x39f   :  { %6688 = vst [vmem:[#allocation8 + $0x168] sm:$0xff] %v6624_v46  ;;  %v6428_v56 = vadd.f32 %v6318_v13, %v10517_v26  ;;  %v6321_v11 = vadd.f32 %v6320_v2, %v10113_v48  ;;  %v10524_v2 = vld [vmem:[#allocation64_spill] sm:$0xff] }
 0x3a0   :  { %v6501_v30 = vadd.f32 %v9986_v1, %v6430_v16  ;;  %v6431_v19 = vadd.f32 %v6329_v4, %v10518_v12 }
 0x3a1   :  { %v6499_v37 = vadd.f32 %v9986_v1, %v6428_v56  ;;  %v6429_v24 = vadd.f32 %v6321_v11, %v10519_v39  ;;  %v6573_v11 = vld [vmem:[#allocation3 + $0x1d0] sm:$0xff] }
 0x3a2   :  { %v6068_v28 = vpop.f32.mrb[28].mxu1  ;;  %v6629_v20 = vadd.f32 %v6565_v61, %v6501_v30  ;;  %v6502_v25 = vadd.f32 %v9986_v1, %v6431_v19  ;;  %v10525_v30 = vld [vmem:[#allocation68_spill] sm:$0xff] }
 0x3a3   :  { %v6070_v53 = vpop.f32.mrb[29].mxu1  ;;  %v6627_v42 = vadd.f32 %v6563_v7, %v6499_v37  ;;  %v6500_v18 = vadd.f32 %v9986_v1, %v6429_v24  ;;  %v7468_v48 = vpop.f32.mrb[12].mxu0  ;;  %v6571_v37 = vld [vmem:[#allocation3 + $0x1c0] sm:$0xff] }
 0x3a4   :  { %v6071_v45 = vpop.f32.mrb[30].mxu1  ;;  %6693 = vst [vmem:[#allocation8 + $0x190] sm:$0xff] %v6629_v20  ;;  %v6630_v8 = vadd.f32 %v6566_v43, %v6502_v25  ;;  %v6342_v34 = vadd.f32 %v7468_v48, %v10157_v6  ;;  %v6333_v14 = vpop.f32.mrb[13].mxu0  ;;  %v10526_v43 = vld [vmem:[#allocation65_spill] sm:$0xff] }
 0x3a5   :  { %v6073_v52 = vpop.f32.mrb[31].mxu1  ;;  %6691 = vst [vmem:[#allocation8 + $0x180] sm:$0xff] %v6627_v42  ;;  %v6628_v58 = vadd.f32 %v6564_v29, %v6500_v18  ;;  %v6334_v50 = vadd.f32 %v6333_v14, %v10141_v57  ;;  %v7469_v49 = vpop.f32.mrb[14].mxu0  ;;  %v6572_v42 = vld [vmem:[#allocation3 + $0x1c8] sm:$0xff] }
 0x3a6   :  { %6694 = vst [vmem:[#allocation8 + $0x198] sm:$0xff] %v6630_v8  ;;  %v6434_v27 = vadd.f32 %v6342_v34, %v10520_v44  ;;  %v6345_v36 = vadd.f32 %v7469_v49, %v10161_v9  ;;  %v6336_v51 = vpop.f32.mrb[15].mxu0 }
 0x3a7   :  { %6692 = vst [vmem:[#allocation8 + $0x188] sm:$0xff] %v6628_v58  ;;  %v6432_v17 = vadd.f32 %v6334_v50, %v10521_v21  ;;  %v6337_v0 = vadd.f32 %v6336_v51, %v10145_v62  ;;  %v6577_v21 = vld [vmem:[#allocation3 + $0x1f0] sm:$0xff] }
 0x3a8   :  { %v6505_v6 = vadd.f32 %v9986_v1, %v6434_v27  ;;  %v6435_v31 = vadd.f32 %v6345_v36, %v10522_v32  ;;  %v10528_v27 = vld [vmem:[#allocation71_spill] sm:$0xff]  ;;  %v6575_v32 = vld [vmem:[#allocation3 + $0x1e0] sm:$0xff] }
 0x3a9   :  { %v6503_v57 = vadd.f32 %v9986_v1, %v6432_v17  ;;  %v6433_v40 = vadd.f32 %v6337_v0, %v10523_v38  ;;  %v10529_v17 = vld [vmem:[#allocation76_spill] sm:$0xff]  ;;  %v6578_v38 = vld [vmem:[#allocation3 + $0x1f8] sm:$0xff] }
 0x3aa   :  { %v6076_v60 = vpop.f32.mrb[32].mxu1  ;;  %v6633_v15 = vadd.f32 %v6569_v54, %v6505_v6  ;;  %v6506_v9 = vadd.f32 %v9986_v1, %v6435_v31  ;;  %v10530_v31 = vld [vmem:[#allocation74_spill] sm:$0xff] }
 0x3ab   :  { %v6078_v23 = vpop.f32.mrb[33].mxu1  ;;  %v6631_v10 = vadd.f32 %v6567_v47, %v6503_v57  ;;  %v6504_v35 = vadd.f32 %v9986_v1, %v6433_v40  ;;  %v7472_v62 = vpop.f32.mrb[16].mxu0  ;;  %v10531_v40 = vld [vmem:[#allocation77_spill] sm:$0xff] }
 0x3ac   :  { %v6079_v5 = vpop.f32.mrb[34].mxu1  ;;  %6697 = vst [vmem:[#allocation8 + $0x1b0] sm:$0xff] %v6633_v15  ;;  %v6634_v3 = vadd.f32 %v6570_v41, %v6506_v9  ;;  %v6358_v46 = vadd.f32 %v7472_v62, %v6068_v28  ;;  %v6349_v13 = vpop.f32.mrb[17].mxu0  ;;  %v10527_v28 = vld [vmem:[#allocation72_spill] sm:$0xff] }
 0x3ad   :  { %v6081_v22 = vpop.f32.mrb[35].mxu1  ;;  %6695 = vst [vmem:[#allocation8 + $0x1a0] sm:$0xff] %v6631_v10  ;;  %v6632_v33 = vadd.f32 %v6568_v55, %v6504_v35  ;;  %v6350_v16 = vadd.f32 %v6349_v13, %v10173_v63  ;;  %v7473_v4 = vpop.f32.mrb[18].mxu0  ;;  %v6574_v63 = vld [vmem:[#allocation3 + $0x1d8] sm:$0xff]  ;;  %v6576_v55 = vld [vmem:[#allocation3 + $0x1e8] sm:$0xff] }
 0x3ae   :  { %6698 = vst [vmem:[#allocation8 + $0x1b8] sm:$0xff] %v6634_v3  ;;  %v6438_v61 = vadd.f32 %v6358_v46, %v10524_v2  ;;  %v6361_v26 = vadd.f32 %v7473_v4, %v6071_v45  ;;  %v6352_v56 = vpop.f32.mrb[19].mxu0 }
 0x3af   :  { %6696 = vst [vmem:[#allocation8 + $0x1a8] sm:$0xff] %v6632_v33  ;;  %v6436_v7 = vadd.f32 %v6350_v16, %v10525_v30  ;;  %v6353_v12 = vadd.f32 %v6352_v56, %v10177_v59 }
 0x3b0   :  { %v6509_v19 = vadd.f32 %v9986_v1, %v6438_v61  ;;  %v6439_v39 = vadd.f32 %v6361_v26, %v10526_v43 }
 0x3b1   :  { %v6507_v24 = vadd.f32 %v9986_v1, %v6436_v7  ;;  %v6437_v20 = vadd.f32 %v6353_v12, %v10527_v28 }
 0x3b2   :  { %v6084_v25 = vpop.f32.mrb[36].mxu1  ;;  %v6637_v29 = vadd.f32 %v6573_v11, %v6509_v19  ;;  %v6510_v53 = vadd.f32 %v9986_v1, %v6439_v39 }
 0x3b3   :  { %v6086_v18 = vpop.f32.mrb[37].mxu1  ;;  %v6635_v48 = vadd.f32 %v6571_v37, %v6507_v24  ;;  %v6508_v45 = vadd.f32 %v9986_v1, %v6437_v20  ;;  %v7476_v59 = vpop.f32.mrb[20].mxu0 }
 0x3b4   :  { %v6087_v8 = vpop.f32.mrb[38].mxu1  ;;  %6701 = vst [vmem:[#allocation8 + $0x1d0] sm:$0xff] %v6637_v29  ;;  %v6638_v34 = vadd.f32 %v6574_v63, %v6510_v53  ;;  %v6374_v14 = vadd.f32 %v7476_v59, %v6084_v25  ;;  %v6365_v52 = vpop.f32.mrb[21].mxu0 }
 0x3b5   :  { %v6089_v58 = vpop.f32.mrb[39].mxu1  ;;  %6699 = vst [vmem:[#allocation8 + $0x1c0] sm:$0xff] %v6635_v48  ;;  %v6636_v50 = vadd.f32 %v6572_v42, %v6508_v45  ;;  %v6366_v49 = vadd.f32 %v6365_v52, %v6076_v60  ;;  %v7477_v44 = vpop.f32.mrb[22].mxu0 }
 0x3b6   :  { %6702 = vst [vmem:[#allocation8 + $0x1d8] sm:$0xff] %v6638_v34  ;;  %v6442_v36 = vadd.f32 %v6374_v14, %v10528_v27  ;;  %v6377_v51 = vadd.f32 %v7477_v44, %v6087_v8  ;;  %v6368_v54 = vpop.f32.mrb[23].mxu0 }
 0x3b7   :  { %6700 = vst [vmem:[#allocation8 + $0x1c8] sm:$0xff] %v6636_v50  ;;  %v6440_v0 = vadd.f32 %v6366_v49, %v10529_v17  ;;  %v6369_v6 = vadd.f32 %v6368_v54, %v6079_v5 }
 0x3b8   :  { %v6513_v47 = vadd.f32 %v9986_v1, %v6442_v36  ;;  %v6443_v57 = vadd.f32 %v6377_v51, %v10530_v31 }
 0x3b9   :  { %v6511_v41 = vadd.f32 %v9986_v1, %v6440_v0  ;;  %v6441_v60 = vadd.f32 %v6369_v6, %v10531_v40 }
 0x3ba   :  { %v6641_v15 = vadd.f32 %v6577_v21, %v6513_v47  ;;  %v6514_v9 = vadd.f32 %v9986_v1, %v6443_v57 }
 0x3bb   :  { %v6639_v23 = vadd.f32 %v6575_v32, %v6511_v41  ;;  %v6512_v10 = vadd.f32 %v9986_v1, %v6441_v60 }
 0x3bc   :  { %6705 = vst [vmem:[#allocation8 + $0x1f0] sm:$0xff] %v6641_v15  ;;  %v6642_v35 = vadd.f32 %v6578_v38, %v6514_v9 }
 0x3bd   :  { %6703 = vst [vmem:[#allocation8 + $0x1e0] sm:$0xff] %v6639_v23  ;;  %v6640_v62 = vadd.f32 %v6576_v55, %v6512_v10 }
 0x3be   :  { %6706 = vst [vmem:[#allocation8 + $0x1f8] sm:$0xff] %v6642_v35 }
 0x3bf   :  { %6704 = vst [vmem:[#allocation8 + $0x1e8] sm:$0xff] %v6640_v62 }
 0x3c0   :  { %7964 = shalt.err (!%p7961_p6)
}
 0x3c1   :  { %s7965_s17 = scalar_lea.hbm %s10239_s3, 8192 }
 0x3c2   :  { %p7966_p7 = scmp.ne.s32.totalorder %s10239_s3, %s7965_s17  ;;  %p7969_p8 = scmp.lt.u32.totalorder %s7965_s17, %s10239_s3 }
 0x3c4   :  { %p7971_p9 = pnand %p7969_p8, %p7966_p7 }
 0x3c6   :  { %7974 = shalt.err (!%p7971_p9)
}
 0x3c7   :  { %6718 = dma.vmem_to_hbm [thread:$0]  %s6713_s13, 8192, %s10239_s3, [#allocation5], %s7982_s22, %s7982_s22, %s7983_s23  }
 0x3c8   :  { %7979 = dma.done.wait [#allocation5], 8192  }
 0x3c9   :  { %7980 = vsyncadd [#allocation5], 4294959104 }
 0x3ca   :  { %6722 = vsyncpa [#allocation4], 1 }
 0x3cb   :  { %6723 = vsyncpa [#allocation7], 1 }
 0x3cc   :  { %6724 = vsyncpa [#allocation5], 1 }

</bundles_post_ra>
